<compile_context>
chip_gen: v7x
topology: tpu7x:2x2x1
jax: 0.10.0
libtpu: 0.0.40
codegen_flags: <defaults>
</compile_context>

<pallas_src>
import jax
import jax.numpy as jnp
from jax import lax
from jax.experimental import pallas as pl
from jax.experimental.pallas import tpu as pltpu

# Module hyperparameters (consistent with the PyTorch module: n_embed = 128).
N_EMBED = 128
NUM_HEAD = 4
HEAD_SIZE = N_EMBED // NUM_HEAD  # 32, so num_head * head_size == n_embed
BATCH = 2
SEQ = 128  # T <= block_size (256); causal mask built with iota == tril[:T, :T]


def mha_kernel(x_ref, wqkv_ref, wpt_ref, bp_ref, o_ref, cat_ref):
    # x_ref:    (T, C)  input dtype (batch dim squeezed by BlockSpec)
    # wqkv_ref: (C, 3*H*hs) bf16   fused, pre-transposed QKV weight
    # wpt_ref:  (H*hs, C) bf16     pre-transposed output projection weight
    # bp_ref:   (1, C) f32         output projection bias
    # o_ref:    (T, C)             output
    # cat_ref:  (T, H*hs) bf16     VMEM scratch holding the head "concat"
    T, C = x_ref.shape
    HH = NUM_HEAD * HEAD_SIZE

    x = x_ref[...].astype(jnp.bfloat16)

    # Fused QKV projection: one full-width MXU matmul, f32 accumulation.
    qkv = jnp.dot(x, wqkv_ref[...], preferred_element_type=jnp.float32)  # (T, 3*HH)

    # Fold the softmax scale into q (T*HH elements instead of H*T*T).
    # PyTorch module uses C**-0.5 with C = n_embed.
    scale = jnp.float32(C ** -0.5)
    q = (qkv[:, 0:HH] * scale).astype(jnp.bfloat16)
    k = qkv[:, HH:2 * HH].astype(jnp.bfloat16)
    v = qkv[:, 2 * HH:3 * HH].astype(jnp.bfloat16)

    # Causal mask (== tril[:T, :T] of the module's registered buffer).
    row = lax.broadcasted_iota(jnp.int32, (T, T), 0)
    col = lax.broadcasted_iota(jnp.int32, (T, T), 1)
    causal = col <= row
    neg_big = jnp.float32(-1e30)  # large finite negative: exp underflows to 0

    for h in range(NUM_HEAD):  # H = 4: small static unroll
        lo = h * HEAD_SIZE
        q_h = q[:, lo:lo + HEAD_SIZE]   # (T, hs) bf16, static lane slice
        k_h = k[:, lo:lo + HEAD_SIZE]
        v_h = v[:, lo:lo + HEAD_SIZE]

        # q_h @ k_h^T without materializing a transpose (contract last dims).
        s = jnp.einsum("qd,kd->qk", q_h, k_h,
                       preferred_element_type=jnp.float32)  # (T, T) f32
        s = jnp.where(causal, s, neg_big)

        # Softmax statistics in f32; normalization deferred past the PV matmul.
        m = jnp.max(s, axis=-1, keepdims=True)
        e = jnp.exp(s - m)
        denom = jnp.sum(e, axis=-1, keepdims=True)

        o_h = jnp.dot(e.astype(jnp.bfloat16), v_h,
                      preferred_element_type=jnp.float32)    # (T, hs) unnormalized
        o_h = o_h * pl.reciprocal(denom, approx=True)        # EUP reciprocal

        # dropout(p) -> identity at inference
        # "concat": write head output at a static lane offset into VMEM scratch.
        cat_ref[:, lo:lo + HEAD_SIZE] = o_h.astype(cat_ref.dtype)

    # Output projection: single full 128-deep bf16 matmul + f32 bias add.
    y = jnp.dot(cat_ref[...], wpt_ref[...], preferred_element_type=jnp.float32)
    y = y + bp_ref[...]
    # dropout(y) -> identity at inference
    o_ref[...] = y.astype(o_ref.dtype)


def multi_head_attention(x, wq, wk, wv, wp, bp):
    B, T, C = x.shape
    H, hs, _ = wq.shape
    HH = H * hs

    # Host-side (free) weight fusion / transposition:
    #   per-head (out, in) weights -> stacked (3*HH, C) -> transposed (C, 3*HH)
    w_qkv = jnp.concatenate(
        [wq.reshape(HH, C), wk.reshape(HH, C), wv.reshape(HH, C)], axis=0
    ).T.astype(jnp.bfloat16)                     # (C, 3*HH)
    wp_t = wp.T.astype(jnp.bfloat16)             # (HH, C)
    bp2 = bp.reshape(1, C).astype(jnp.float32)   # (1, C)

    return pl.pallas_call(
        mha_kernel,
        out_shape=jax.ShapeDtypeStruct((B, T, C), x.dtype),
        grid_spec=pltpu.PrefetchScalarGridSpec(
            num_scalar_prefetch=0,
            grid=(B,),
            in_specs=[
                pl.BlockSpec((None, T, C), lambda b: (b, 0, 0)),   # x (batch squeezed)
                pl.BlockSpec((C, 3 * HH), lambda b: (0, 0)),       # fused QKV weight
                pl.BlockSpec((HH, C), lambda b: (0, 0)),           # proj weight (transposed)
                pl.BlockSpec((1, C), lambda b: (0, 0)),            # proj bias
            ],
            out_specs=pl.BlockSpec((None, T, C), lambda b: (b, 0, 0)),
            scratch_shapes=[pltpu.VMEM((T, HH), jnp.bfloat16)],    # head "concat" buffer
        ),
        compiler_params=pltpu.CompilerParams(dimension_semantics=("parallel",)),
    )(x, w_qkv, wp_t, bp2)


def mha_reference(x, wq, wk, wv, wp, bp):
    # pure-JAX f32 reference mirroring the PyTorch forward (dropout in eval mode)
    B, T, C = x.shape
    H, hs, _ = wq.shape
    outs = []
    mask = jnp.tril(jnp.ones((T, T), dtype=bool))
    for h in range(H):
        q = x @ wq[h].T
        k = x @ wk[h].T
        v = x @ wv[h].T
        wei = (q @ jnp.swapaxes(k, -2, -1)) * (C ** -0.5)
        wei = jnp.where(mask, wei, -jnp.inf)
        wei = jax.nn.softmax(wei, axis=-1)
        outs.append(wei @ v)
    cat = jnp.concatenate(outs, axis=-1)
    return cat @ wp.T + bp


if __name__ == "__main__":
    key = jax.random.PRNGKey(0)
    kx, kq, kk, kv, kp, kb = jax.random.split(key, 6)

    x = jax.random.normal(kx, (BATCH, SEQ, N_EMBED), dtype=jnp.float32)
    # PyTorch Linear weight layout: (out_features, in_features), stacked per head.
    wq = jax.random.normal(kq, (NUM_HEAD, HEAD_SIZE, N_EMBED), dtype=jnp.float32) * 0.05
    wk = jax.random.normal(kk, (NUM_HEAD, HEAD_SIZE, N_EMBED), dtype=jnp.float32) * 0.05
    wv = jax.random.normal(kv, (NUM_HEAD, HEAD_SIZE, N_EMBED), dtype=jnp.float32) * 0.05
    wp = jax.random.normal(kp, (N_EMBED, NUM_HEAD * HEAD_SIZE), dtype=jnp.float32) * 0.05
    bp = jax.random.normal(kb, (N_EMBED,), dtype=jnp.float32) * 0.05

    out = multi_head_attention(x, wq, wk, wv, wp, bp)
    out = jax.block_until_ready(out)

    ref = mha_reference(x, wq, wk, wv, wp, bp)
    assert out.shape == (BATCH, SEQ, N_EMBED)
    # bf16 matmul inputs + approx reciprocal -> relaxed tolerance vs f32 reference
    assert jnp.allclose(out, ref, atol=2e-2, rtol=2e-2), (
        float(jnp.max(jnp.abs(out - ref)))
    )

    print("KERNEL_OK")
</pallas_src>

<mosaic_0001>
module attributes {stable_mosaic.version = 11 : i64} {
  func.func @mha_kernel(%arg0: i32, %arg1: memref<1x128x128xf32, #tpu.memory_space<vmem>>, %arg2: memref<128x384xbf16, #tpu.memory_space<vmem>>, %arg3: memref<128x128xbf16, #tpu.memory_space<vmem>>, %arg4: memref<1x128xf32, #tpu.memory_space<vmem>>, %arg5: memref<1x128x128xf32, #tpu.memory_space<vmem>>, %arg6: memref<128x128xbf16, #tpu.memory_space<vmem>>) attributes {dimension_semantics = [#tpu.dimension_semantics<parallel>], iteration_bounds = array<i64: 2>, scalar_prefetch = 0 : i64, scratch_operands = 1 : i64, tpu.core_type = #tpu.core_type<tc>, window_params = [{transform_indices = @transform_0, window_bounds = array<i64: 1, 128, 128>}, {pipeline_mode = #tpu.pipeline_mode<synchronous>, transform_indices = @transform_1, window_bounds = array<i64: 128, 384>}, {pipeline_mode = #tpu.pipeline_mode<synchronous>, transform_indices = @transform_2, window_bounds = array<i64: 128, 128>}, {pipeline_mode = #tpu.pipeline_mode<synchronous>, transform_indices = @transform_3, window_bounds = array<i64: 1, 128>}, {transform_indices = @transform_4, window_bounds = array<i64: 1, 128, 128>}]} {
    %c0 = arith.constant 0 : index
    %c0_0 = arith.constant 0 : index
    %c0_1 = arith.constant 0 : index
    %0 = vector.load %arg1[%c0, %c0_0, %c0_1] : memref<1x128x128xf32, #tpu.memory_space<vmem>>, vector<1x128x128xf32>
    %1 = vector.shape_cast %0 : vector<1x128x128xf32> to vector<128x128xf32>
    %2 = arith.truncf %1 : vector<128x128xf32> to vector<128x128xbf16>
    %c0_2 = arith.constant 0 : index
    %c0_3 = arith.constant 0 : index
    %3 = vector.load %arg2[%c0_2, %c0_3] : memref<128x384xbf16, #tpu.memory_space<vmem>>, vector<128x384xbf16>
    %cst = arith.constant dense<0.000000e+00> : vector<128x384xf32>
    %4 = tpu.matmul %2, %3, %cst {dimension_numbers = #tpu.dot_dimension_numbers<[1], [0], [0], [1], [0, 0, 1, 1], [], []>} : vector<128x128xbf16>, vector<128x384xbf16>, vector<128x384xf32> -> vector<128x384xf32>
    %5 = vector.extract_strided_slice %4 {offsets = [0, 0], sizes = [128, 128], strides = [1, 1]} : vector<128x384xf32> to vector<128x128xf32>
    %cst_4 = arith.constant 0.0883883461 : f32
    %6 = vector.broadcast %cst_4 : f32 to vector<128x128xf32>
    %7 = arith.mulf %5, %6 : vector<128x128xf32>
    %8 = arith.truncf %7 : vector<128x128xf32> to vector<128x128xbf16>
    %9 = vector.extract_strided_slice %4 {offsets = [0, 128], sizes = [128, 128], strides = [1, 1]} : vector<128x384xf32> to vector<128x128xf32>
    %10 = arith.truncf %9 : vector<128x128xf32> to vector<128x128xbf16>
    %11 = vector.extract_strided_slice %4 {offsets = [0, 256], sizes = [128, 128], strides = [1, 1]} : vector<128x384xf32> to vector<128x128xf32>
    %12 = arith.truncf %11 : vector<128x128xf32> to vector<128x128xbf16>
    %13 = tpu.iota {dimensions = array<i32: 0>} : vector<128x128xi32>
    %14 = tpu.iota {dimensions = array<i32: 1>} : vector<128x128xi32>
    %15 = arith.cmpi sle, %14, %13 : vector<128x128xi32>
    %16 = vector.extract_strided_slice %8 {offsets = [0, 0], sizes = [128, 32], strides = [1, 1]} : vector<128x128xbf16> to vector<128x32xbf16>
    %17 = vector.extract_strided_slice %10 {offsets = [0, 0], sizes = [128, 32], strides = [1, 1]} : vector<128x128xbf16> to vector<128x32xbf16>
    %18 = vector.extract_strided_slice %12 {offsets = [0, 0], sizes = [128, 32], strides = [1, 1]} : vector<128x128xbf16> to vector<128x32xbf16>
    "tpu.trace_start"() <{level = 10 : i32, message = "qd,kd->qk"}> : () -> ()
    %cst_5 = arith.constant dense<0.000000e+00> : vector<128x128xf32>
    %19 = tpu.matmul %16, %17, %cst_5 {dimension_numbers = #tpu.dot_dimension_numbers<[1], [1], [0], [0], [0, 0, 1, 0], [], []>} : vector<128x32xbf16>, vector<128x32xbf16>, vector<128x128xf32> -> vector<128x128xf32>
    %cst_6 = arith.constant -1.000000e+30 : f32
    "tpu.trace_stop"() : () -> ()
    %20 = vector.broadcast %cst_6 : f32 to vector<128x128xf32>
    %21 = arith.select %15, %19, %20 : vector<128x128xi1>, vector<128x128xf32>
    %cst_7 = arith.constant dense<0xFF800000> : vector<128xf32>
    %22 = vector.multi_reduction <maximumf>, %21, %cst_7 [1] : vector<128x128xf32> to vector<128xf32>
    %23 = vector.shape_cast %22 : vector<128xf32> to vector<128x1xf32>
    %24 = vector.broadcast %23 : vector<128x1xf32> to vector<128x128xf32>
    %25 = arith.subf %21, %24 : vector<128x128xf32>
    %26 = math.exp %25 : vector<128x128xf32>
    %cst_8 = arith.constant dense<0.000000e+00> : vector<128xf32>
    %27 = vector.multi_reduction <add>, %26, %cst_8 [1] : vector<128x128xf32> to vector<128xf32>
    %28 = vector.shape_cast %27 : vector<128xf32> to vector<128x1xf32>
    %29 = arith.truncf %26 : vector<128x128xf32> to vector<128x128xbf16>
    %cst_9 = arith.constant dense<0.000000e+00> : vector<128x32xf32>
    %30 = tpu.matmul %29, %18, %cst_9 {dimension_numbers = #tpu.dot_dimension_numbers<[1], [0], [0], [1], [0, 0, 1, 1], [], []>} : vector<128x128xbf16>, vector<128x32xbf16>, vector<128x32xf32> -> vector<128x32xf32>
    %31 = tpu.reciprocal %28 {approx = true} : vector<128x1xf32> -> vector<128x1xf32>
    %32 = vector.broadcast %31 : vector<128x1xf32> to vector<128x32xf32>
    %33 = arith.mulf %30, %32 : vector<128x32xf32>
    %34 = arith.truncf %33 : vector<128x32xf32> to vector<128x32xbf16>
    %c0_10 = arith.constant 0 : index
    %c0_11 = arith.constant 0 : index
    %35 = vector.load %arg6[%c0_10, %c0_11] : memref<128x128xbf16, #tpu.memory_space<vmem>>, vector<128x32xbf16>
    tpu.vector_store %arg6[%c0_10, %c0_11], %34 {strides = array<i32>} : memref<128x128xbf16, #tpu.memory_space<vmem>>, vector<128x32xbf16>,
    %36 = vector.extract_strided_slice %8 {offsets = [0, 32], sizes = [128, 32], strides = [1, 1]} : vector<128x128xbf16> to vector<128x32xbf16>
    %37 = vector.extract_strided_slice %10 {offsets = [0, 32], sizes = [128, 32], strides = [1, 1]} : vector<128x128xbf16> to vector<128x32xbf16>
    %38 = vector.extract_strided_slice %12 {offsets = [0, 32], sizes = [128, 32], strides = [1, 1]} : vector<128x128xbf16> to vector<128x32xbf16>
    "tpu.trace_start"() <{level = 10 : i32, message = "qd,kd->qk"}> : () -> ()
    %cst_12 = arith.constant dense<0.000000e+00> : vector<128x128xf32>
    %39 = tpu.matmul %36, %37, %cst_12 {dimension_numbers = #tpu.dot_dimension_numbers<[1], [1], [0], [0], [0, 0, 1, 0], [], []>} : vector<128x32xbf16>, vector<128x32xbf16>, vector<128x128xf32> -> vector<128x128xf32>
    %cst_13 = arith.constant -1.000000e+30 : f32
    "tpu.trace_stop"() : () -> ()
    %40 = vector.broadcast %cst_13 : f32 to vector<128x128xf32>
    %41 = arith.select %15, %39, %40 : vector<128x128xi1>, vector<128x128xf32>
    %cst_14 = arith.constant dense<0xFF800000> : vector<128xf32>
    %42 = vector.multi_reduction <maximumf>, %41, %cst_14 [1] : vector<128x128xf32> to vector<128xf32>
    %43 = vector.shape_cast %42 : vector<128xf32> to vector<128x1xf32>
    %44 = vector.broadcast %43 : vector<128x1xf32> to vector<128x128xf32>
    %45 = arith.subf %41, %44 : vector<128x128xf32>
    %46 = math.exp %45 : vector<128x128xf32>
    %cst_15 = arith.constant dense<0.000000e+00> : vector<128xf32>
    %47 = vector.multi_reduction <add>, %46, %cst_15 [1] : vector<128x128xf32> to vector<128xf32>
    %48 = vector.shape_cast %47 : vector<128xf32> to vector<128x1xf32>
    %49 = arith.truncf %46 : vector<128x128xf32> to vector<128x128xbf16>
    %cst_16 = arith.constant dense<0.000000e+00> : vector<128x32xf32>
    %50 = tpu.matmul %49, %38, %cst_16 {dimension_numbers = #tpu.dot_dimension_numbers<[1], [0], [0], [1], [0, 0, 1, 1], [], []>} : vector<128x128xbf16>, vector<128x32xbf16>, vector<128x32xf32> -> vector<128x32xf32>
    %51 = tpu.reciprocal %48 {approx = true} : vector<128x1xf32> -> vector<128x1xf32>
    %52 = vector.broadcast %51 : vector<128x1xf32> to vector<128x32xf32>
    %53 = arith.mulf %50, %52 : vector<128x32xf32>
    %54 = arith.truncf %53 : vector<128x32xf32> to vector<128x32xbf16>
    %c0_17 = arith.constant 0 : index
    %c32 = arith.constant 32 : index
    %55 = vector.load %arg6[%c0_17, %c32] : memref<128x128xbf16, #tpu.memory_space<vmem>>, vector<128x32xbf16>
    tpu.vector_store %arg6[%c0_17, %c32], %54 {strides = array<i32>} : memref<128x128xbf16, #tpu.memory_space<vmem>>, vector<128x32xbf16>,
    %56 = vector.extract_strided_slice %8 {offsets = [0, 64], sizes = [128, 32], strides = [1, 1]} : vector<128x128xbf16> to vector<128x32xbf16>
    %57 = vector.extract_strided_slice %10 {offsets = [0, 64], sizes = [128, 32], strides = [1, 1]} : vector<128x128xbf16> to vector<128x32xbf16>
    %58 = vector.extract_strided_slice %12 {offsets = [0, 64], sizes = [128, 32], strides = [1, 1]} : vector<128x128xbf16> to vector<128x32xbf16>
    "tpu.trace_start"() <{level = 10 : i32, message = "qd,kd->qk"}> : () -> ()
    %cst_18 = arith.constant dense<0.000000e+00> : vector<128x128xf32>
    %59 = tpu.matmul %56, %57, %cst_18 {dimension_numbers = #tpu.dot_dimension_numbers<[1], [1], [0], [0], [0, 0, 1, 0], [], []>} : vector<128x32xbf16>, vector<128x32xbf16>, vector<128x128xf32> -> vector<128x128xf32>
    %cst_19 = arith.constant -1.000000e+30 : f32
    "tpu.trace_stop"() : () -> ()
    %60 = vector.broadcast %cst_19 : f32 to vector<128x128xf32>
    %61 = arith.select %15, %59, %60 : vector<128x128xi1>, vector<128x128xf32>
    %cst_20 = arith.constant dense<0xFF800000> : vector<128xf32>
    %62 = vector.multi_reduction <maximumf>, %61, %cst_20 [1] : vector<128x128xf32> to vector<128xf32>
    %63 = vector.shape_cast %62 : vector<128xf32> to vector<128x1xf32>
    %64 = vector.broadcast %63 : vector<128x1xf32> to vector<128x128xf32>
    %65 = arith.subf %61, %64 : vector<128x128xf32>
    %66 = math.exp %65 : vector<128x128xf32>
    %cst_21 = arith.constant dense<0.000000e+00> : vector<128xf32>
    %67 = vector.multi_reduction <add>, %66, %cst_21 [1] : vector<128x128xf32> to vector<128xf32>
    %68 = vector.shape_cast %67 : vector<128xf32> to vector<128x1xf32>
    %69 = arith.truncf %66 : vector<128x128xf32> to vector<128x128xbf16>
    %cst_22 = arith.constant dense<0.000000e+00> : vector<128x32xf32>
    %70 = tpu.matmul %69, %58, %cst_22 {dimension_numbers = #tpu.dot_dimension_numbers<[1], [0], [0], [1], [0, 0, 1, 1], [], []>} : vector<128x128xbf16>, vector<128x32xbf16>, vector<128x32xf32> -> vector<128x32xf32>
    %71 = tpu.reciprocal %68 {approx = true} : vector<128x1xf32> -> vector<128x1xf32>
    %72 = vector.broadcast %71 : vector<128x1xf32> to vector<128x32xf32>
    %73 = arith.mulf %70, %72 : vector<128x32xf32>
    %74 = arith.truncf %73 : vector<128x32xf32> to vector<128x32xbf16>
    %c0_23 = arith.constant 0 : index
    %c64 = arith.constant 64 : index
    %75 = vector.load %arg6[%c0_23, %c64] : memref<128x128xbf16, #tpu.memory_space<vmem>>, vector<128x32xbf16>
    tpu.vector_store %arg6[%c0_23, %c64], %74 {strides = array<i32>} : memref<128x128xbf16, #tpu.memory_space<vmem>>, vector<128x32xbf16>,
    %76 = vector.extract_strided_slice %8 {offsets = [0, 96], sizes = [128, 32], strides = [1, 1]} : vector<128x128xbf16> to vector<128x32xbf16>
    %77 = vector.extract_strided_slice %10 {offsets = [0, 96], sizes = [128, 32], strides = [1, 1]} : vector<128x128xbf16> to vector<128x32xbf16>
    %78 = vector.extract_strided_slice %12 {offsets = [0, 96], sizes = [128, 32], strides = [1, 1]} : vector<128x128xbf16> to vector<128x32xbf16>
    "tpu.trace_start"() <{level = 10 : i32, message = "qd,kd->qk"}> : () -> ()
    %cst_24 = arith.constant dense<0.000000e+00> : vector<128x128xf32>
    %79 = tpu.matmul %76, %77, %cst_24 {dimension_numbers = #tpu.dot_dimension_numbers<[1], [1], [0], [0], [0, 0, 1, 0], [], []>} : vector<128x32xbf16>, vector<128x32xbf16>, vector<128x128xf32> -> vector<128x128xf32>
    %cst_25 = arith.constant -1.000000e+30 : f32
    "tpu.trace_stop"() : () -> ()
    %80 = vector.broadcast %cst_25 : f32 to vector<128x128xf32>
    %81 = arith.select %15, %79, %80 : vector<128x128xi1>, vector<128x128xf32>
    %cst_26 = arith.constant dense<0xFF800000> : vector<128xf32>
    %82 = vector.multi_reduction <maximumf>, %81, %cst_26 [1] : vector<128x128xf32> to vector<128xf32>
    %83 = vector.shape_cast %82 : vector<128xf32> to vector<128x1xf32>
    %84 = vector.broadcast %83 : vector<128x1xf32> to vector<128x128xf32>
    %85 = arith.subf %81, %84 : vector<128x128xf32>
    %86 = math.exp %85 : vector<128x128xf32>
    %cst_27 = arith.constant dense<0.000000e+00> : vector<128xf32>
    %87 = vector.multi_reduction <add>, %86, %cst_27 [1] : vector<128x128xf32> to vector<128xf32>
    %88 = vector.shape_cast %87 : vector<128xf32> to vector<128x1xf32>
    %89 = arith.truncf %86 : vector<128x128xf32> to vector<128x128xbf16>
    %cst_28 = arith.constant dense<0.000000e+00> : vector<128x32xf32>
    %90 = tpu.matmul %89, %78, %cst_28 {dimension_numbers = #tpu.dot_dimension_numbers<[1], [0], [0], [1], [0, 0, 1, 1], [], []>} : vector<128x128xbf16>, vector<128x32xbf16>, vector<128x32xf32> -> vector<128x32xf32>
    %91 = tpu.reciprocal %88 {approx = true} : vector<128x1xf32> -> vector<128x1xf32>
    %92 = vector.broadcast %91 : vector<128x1xf32> to vector<128x32xf32>
    %93 = arith.mulf %90, %92 : vector<128x32xf32>
    %94 = arith.truncf %93 : vector<128x32xf32> to vector<128x32xbf16>
    %c0_29 = arith.constant 0 : index
    %c96 = arith.constant 96 : index
    %95 = vector.load %arg6[%c0_29, %c96] : memref<128x128xbf16, #tpu.memory_space<vmem>>, vector<128x32xbf16>
    tpu.vector_store %arg6[%c0_29, %c96], %94 {strides = array<i32>} : memref<128x128xbf16, #tpu.memory_space<vmem>>, vector<128x32xbf16>,
    %c0_30 = arith.constant 0 : index
    %c0_31 = arith.constant 0 : index
    %96 = vector.load %arg6[%c0_30, %c0_31] : memref<128x128xbf16, #tpu.memory_space<vmem>>, vector<128x128xbf16>
    %c0_32 = arith.constant 0 : index
    %c0_33 = arith.constant 0 : index
    %97 = vector.load %arg3[%c0_32, %c0_33] : memref<128x128xbf16, #tpu.memory_space<vmem>>, vector<128x128xbf16>
    %cst_34 = arith.constant dense<0.000000e+00> : vector<128x128xf32>
    %98 = tpu.matmul %96, %97, %cst_34 {dimension_numbers = #tpu.dot_dimension_numbers<[1], [0], [0], [1], [0, 0, 1, 1], [], []>} : vector<128x128xbf16>, vector<128x128xbf16>, vector<128x128xf32> -> vector<128x128xf32>
    %c0_35 = arith.constant 0 : index
    %c0_36 = arith.constant 0 : index
    %99 = vector.load %arg4[%c0_35, %c0_36] : memref<1x128xf32, #tpu.memory_space<vmem>>, vector<1x128xf32>
    %100 = vector.broadcast %99 : vector<1x128xf32> to vector<128x128xf32>
    %101 = arith.addf %98, %100 : vector<128x128xf32>
    %c0_37 = arith.constant 0 : index
    %c0_38 = arith.constant 0 : index
    %c0_39 = arith.constant 0 : index
    %102 = vector.load %arg5[%c0_37, %c0_38, %c0_39] : memref<1x128x128xf32, #tpu.memory_space<vmem>>, vector<1x128x128xf32>
    %103 = vector.shape_cast %102 : vector<1x128x128xf32> to vector<128x128xf32>
    %104 = vector.shape_cast %101 : vector<128x128xf32> to vector<1x128x128xf32>
    tpu.vector_store %arg5[%c0_37, %c0_38, %c0_39], %104 {strides = array<i32>} : memref<1x128x128xf32, #tpu.memory_space<vmem>>, vector<1x128x128xf32>,
    return
  }
  func.func @transform_0(%arg0: i32) -> (i32, i32, i32) {
    %c0_i32 = arith.constant 0 : i32
    %c0_i32_0 = arith.constant 0 : i32
    %c0_i32_1 = arith.constant 0 : i32
    return %arg0, %c0_i32, %c0_i32_0 : i32, i32, i32
  }
  func.func @transform_1(%arg0: i32) -> (i32, i32) {
    %c0_i32 = arith.constant 0 : i32
    %c0_i32_0 = arith.constant 0 : i32
    %c0_i32_1 = arith.constant 0 : i32
    return %c0_i32, %c0_i32_0 : i32, i32
  }
  func.func @transform_2(%arg0: i32) -> (i32, i32) {
    %c0_i32 = arith.constant 0 : i32
    %c0_i32_0 = arith.constant 0 : i32
    %c0_i32_1 = arith.constant 0 : i32
    return %c0_i32, %c0_i32_0 : i32, i32
  }
  func.func @transform_3(%arg0: i32) -> (i32, i32) {
    %c0_i32 = arith.constant 0 : i32
    %c0_i32_0 = arith.constant 0 : i32
    %c0_i32_1 = arith.constant 0 : i32
    return %c0_i32, %c0_i32_0 : i32, i32
  }
  func.func @transform_4(%arg0: i32) -> (i32, i32, i32) {
    %c0_i32 = arith.constant 0 : i32
    %c0_i32_0 = arith.constant 0 : i32
    %c0_i32_1 = arith.constant 0 : i32
    return %arg0, %c0_i32, %c0_i32_0 : i32, i32, i32
  }
}

</mosaic_0001>

<bundles_post_ra>
// kernel: tpu_custom_call.1
= control target key start
LH: loop header
LB: loop body
LE: loop exit
PB: predicated region body
PF: predicated region fallthrough
CT: control target
= control target key end

     0   :  { %9 = vsyncpa [#allocation4], 0  ;;  %s5845_s0 = inlined_call_operand.hbm [shape: f32[2,128,128], index: 0, kind: input, shape index: {}]   ;;  %s5846_s1 = inlined_call_operand.hbm [shape: bf16[128,384], index: 1, kind: input, shape index: {}]   ;;  %s5847_s2 = inlined_call_operand.hbm [shape: bf16[128,128], index: 2, kind: input, shape index: {}]   ;;  %s5848_s3 = inlined_call_operand.vmem [shape: f32[1,128], index: 3, kind: input, shape index: {}]   ;;  %s5849_s4 = inlined_call_operand.hbm [shape: f32[2,128,128], index: 4, kind: output, shape index: {}]  }
   0x1   :  { %11 = vsyncpa [#allocation4 + $0x1], 0 }
   0x2   :  { %12 = vsyncpa [#allocation7], 0 }
   0x3   :  { %13 = vsyncpa [#allocation5], 0 }
   0x4   :  { %15 = vsyncpa [#allocation5 + $0x1], 0  ;;  %s4196_s15 = smov 0   ;;  %s4198_s16 = smov 0  }
   0x5   :  { %s4200_s17 = smov 0   ;;  %s4202_s18 = smov 0  }
   0x6 LB: > { %s4217_s19 = sadd.s32 4294967295, %s4153_s18   ;;  %s3009_s20 = sadd.s32 4294967294, %s4153_s18   ;;  %s4153_s18 = sphi %s4202_s18, %s6072_s18   ;;  %s4149_s17 = sphi %s4200_s17, %s6071_s17   ;;  %s4145_s16 = sphi %s4198_s16, %s6070_s16   ;;  %s4141_s15 = sphi %s4196_s15, %s6069_s15  }
   0x7   : > { %p41_p0 = scmp.ne.s32.totalorder %s4145_s16, %s4141_s15  ;;  %p5850_p1 = scmp.eq.s32.totalorder %s4217_s19, 0 }
   0x8   : > { %p134_p3 = scmp.eq.s32.totalorder %s3009_s20, 1  ;;  %p3010_p5 = scmp.ge.s32.totalorder %s4153_s18, 1 }
   0x9   : > { %p4226_p4 = por %p5850_p1, %p41_p0  ;;  %p141_p7 = scmp.lt.s32.totalorder %s4153_s18, 3 }
   0xa   : > { %p4231_p6 = por %p134_p3, %p41_p0  ;;  %s4155_s24 = smov [#allocation6]  }
   0xb   : > { %s5896_s21 = scalar_select %p4226_p4, 1, 0 }
   0xc   : > { %s5897_s22 = scalar_select %p4231_p6, 1, 0 }
   0xd   : > { %p4236_p8 = pnand %p3010_p5, %p141_p7  ;;  %s153_s25 = sshll.u32 %s4155_s24, 4  ;;  %s4240_s25 = int_to_ptr.vmem [resolvable:$true] %s153_s25 }
   0xe   : > { %s4156_s27 = smov [#allocation8]   ;;  %s3997_s5 = scalar_lea.hbm %s5846_s1, 3072 }
   0xf   : > { %p3634_p9 = pneg %p4236_p8  ;;  %s166_s28 = sshll.u32 %s4156_s27, 4  ;;  %s4251_s28 = int_to_ptr.vmem [resolvable:$true] %s166_s28 }
  0x10   : > { %p3998_p12 = scmp.ne.s32.totalorder %s5846_s1, %s3997_s5  ;;  %p4004_p5 = scmp.lt.u32.totalorder %s3997_s5, %s5846_s1 }
  0x11   : > { %p4247_p11 = pnand %p3634_p9, %p5850_p1 }
  0x13   : > { %p3999_p13 = pneg %p4247_p11 }
  0x15   : > { %p4000_p0 = pnand %p3999_p13, %p3998_p12 }
  0x17   : > { %p4001_p3 = pneg %p4000_p0 }
  0x19   : > { %p4006_p7 = pnand %p4004_p5, %p4001_p3 }
  0x1b   : > { %4009 = shalt.err (!%p4006_p7)
}
  0x1c   : > { %s4010_s10 = scalar_lea.vmem %s4240_s25, 3072  ;;  %p4018_p2 = scmp.lt.s32.totalorder %s4240_s25, %s4240_s25 }
  0x1d   : > { %p4011_p9 = scmp.ne.s32.totalorder %s4240_s25, %s4010_s10  ;;  %p4019_p12 = scmp.lt.s32.totalorder %s4010_s10, %s4010_s10 }
  0x1f   : > { %p4013_p10 = pnand %p4011_p9, %p3999_p13  ;;  %p4020_p0 = por %p4019_p12, %p4018_p2 }
  0x21   : > { %p4014_p1 = pneg %p4013_p10 }
  0x23   : > { %p4021_p6 = pnand %p4020_p0, %p4014_p1 }
  0x25   : > { %4024 = shalt.err (!%p4021_p6)
}
  0x26   : > { %s4157_s11 = smov 192   ;;  %s4158_s12 = smov 12  }
  0x27   : > { %3637 = dma.hbm_to_vmem [thread:$0]  (!%p4247_p11), %s5846_s1, 3072, %s4240_s25, [#allocation7], %s4157_s11, %s4157_s11, %s4158_s12  }
  0x28   : > { %s4025_s27 = scalar_lea.hbm %s5847_s2, 1024 }
  0x29   : > { %p4026_p2 = scmp.ne.s32.totalorder %s5847_s2, %s4025_s27  ;;  %p4032_p10 = scmp.lt.u32.totalorder %s4025_s27, %s5847_s2 }
  0x2b   : > { %p4028_p1 = pnand %p4026_p2, %p3999_p13 }
  0x2d   : > { %p4029_p6 = pneg %p4028_p1 }
  0x2f   : > { %p4034_p3 = pnand %p4032_p10, %p4029_p6 }
  0x31   : > { %4037 = shalt.err (!%p4034_p3)
}
  0x32   : > { %s4038_s25 = scalar_lea.vmem %s4251_s28, 1024  ;;  %p4046_p12 = scmp.lt.s32.totalorder %s4251_s28, %s4251_s28 }
  0x33   : > { %p4039_p5 = scmp.ne.s32.totalorder %s4251_s28, %s4038_s25  ;;  %p4047_p0 = scmp.lt.s32.totalorder %s4038_s25, %s4038_s25 }
  0x35   : > { %p4041_p7 = pnand %p4039_p5, %p3999_p13  ;;  %p4048_p2 = por %p4047_p0, %p4046_p12 }
  0x37   : > { %p4042_p9 = pneg %p4041_p7 }
  0x39   : > { %p4049_p1 = pnand %p4048_p2, %p4042_p9 }
  0x3b   : > { %4052 = shalt.err (!%p4049_p1)
}
  0x3c   : > { %s4159_s7 = smov 64   ;;  %s4160_s8 = smov 4  }
  0x3d   : > { %3640 = dma.hbm_to_vmem [thread:$0]  (!%p4247_p11), %s5847_s2, 1024, %s4251_s28, [#allocation7], %s4159_s7, %s4159_s7, %s4160_s8  }
  0x3e   : > { %s4306_s11 = sadd.s32 1, %s4153_s18   ;;  %s28_s13 = sadd.s32 1, %s4149_s17 }
  0x3f   : > { %s25_s12 = ssub.s32 %s4153_s18, %s4306_s11  ;;  %p35_p6 = scmp.ne.s32.totalorder %s4149_s17, %s4145_s16 }
  0x40   : > { %p26_p13 = scmp.eq.s32.totalorder %s25_s12, 0  ;;  %p36_p10 = scmp.eq.s32.totalorder %s4153_s18, 0 }
  0x41   : > { %p5900_p5 = scmp.eq.s32.totalorder %s4217_s19, 1  ;;  %p3651_p9 = scmp.lt.s32.totalorder %s4153_s18, 2 }
  0x42   : > { %s4315_s14 = scalar_select %p26_p13, %s4149_s17, %s28_s13  }
  0x43   : > { %p37_p3 = por %p36_p10, %p35_p6  ;;  %p4319_p7 = por %p5900_p5, %p35_p6 }
  0x44   : > { %s183_s26 = sand.u32 1, %s4149_s17   ;;  %s3092_s28 = sshll.u32 %s4153_s18, 11 }
  0x45   : > { %s5901_s20 = scalar_select %p4319_p7, 1, 0 }
  0x46   : > { %s3014_s24 = sshll.u32 %s183_s26, 7  ;;  %s4329_s30 = scalar_lea.hbm %s5845_s0, %s3092_s28 }
  0x47   : > { %s187_s5 = scalar_lea.vmem [#allocation3], %s3014_s24  ;;  %p4333_p11 = pnand %p3651_p9, %p37_p3 }
  0x48   : > { %s194_s6 = sshll.u32 %s187_s5, 4  ;;  %s4337_s7 = scalar_lea.sflag [#allocation4], %s183_s26  ;;  %s4331_s6 = int_to_ptr.vmem [resolvable:$true] %s194_s6 }
  0x49   : > { %s4053_s8 = scalar_lea.hbm %s4329_s30, 2048  ;;  %p4055_p0 = pneg %p4333_p11 }
  0x4a   : > { %p4054_p12 = scmp.ne.s32.totalorder %s4329_s30, %s4053_s8  ;;  %s4058_s12 = scalar_lea.hbm %s5845_s0, 4096 }
  0x4b   : > { %p4059_p13 = scmp.lt.u32.totalorder %s4329_s30, %s5845_s0  ;;  %p4060_p6 = scmp.lt.u32.totalorder %s4058_s12, %s4053_s8 }
  0x4c   : > { %p4056_p2 = pnand %p4055_p0, %p4054_p12  ;;  %p4062_p3 = scmp.lt.u32.totalorder %s4053_s8, %s4329_s30 }
  0x4d   : > { %p4061_p10 = por %p4060_p6, %p4059_p13 }
  0x4e   : > { %p4057_p1 = pneg %p4056_p2 }
  0x4f   : > { %p4063_p5 = por %p4062_p3, %p4061_p10 }
  0x51   : > { %p4064_p9 = pnand %p4063_p5, %p4057_p1 }
  0x53   : > { %4067 = shalt.err (!%p4064_p9)
}
  0x54   : > { %s4068_s26 = scalar_lea.vmem %s4331_s6, 2048  ;;  %s4161_s28 = smov [#allocation3]  }
  0x55   : > { %p4069_p12 = scmp.ne.s32.totalorder %s4331_s6, %s4068_s26  ;;  %s4073_s27 = sshll.u32 %s4161_s28, 4  ;;  %s4074_s27 = int_to_ptr.vmem [resolvable:$false] %s4073_s27 }
  0x56   : > { %s4075_s29 = scalar_lea.vmem %s4074_s27, 4096  ;;  %p4076_p4 = scmp.lt.s32.totalorder %s4331_s6, %s4074_s27 }
  0x57   : > { %p4071_p2 = pnand %p4069_p12, %p4055_p0  ;;  %p4077_p13 = scmp.lt.s32.totalorder %s4075_s29, %s4068_s26 }
  0x59   : > { %p4072_p7 = pneg %p4071_p2  ;;  %p4078_p6 = por %p4077_p13, %p4076_p4 }
  0x5b   : > { %p4079_p10 = pnand %p4078_p6, %p4072_p7 }
  0x5d   : > { %4082 = shalt.err (!%p4079_p10)
}
  0x5e   : > { %s4162_s5 = smov 128   ;;  %s4163_s8 = smov 8  }
  0x5f   : > { %3644 = dma.hbm_to_vmem [thread:$0]  (!%p4333_p11), %s4329_s30, 2048, %s4331_s6, %s4337_s7, %s4162_s5, %s4162_s5, %s4163_s8  }
  0x60   : > { %206 = sbr.rel (%p4236_p8) target bundleno = 2845 (0xb1d), region = 36 }
  0x67   : > { %s4368_s9 = sand.u32 1, %s4145_s16   ;;  %p5903_p4 = scmp.ne.s32.totalorder %s5896_s21, 0 }
  0x68   : > { %s3018_s10 = sshll.u32 %s4368_s9, 7  ;;  %s209_s12 = scalar_lea.sflag [#allocation4], %s4368_s9 }
  0x69   : > { %s4374_s13 = scalar_lea.vmem [#allocation3], %s3018_s10 }
  0x6a   : > { %4128 = dma.done.wait (%p5903_p4), %s209_s12, 2048  }
  0x6b   : > { %4130 = vsyncadd (%p5903_p4), %s209_s12, 4294965248  ;;  %p5904_p7 = scmp.eq.s32.totalorder %s4217_s19, 0 }
  0x6d   : > { %4132 = dma.done.wait (%p5904_p7), [#allocation7], 4096   ;;  %p5905_p8 = pmov %p5904_p7 }
  0x6e   : > { %v4164_v0 = vmov 0   ;;  %v3701_v1 = vld [vmem:[#allocation6 + $0x4] ss:$12 sps:$4 sm:$0xff]   ;;  %v3703_v2 = vld [vmem:[#allocation6] ss:$12 sps:$4 sm:$0xff]   ;;  %v249_v27 = vld [vmem:[%s4374_s13 + $0x18] sm:$0xff] }
  0x6f   : > { %4134 = vsyncadd (%p5905_p8), [#allocation7], 4294963200  ;;  %462 = vmatprep.mubr.bf16.mxu0 %v4164_v0  ;;  %430 = vmatprep.subr.bf16.mxu0 %v3701_v1  ;;  %v3704_v3 = vld [vmem:[#allocation6 + $0x1c] ss:$12 sps:$4 sm:$0xff]   ;;  %v3706_v4 = vld [vmem:[#allocation6 + $0x18] ss:$12 sps:$4 sm:$0xff]  }
  0x70   : > { %431 = vmatpush1.bf16.msra.mxu0 %v3703_v2  ;;  %v3707_v5 = vld [vmem:[#allocation6 + $0x34] ss:$12 sps:$4 sm:$0xff]   ;;  %v3709_v6 = vld [vmem:[#allocation6 + $0x30] ss:$12 sps:$4 sm:$0xff]   ;;  %v3710_v7 = vld [vmem:[#allocation6 + $0x4c] ss:$12 sps:$4 sm:$0xff]  }
  0x71   : > { %432 = vmatprep.subr.bf16.mxu0 %v3704_v3  ;;  %v246_v8 = vld [vmem:[%s4374_s13] sm:$0xff]  ;;  %v3712_v9 = vld [vmem:[#allocation6 + $0x48] ss:$12 sps:$4 sm:$0xff]   ;;  %v3721_v20 = vld [vmem:[#allocation6 + $0x90] ss:$12 sps:$4 sm:$0xff]   ;;  %vm5895_vm0 = vcmask 261120  }
  0x72   : > { %v247_v10 = vld [vmem:[%s4374_s13 + $0x8] sm:$0xff]  ;;  %v3713_v11 = vld [vmem:[#allocation6 + $0x64] ss:$12 sps:$4 sm:$0xff]   ;;  %v3719_v18 = vld [vmem:[#allocation6 + $0x94] ss:$12 sps:$4 sm:$0xff]   ;;  %s4165_s21 = smov 96  }
  0x73   : > { %v262_v12 = vpack.c.bf16 %v247_v10, %v246_v8  ;;  %v3715_v13 = vld [vmem:[#allocation6 + $0x60] ss:$12 sps:$4 sm:$0xff]   ;;  %v3716_v14 = vld [vmem:[#allocation6 + $0x7c] ss:$12 sps:$4 sm:$0xff]   ;;  %v3718_v17 = vld [vmem:[#allocation6 + $0x78] ss:$12 sps:$4 sm:$0xff]  }
  0x74   : > { %433 = vmatpush1.bf16.msra.mxu0 %v3706_v4  ;;  %v3725_v15 = vld [vmem:[#allocation6 + $0x8] ss:$12 sps:$4 sm:$0xff]   ;;  %v3726_v16 = vld [vmem:[#allocation6 + $0x20] ss:$12 sps:$4 sm:$0xff]   ;;  %v3727_v19 = vld [vmem:[#allocation6 + $0x38] ss:$12 sps:$4 sm:$0xff]  }
  0x75   : > { %434 = vmatprep.subr.bf16.mxu0 %v3707_v5  ;;  %3270 = vmatprep.mubr.bf16.mxu1 %v262_v12  ;;  %v3722_v21 = vld [vmem:[#allocation6 + $0xac] ss:$12 sps:$4 sm:$0xff]   ;;  %v3728_v22 = vld [vmem:[#allocation6 + $0x50] ss:$12 sps:$4 sm:$0xff]   ;;  %v3724_v23 = vld [vmem:[#allocation6 + $0xa8] ss:$12 sps:$4 sm:$0xff]  }
  0x76   : > { %3254 = vmatprep.subr.bf16.mxu1 %v3725_v15  ;;  %v3729_v24 = vld [vmem:[#allocation6 + $0x68] ss:$12 sps:$4 sm:$0xff]   ;;  %v3730_v25 = vld [vmem:[#allocation6 + $0x80] ss:$12 sps:$4 sm:$0xff]   ;;  %v3731_v28 = vld [vmem:[#allocation6 + $0x98] ss:$12 sps:$4 sm:$0xff]  }
  0x77   : > { %3255 = vmatpush3.bf16.msra.mxu1 %v3725_v15  ;;  %v248_v26 = vld [vmem:[%s4374_s13 + $0x10] sm:$0xff]  ;;  %v250_v31 = vld [vmem:[%s4374_s13 + $0x20] sm:$0xff]  ;;  %v251_v32 = vld [vmem:[%s4374_s13 + $0x28] sm:$0xff]  ;;  %s4166_s23 = smov 64   ;;  %s4167_s30 = smov 32  }
  0x78   : > { %435 = vmatpush1.bf16.msra.mxu0 %v3709_v6  ;;  %3256 = vmatprep.subr.bf16.mxu1 %v3726_v16  ;;  %v263_v29 = vpack.c.bf16 %v249_v27, %v248_v26  ;;  %v3732_v30 = vld [vmem:[#allocation6 + $0xb0] ss:$12 sps:$4 sm:$0xff]   ;;  %v264_v33 = vpack.c.bf16 %v251_v32, %v250_v31  ;;  %v254_v37 = vld [vmem:[%s4374_s13 + $0x40] sm:$0xff]  ;;  %v255_v38 = vld [vmem:[%s4374_s13 + $0x48] sm:$0xff]  ;;  %s5776_s7 = scalar_lea.vmem [#allocation9], %s3018_s10  ;;  %s3093_s24 = sshll.u32 %s4217_s19, 11 }
  0x79   : > { %436 = vmatprep.subr.bf16.mxu0 %v3710_v7  ;;  %v252_v34 = vld [vmem:[%s4374_s13 + $0x30] sm:$0xff]  ;;  %v253_v35 = vld [vmem:[%s4374_s13 + $0x38] sm:$0xff]  ;;  %v266_v39 = vpack.c.bf16 %v255_v38, %v254_v37  ;;  %v258_v42 = vld [vmem:[%s4374_s13 + $0x60] sm:$0xff]  ;;  %s2917_s26 = sshll.u32 %s5776_s7, 4  ;;  %s5796_s29 = scalar_lea.hbm %s5849_s4, %s3093_s24  ;;  %s5798_s26 = int_to_ptr.vmem [resolvable:$true] %s2917_s26 }
  0x7a   : > { %v265_v36 = vpack.c.bf16 %v253_v35, %v252_v34  ;;  %v256_v40 = vld [vmem:[%s4374_s13 + $0x50] sm:$0xff]  ;;  %v257_v41 = vld [vmem:[%s4374_s13 + $0x58] sm:$0xff]  ;;  %v259_v43 = vld [vmem:[%s4374_s13 + $0x68] sm:$0xff]  ;;  %s2904_s19 = scalar_lea.sflag [#allocation5], %s4368_s9  ;;  %s4083_s5 = scalar_lea.vmem %s5798_s26, 2048 }
  0x7b   : > { %3257 = vmatpush3.bf16.msra.mxu1 %v3726_v16  ;;  %v267_v44 = vpack.c.bf16 %v257_v41, %v256_v40  ;;  %v268_v45 = vpack.c.bf16 %v259_v43, %v258_v42  ;;  %v260_v46 = vld [vmem:[%s4374_s13 + $0x70] sm:$0xff]  ;;  %v261_v47 = vld [vmem:[%s4374_s13 + $0x78] sm:$0xff]  ;;  %p4084_p11 = scmp.ne.s32.totalorder %s5798_s26, %s4083_s5  ;;  %p6066_p0 = scmp.ne.s32.totalorder %s5901_s20, 0 }
  0x7c   : > { %437 = vmatpush1.bf16.msra.mxu0 %v3712_v9  ;;  %3258 = vmatprep.subr.bf16.mxu1 %v3727_v19  ;;  %v269_v48 = vpack.c.bf16 %v261_v47, %v260_v46  ;;  %s4168_s8 = smov [#allocation9]  }
  0x7d   : > { %438 = vmatprep.subr.bf16.mxu0 %v3713_v11  ;;  %p4085_p1 = pnand %p4084_p11, %p6066_p0  ;;  %s4087_s10 = sshll.u32 %s4168_s8, 4  ;;  %s4088_s10 = int_to_ptr.vmem [resolvable:$false] %s4087_s10 }
  0x7e   : > { %s4089_s12 = scalar_lea.vmem %s4088_s10, 4096  ;;  %p4090_p5 = scmp.lt.s32.totalorder %s5798_s26, %s4088_s10 }
  0x7f   : > { %3259 = vmatpush3.bf16.msra.mxu1 %v3727_v19  ;;  %p4086_p3 = pneg %p4085_p1  ;;  %p4091_p9 = scmp.lt.s32.totalorder %s4089_s12, %s4083_s5 }
  0x80   : > { %439 = vmatpush1.bf16.msra.mxu0 %v3715_v13  ;;  %3260 = vmatprep.subr.bf16.mxu1 %v3728_v22 }
  0x81   : > { %440 = vmatprep.subr.bf16.mxu0 %v3716_v14  ;;  %p4092_p12 = por %p4091_p9, %p4090_p5 }
  0x83   : > { %3261 = vmatpush3.bf16.msra.mxu1 %v3728_v22  ;;  %p4093_p2 = pnand %p4092_p12, %p4086_p3 }
  0x84   : > { %441 = vmatpush1.bf16.msra.mxu0 %v3718_v17  ;;  %3262 = vmatprep.subr.bf16.mxu1 %v3729_v24 }
  0x85   : > { %442 = vmatprep.subr.bf16.mxu0 %v3719_v18 }
  0x87   : > { %3263 = vmatpush3.bf16.msra.mxu1 %v3729_v24 }
  0x88   : > { %443 = vmatpush1.bf16.msra.mxu0 %v3721_v20  ;;  %3264 = vmatprep.subr.bf16.mxu1 %v3730_v25 }
  0x89   : > { %444 = vmatprep.subr.bf16.mxu0 %v3722_v21 }
  0x8b   : > { %3265 = vmatpush3.bf16.msra.mxu1 %v3730_v25 }
  0x8c   : > { %445 = vmatpush1.bf16.msra.mxu0 %v3724_v23  ;;  %3266 = vmatprep.subr.bf16.mxu1 %v3731_v28 }
  0x8f   : > { %463 = vmatmul.mubr.bf16.vlgmr.msra.gmra.mrb[0].mxu0 %v262_v12  ;;  %3267 = vmatpush3.bf16.msra.mxu1 %v3731_v28 }
  0x90   : > { %472 = vmatprep.mubr.bf16.mxu0 %v4164_v0  ;;  %3268 = vmatprep.subr.bf16.mxu1 %v3732_v30 }
  0x93   : > { %3269 = vmatpush3.bf16.msra.mxu1 %v3732_v30 }
  0x96   : > { %3271 = vmatmul.mubr.bf16.vlgmr.msra.gmra.mrb[0].mxu1 %v263_v29 }
  0x97   : > { %473 = vmatmul.mubr.bf16.gmra.mrb[4].mxu0 %v263_v29  ;;  %3274 = vmatprep.mubr.bf16.mxu1 %v264_v33 }
  0x98   : > { %482 = vmatprep.mubr.bf16.mxu0 %v4164_v0 }
  0x9e   : > { %3275 = vmatmul.mubr.bf16.gmra.mrb[4].mxu1 %v265_v36 }
  0x9f   : > { %483 = vmatmul.mubr.bf16.gmra.mrb[8].mxu0 %v264_v33  ;;  %3278 = vmatprep.mubr.bf16.mxu1 %v266_v39 }
  0xa0   : > { %492 = vmatprep.mubr.bf16.mxu0 %v4164_v0 }
  0xa6   : > { %3279 = vmatmul.mubr.bf16.gmra.mrb[8].mxu1 %v267_v44 }
  0xa7   : > { %493 = vmatmul.mubr.bf16.gmra.mrb[12].mxu0 %v265_v36  ;;  %3282 = vmatprep.mubr.bf16.mxu1 %v268_v45 }
  0xa8   : > { %502 = vmatprep.mubr.bf16.mxu0 %v4164_v0 }
  0xae   : > { %3283 = vmatmul.mubr.bf16.gmra.mrb[12].mxu1 %v269_v48 }
  0xaf   : > { %503 = vmatmul.mubr.bf16.gmra.mrb[16].mxu0 %v266_v39 }
  0xb0   : > { %512 = vmatprep.mubr.bf16.mxu0 %v4164_v0 }
  0xb7   : > { %513 = vmatmul.mubr.bf16.gmra.mrb[20].mxu0 %v267_v44 }
  0xb8   : > { %522 = vmatprep.mubr.bf16.mxu0 %v4164_v0 }
  0xbf   : > { %523 = vmatmul.mubr.bf16.gmra.mrb[24].mxu0 %v268_v45 }
  0xc0   : > { %532 = vmatprep.mubr.bf16.mxu0 %v4164_v0 }
  0xc7   : > { %533 = vmatmul.mubr.bf16.gmra.mrb[28].mxu0 %v269_v48 }
 0x162   : > { %v464_v49 = vpop.f32.mrb[0].mxu0 }
 0x163   : > { %v466_v50 = vpop.f32.mrb[1].mxu0  ;;  %v640_v52 = vmul.f32 0.088388346, %v464_v49 }
 0x164   : > { %v468_v51 = vpop.f32.mrb[2].mxu0 }
 0x165   : > { %v641_v53 = vmul.f32 0.088388346, %v468_v51  ;;  %v470_v54 = vpop.f32.mrb[3].mxu0 }
 0x166   : > { %v4408_v55 = vpack.c.bf16 %v470_v54, %v466_v50 }
 0x167   : > { %v4410_v56 = vpack.c.bf16 %v641_v53, %v640_v52 }
 0x168   : > { %5906 = vst [vmem:[#allocation13_spill] sm:$0xff] %v4408_v55  ;;  %1174 = vrot.lane.b32.xlu0 %v4408_v55, %s4165_s21  ;;  %3590 = vmatprep.subr.msk.bf16.mxu0 %vm5895_vm0, %v4408_v55  ;;  %v741_v57 = vsel %vm5895_vm0, %v4408_v55, 0 }
 0x169   : > { %5907 = vst [vmem:[#allocation14_spill] sm:$0xff] %v4410_v56  ;;  %3287 = vmatpush3.bf16.xpose.msra.mxu0 %v741_v57  ;;  %3302 = vmatprep.mubr.msk.bf16.mxu0 %vm5895_vm0, %v4410_v56  ;;  %v3272_v4 = vpop.f32.mrb[0].mxu1 }
 0x16a   : > { %v474_v58 = vpop.f32.mrb[4].mxu0  ;;  %v577_v6 = vpop.f32.mrb[1].mxu1 }
 0x16b   : > { %v476_v59 = vpop.f32.mrb[5].mxu0  ;;  %v642_v61 = vmul.f32 0.088388346, %v474_v58  ;;  %v3273_v8 = vpop.f32.mrb[2].mxu1 }
 0x16c   : > { %v478_v60 = vpop.f32.mrb[6].mxu0  ;;  %v4430_v12 = vpack.c.bf16 %v3273_v8, %v3272_v4  ;;  %v580_v13 = vpop.f32.mrb[3].mxu1 }
 0x16d   : > { %v643_v62 = vmul.f32 0.088388346, %v478_v60  ;;  %v480_v63 = vpop.f32.mrb[7].mxu0  ;;  %v4434_v15 = vpack.c.bf16 %v580_v13, %v577_v6 }
 0x16e   : > { %v4420_v0 = vpack.c.bf16 %v480_v63, %v476_v59 }
 0x16f   : > { %v4422_v1 = vpack.c.bf16 %v643_v62, %v642_v61  ;;  %5909 = vst [vmem:[#allocation16_spill] sm:$0xff] %v4434_v15  ;;  %3318 = vmatprep.subr.bf16.mxu1 %v4434_v15 }
 0x170   : > { %5908 = vst [vmem:[#allocation15_spill] sm:$0xff] %v4420_v0  ;;  %1176 = vrot.lane.b32.xlu1 %v4420_v0, %s4165_s21  ;;  %3591 = vmatprep.subr.msk.bf16.mxu0 %vm5895_vm0, %v4420_v0  ;;  %v744_v2 = vsel %vm5895_vm0, %v4420_v0, 0 }
 0x171   : > { %3289 = vmatpush3.bf16.xpose.msra.mxu0 %v744_v2  ;;  %3319 = vmatpush3.bf16.msra.mxu1 %v4434_v15  ;;  %v3276_v19 = vpop.f32.mrb[4].mxu1 }
 0x172   : > { %v484_v3 = vpop.f32.mrb[8].mxu0  ;;  %v593_v21 = vpop.f32.mrb[5].mxu1  ;;  %3320 = vmatprep.subr.bf16.mxu1 %v4430_v12 }
 0x173   : > { %v486_v5 = vpop.f32.mrb[9].mxu0  ;;  %v644_v9 = vmul.f32 0.088388346, %v484_v3  ;;  %v3277_v23 = vpop.f32.mrb[6].mxu1 }
 0x174   : > { %v488_v7 = vpop.f32.mrb[10].mxu0  ;;  %v4447_v27 = vpack.c.bf16 %v3277_v23, %v3276_v19  ;;  %v596_v28 = vpop.f32.mrb[7].mxu1 }
 0x175   : > { %v645_v10 = vmul.f32 0.088388346, %v488_v7  ;;  %v490_v11 = vpop.f32.mrb[11].mxu0  ;;  %v4451_v30 = vpack.c.bf16 %v596_v28, %v593_v21  ;;  %3321 = vmatpush3.bf16.msra.mxu1 %v4430_v12 }
 0x176   : > { %v4432_v14 = vpack.c.bf16 %v490_v11, %v486_v5  ;;  %5911 = vst [vmem:[#allocation18_spill] sm:$0xff] %v4447_v27 }
 0x177   : > { %v4436_v16 = vpack.c.bf16 %v645_v10, %v644_v9  ;;  %5913 = vst [vmem:[#allocation20_spill] sm:$0xff] %v4451_v30  ;;  %3322 = vmatprep.subr.bf16.mxu1 %v4451_v30 }
 0x178   : > { %1178 = vrot.lane.b32.xlu0 %v4432_v14, %s4165_s21  ;;  %3592 = vmatprep.subr.msk.bf16.mxu0 %vm5895_vm0, %v4432_v14  ;;  %v747_v17 = vsel %vm5895_vm0, %v4432_v14, 0 }
 0x179   : > { %5910 = vst [vmem:[#allocation17_spill] sm:$0xff] %v4436_v16  ;;  %3291 = vmatpush3.bf16.xpose.msra.mxu0 %v747_v17  ;;  %3323 = vmatpush3.bf16.msra.mxu1 %v4451_v30  ;;  %v3280_v34 = vpop.f32.mrb[8].mxu1 }
 0x17a   : > { %v494_v18 = vpop.f32.mrb[12].mxu0  ;;  %v609_v36 = vpop.f32.mrb[9].mxu1  ;;  %3324 = vmatprep.subr.bf16.mxu1 %v4447_v27 }
 0x17b   : > { %v496_v20 = vpop.f32.mrb[13].mxu0  ;;  %v646_v24 = vmul.f32 0.088388346, %v494_v18  ;;  %v3281_v38 = vpop.f32.mrb[10].mxu1 }
 0x17c   : > { %v498_v22 = vpop.f32.mrb[14].mxu0  ;;  %v4463_v42 = vpack.c.bf16 %v3281_v38, %v3280_v34  ;;  %v612_v43 = vpop.f32.mrb[11].mxu1 }
 0x17d   : > { %v647_v25 = vmul.f32 0.088388346, %v498_v22  ;;  %v500_v26 = vpop.f32.mrb[15].mxu0  ;;  %v4467_v45 = vpack.c.bf16 %v612_v43, %v609_v36  ;;  %3325 = vmatpush3.bf16.msra.mxu1 %v4447_v27 }
 0x17e   : > { %v4449_v29 = vpack.c.bf16 %v500_v26, %v496_v20  ;;  %5914 = vst [vmem:[#allocation21_spill] sm:$0xff] %v4463_v42  ;;  %v680_v26 = vlaneseq }
 0x17f   : > { %v4454_v31 = vpack.c.bf16 %v647_v25, %v646_v24  ;;  %3326 = vmatprep.subr.bf16.mxu1 %v4467_v45 }
 0x180   : > { %5912 = vst [vmem:[#allocation19_spill] sm:$0xff] %v4449_v29  ;;  %3593 = vmatprep.subr.msk.bf16.mxu0 %vm5895_vm0, %v4449_v29  ;;  %v750_v32 = vsel %vm5895_vm0, %v4449_v29, 0  ;;  %v4530_v28 = vshrl.u32 %v680_v26, 7 }
 0x181   : > { %3293 = vmatpush3.bf16.xpose.msra.mxu0 %v750_v32  ;;  %3327 = vmatpush3.bf16.msra.mxu1 %v4467_v45  ;;  %v3284_v49 = vpop.f32.mrb[12].mxu1  ;;  %v4532_v32 = vand.u32 127, %v680_v26 }
 0x182   : > { %v504_v33 = vpop.f32.mrb[16].mxu0  ;;  %v625_v51 = vpop.f32.mrb[13].mxu1  ;;  %3328 = vmatprep.subr.bf16.mxu1 %v4463_v42  ;;  %v4540_v34 = vadd.s32 80, %v4530_v28  ;;  %v4548_v36 = vadd.s32 72, %v4530_v28  ;;  %v4558_v38 = vadd.s32 96, %v4530_v28  ;;  %v4580_v43 = vadd.s32 24, %v4530_v28 }
 0x183   : > { %v506_v35 = vpop.f32.mrb[17].mxu0  ;;  %v648_v39 = vmul.f32 0.088388346, %v504_v33  ;;  %v3285_v53 = vpop.f32.mrb[14].mxu1  ;;  %v4535_v33 = vadd.s32 40, %v4530_v28  ;;  %vm699_vm10 = vcmp.le.s32.totalorder %v4532_v32, %v4530_v28 }
 0x184   : > { %v508_v37 = vpop.f32.mrb[18].mxu0  ;;  %v4479_v59 = vpack.c.bf16 %v3285_v53, %v3284_v49  ;;  %v628_v60 = vpop.f32.mrb[15].mxu1  ;;  %vm709_vm2 = vcmp.le.s32.totalorder %v4532_v32, %v4540_v34  ;;  %vm708_vm4 = vcmp.le.s32.totalorder %v4532_v32, %v4548_v36  ;;  %vm711_vm6 = vcmp.le.s32.totalorder %v4532_v32, %v4558_v38 }
 0x185   : > { %v649_v40 = vmul.f32 0.088388346, %v508_v37  ;;  %v510_v41 = vpop.f32.mrb[19].mxu0  ;;  %v4483_v62 = vpack.c.bf16 %v628_v60, %v625_v51  ;;  %3329 = vmatpush3.bf16.msra.mxu1 %v4463_v42  ;;  %vm704_vm1 = vcmp.le.s32.totalorder %v4532_v32, %v4535_v33  ;;  %v4555_v37 = vadd.s32 112, %v4530_v28 }
 0x186   : > { %v4465_v44 = vpack.c.bf16 %v510_v41, %v506_v35  ;;  %5916 = vst [vmem:[#allocation23_spill] sm:$0xff] %v4479_v59  ;;  %v4545_v35 = vadd.s32 88, %v4530_v28  ;;  %v4575_v41 = vadd.s32 16, %v4530_v28  ;;  %vm5853_vm11 = vcmp.le.s32.totalorder %v4532_v32, %v4580_v43 }
 0x187   : > { %v4470_v46 = vpack.c.bf16 %v649_v40, %v648_v39  ;;  %5917 = vst [vmem:[#allocation24_spill] sm:$0xff] %v4483_v62  ;;  %3330 = vmatprep.subr.bf16.mxu1 %v4483_v62  ;;  %vm713_vm5 = vcmp.le.s32.totalorder %v4532_v32, %v4555_v37  ;;  %v4563_v39 = vadd.s32 120, %v4530_v28  ;;  %v4568_v40 = vadd.s32 104, %v4530_v28 }
 0x188   : > { %3594 = vmatprep.subr.msk.bf16.mxu0 %vm5895_vm0, %v4465_v44  ;;  %v753_v47 = vsel %vm5895_vm0, %v4465_v44, 0  ;;  %vm710_vm3 = vcmp.le.s32.totalorder %v4532_v32, %v4545_v35  ;;  %vm5871_vm9 = vcmp.le.s32.totalorder %v4532_v32, %v4575_v41 }
 0x189   : > { %5915 = vst [vmem:[#allocation22_spill] sm:$0xff] %v4470_v46  ;;  %3295 = vmatpush3.bf16.xpose.msra.mxu0 %v753_v47  ;;  %3331 = vmatpush3.bf16.msra.mxu1 %v4483_v62  ;;  %vm714_vm7 = vcmp.le.s32.totalorder %v4532_v32, %v4563_v39  ;;  %vm712_vm8 = vcmp.le.s32.totalorder %v4532_v32, %v4568_v40  ;;  %v4585_v47 = vadd.s32 8, %v4530_v28 }
 0x18a   : > { %v514_v48 = vpop.f32.mrb[20].mxu0  ;;  %3332 = vmatprep.subr.bf16.mxu1 %v4479_v59 }
 0x18b   : > { %v516_v50 = vpop.f32.mrb[21].mxu0  ;;  %v650_v54 = vmul.f32 0.088388346, %v514_v48  ;;  %vm700_vm12 = vcmp.le.s32.totalorder %v4532_v32, %v4585_v47 }
 0x18c   : > { %v518_v52 = vpop.f32.mrb[22].mxu0 }
 0x18d   : > { %v651_v57 = vmul.f32 0.088388346, %v518_v52  ;;  %v520_v58 = vpop.f32.mrb[23].mxu0  ;;  %3333 = vmatpush3.bf16.msra.mxu1 %v4479_v59 }
 0x18e   : > { %v4481_v61 = vpack.c.bf16 %v520_v58, %v516_v50  ;;  %v5998_v39 = vld [vmem:[#allocation24_spill] sm:$0xff] }
 0x18f   : > { %v4486_v63 = vpack.c.bf16 %v651_v57, %v650_v54 }
 0x190   : > { %3595 = vmatprep.subr.msk.bf16.mxu0 %vm5895_vm0, %v4481_v61  ;;  %v756_v2 = vsel %vm5895_vm0, %v4481_v61, 0 }
 0x191   : > { %3297 = vmatpush3.bf16.xpose.msra.mxu0 %v756_v2 }
 0x192   : > { %v524_v3 = vpop.f32.mrb[24].mxu0 }
 0x193   : > { %v526_v4 = vpop.f32.mrb[25].mxu0  ;;  %v652_v6 = vmul.f32 0.088388346, %v524_v3 }
 0x194   : > { %v528_v5 = vpop.f32.mrb[26].mxu0 }
 0x195   : > { %v653_v7 = vmul.f32 0.088388346, %v528_v5  ;;  %v530_v8 = vpop.f32.mrb[27].mxu0 }
 0x196   : > { %v4495_v9 = vpack.c.bf16 %v530_v8, %v526_v4 }
 0x197   : > { %v4498_v10 = vpack.c.bf16 %v653_v7, %v652_v6 }
 0x198   : > { %3596 = vmatprep.subr.msk.bf16.mxu0 %vm5895_vm0, %v4495_v9  ;;  %v759_v11 = vsel %vm5895_vm0, %v4495_v9, 0 }
 0x199   : > { %5918 = vst [vmem:[#allocation25_spill] sm:$0xff] %v4498_v10  ;;  %3299 = vmatpush3.bf16.xpose.msra.mxu0 %v759_v11 }
 0x19a   : > { %v534_v13 = vpop.f32.mrb[28].mxu0 }
 0x19b   : > { %v536_v17 = vpop.f32.mrb[29].mxu0  ;;  %v654_v19 = vmul.f32 0.088388346, %v534_v13 }
 0x19c   : > { %v538_v18 = vpop.f32.mrb[30].mxu0 }
 0x19d   : > { %v655_v20 = vmul.f32 0.088388346, %v538_v18  ;;  %v540_v21 = vpop.f32.mrb[31].mxu0  ;;  %v4620_v18 = vadd.s32 32, %v4530_v28 }
 0x19e   : > { %v4504_v22 = vpack.c.bf16 %v540_v21, %v536_v17  ;;  %v4633_v21 = vadd.s32 64, %v4530_v28 }
 0x19f   : > { %v4506_v23 = vpack.c.bf16 %v655_v20, %v654_v19  ;;  %v4623_v19 = vadd.s32 48, %v4530_v28  ;;  %vm703_vm13 = vcmp.le.s32.totalorder %v4532_v32, %v4620_v18  ;;  %v4628_v20 = vadd.s32 56, %v4530_v28 }
 0x1a0   : > { %3597 = vmatprep.subr.msk.bf16.mxu0 %vm5895_vm0, %v4504_v22  ;;  %v762_v24 = vsel %vm5895_vm0, %v4504_v22, 0 }
 0x1a1   : > { %3301 = vmatpush3.bf16.xpose.msra.mxu0 %v762_v24  ;;  %vm705_vm14 = vcmp.le.s32.totalorder %v4532_v32, %v4623_v19  ;;  %vm706_vm15 = vcmp.le.s32.totalorder %v4532_v32, %v4628_v20 }
 0x1a8   : > { %3303 = vmatmul.mubr.msk.bf16.vlgmr.msra.gmra.mrb[32].mxu0 %vm5895_vm0, %v4422_v1 }
 0x1a9   : > { %3306 = vmatprep.mubr.msk.bf16.mxu0 %vm5895_vm0, %v4436_v16 }
 0x1b0   : > { %3307 = vmatmul.mubr.msk.bf16.gmra.mrb[36].mxu0 %vm5895_vm0, %v4454_v31 }
 0x1b1   : > { %3310 = vmatprep.mubr.msk.bf16.mxu0 %vm5895_vm0, %v4470_v46 }
 0x1b8   : > { %3311 = vmatmul.mubr.msk.bf16.gmra.mrb[40].mxu0 %vm5895_vm0, %v4486_v63 }
 0x1b9   : > { %3314 = vmatprep.mubr.msk.bf16.mxu0 %vm5895_vm0, %v4498_v10 }
 0x1c0   : > { %3315 = vmatmul.mubr.msk.bf16.gmra.mrb[44].mxu0 %vm5895_vm0, %v4506_v23 }
 0x1da   : > { %v4526_v25 = vpop.permute.xlu0 %1174 }
 0x1db   : > { %3598 = vmatprep.subr.msk.bf16.mxu1 %vm5895_vm0, %v4526_v25 }
 0x27b   : > { %v3304_v48 = vpop.f32.mrb[32].mxu0 }
 0x27c   : > { %v798_v49 = vpop.f32.mrb[33].mxu0  ;;  %v4590_v50 = vsel %vm5871_vm9, %v3304_v48, -1e+30 }
 0x27d   : > { %881 = vmax.xlane.f32.xlu1 %v4590_v50  ;;  %v3305_v51 = vpop.f32.mrb[34].mxu0  ;;  %v4596_v52 = vsel %vm699_vm10, %v798_v49, -1e+30 }
 0x27e   : > { %877 = vmax.xlane.f32.xlu0 %v4596_v52  ;;  %v801_v53 = vpop.f32.mrb[35].mxu0  ;;  %v4606_v54 = vsel %vm5853_vm11, %v3305_v51, -1e+30  ;;  %vm707_vm11 = vcmp.le.s32.totalorder %v4532_v32, %v4633_v21 }
 0x27f   : > { %v4612_v57 = vsel %vm700_vm12, %v801_v53, -1e+30 }
 0x281   : > { %883 = vmax.xlane.f32.xlu1 %v4606_v54 }
 0x282   : > { %879 = vmax.xlane.f32.xlu0 %v4612_v57 }
 0x283   : > { %v3308_v58 = vpop.f32.mrb[36].mxu0 }
 0x284   : > { %v814_v60 = vpop.f32.mrb[37].mxu0  ;;  %v4644_v26 = vsel %vm705_vm14, %v3308_v58, -1e+30 }
 0x285   : > { %v3309_v2 = vpop.f32.mrb[38].mxu0  ;;  %v4638_v24 = vsel %vm703_vm13, %v814_v60, -1e+30 }
 0x286   : > { %v817_v3 = vpop.f32.mrb[39].mxu0  ;;  %v4654_v48 = vsel %vm706_vm15, %v3309_v2, -1e+30 }
 0x287   : > { %v4666_v51 = vsel %vm704_vm1, %v817_v3, -1e+30 }
 0x28b   : > { %v3312_v4 = vpop.f32.mrb[40].mxu0 }
 0x28c   : > { %v830_v5 = vpop.f32.mrb[41].mxu0  ;;  %v4678_v58 = vsel %vm709_vm2, %v3312_v4, -1e+30 }
 0x28d   : > { %v3313_v6 = vpop.f32.mrb[42].mxu0  ;;  %v4660_v49 = vsel %vm707_vm11, %v830_v5, -1e+30 }
 0x28e   : > { %v833_v7 = vpop.f32.mrb[43].mxu0  ;;  %v4690_v2 = vsel %vm710_vm3, %v3313_v6, -1e+30  ;;  %v1177_v6 = vpop.permute.xlu1 %1176 }
 0x28f   : > { %v4672_v53 = vsel %vm708_vm4, %v833_v7, -1e+30  ;;  %v1179_v7 = vpop.permute.xlu0 %1178 }
 0x292   : > { %1180 = vrot.lane.b32.xlu1 %v4449_v29, %s4165_s21 }
 0x293   : > { %v3316_v8 = vpop.f32.mrb[44].mxu0 }
 0x294   : > { %v846_v11 = vpop.f32.mrb[45].mxu0  ;;  %v4684_v60 = vsel %vm713_vm5, %v3316_v8, -1e+30 }
 0x295   : > { %v3317_v13 = vpop.f32.mrb[46].mxu0  ;;  %v4696_v3 = vsel %vm711_vm6, %v846_v11, -1e+30 }
 0x296   : > { %v849_v17 = vpop.f32.mrb[47].mxu0  ;;  %v4702_v4 = vsel %vm714_vm7, %v3317_v13, -1e+30 }
 0x297   : > { %v4708_v5 = vsel %vm712_vm8, %v849_v17, -1e+30 }
 0x298   : > { %1182 = vrot.lane.b32.xlu0 %v4465_v44, %s4165_s21 }
 0x2b6   : > { %885 = vmax.xlane.f32.xlu1 %v4638_v24 }
 0x2b7   : > { %889 = vmax.xlane.f32.xlu0 %v4644_v26 }
 0x2ba   : > { %891 = vmax.xlane.f32.xlu1 %v4654_v48 }
 0x2bb   : > { %893 = vmax.xlane.f32.xlu0 %v4660_v49 }
 0x2be   : > { %887 = vmax.xlane.f32.xlu1 %v4666_v51 }
 0x2bf   : > { %895 = vmax.xlane.f32.xlu0 %v4672_v53 }
 0x2c2   : > { %897 = vmax.xlane.f32.xlu1 %v4678_v58 }
 0x2c3   : > { %905 = vmax.xlane.f32.xlu0 %v4684_v60 }
 0x2c6   : > { %899 = vmax.xlane.f32.xlu1 %v4690_v2 }
 0x2ca   : > { %901 = vmax.xlane.f32.xlu1 %v4696_v3 }
 0x2ce   : > { %907 = vmax.xlane.f32.xlu1 %v4702_v4 }
 0x2d2   : > { %903 = vmax.xlane.f32.xlu1 %v4708_v5 }
 0x2d9   : > { %1186 = vrot.lane.b32.xlu0 %v4495_v9, %s4165_s21 }
 0x2dd   : > { %1188 = vrot.lane.b32.xlu0 %v4504_v22, %s4165_s21 }
 0x2e1   : > { %1150 = vrot.lane.b32.xlu0 %v4410_v56, %s4165_s21 }
 0x2e3   : > { %1184 = vrot.lane.b32.xlu1 %v4481_v61, %s4165_s21 }
 0x2e5   : > { %1154 = vrot.lane.b32.xlu0 %v4436_v16, %s4165_s21 }
 0x2e7   : > { %1152 = vrot.lane.b32.xlu1 %v4422_v1, %s4165_s21 }
 0x2e9   : > { %1158 = vrot.lane.b32.xlu0 %v4470_v46, %s4165_s21 }
 0x2eb   : > { %1156 = vrot.lane.b32.xlu1 %v4454_v31, %s4165_s21 }
 0x2ed   : > { %1162 = vrot.lane.b32.xlu0 %v4498_v10, %s4165_s21 }
 0x2ef   : > { %1160 = vrot.lane.b32.xlu1 %v4486_v63, %s4165_s21 }
 0x2f1   : > { %1479 = vrot.lane.b32.xlu0 %v4434_v15, %s4165_s21 }
 0x2f3   : > { %1164 = vrot.lane.b32.xlu1 %v4506_v23, %s4165_s21 }
 0x2f5   : > { %1483 = vrot.lane.b32.xlu0 %v4451_v30, %s4165_s21 }
 0x2f7   : > { %1481 = vrot.lane.b32.xlu1 %v4430_v12, %s4165_s21 }
 0x2f9   : > { %1491 = vrot.lane.b32.xlu0 %v4483_v62, %s4165_s21 }
 0x2fb   : > { %1485 = vrot.lane.b32.xlu1 %v4447_v27, %s4165_s21 }
 0x2fd   : > { %1697 = vrot.lane.b32.xlu0 %v4408_v55, %s4166_s23 }
 0x2ff   : > { %1487 = vrot.lane.b32.xlu1 %v4467_v45, %s4165_s21 }
 0x301   : > { %1699 = vrot.lane.b32.xlu0 %v4420_v0, %s4166_s23 }
 0x303   : > { %1489 = vrot.lane.b32.xlu1 %v4463_v42, %s4165_s21 }
 0x305   : > { %1703 = vrot.lane.b32.xlu0 %v4449_v29, %s4166_s23 }
 0x307   : > { %1493 = vrot.lane.b32.xlu1 %v4479_v59, %s4165_s21 }
 0x30a   : > { %v882_v8 = vpop.xlane.xlu1 %881 }
 0x30b   : > { %v878_v11 = vpop.xlane.xlu0 %877  ;;  %1701 = vrot.lane.b32.xlu1 %v4432_v14, %s4166_s23  ;;  %v911_v17 = vsub.f32 %v4590_v50, %v882_v8 }
 0x30c   : > { %v909_v13 = vsub.f32 %v4596_v52, %v878_v11 }
 0x30d   : > { %v929_v15 = vmul.f32 1.442695, %v911_v17 }
 0x30e   : > { %v925_v0 = vmul.f32 1.442695, %v909_v13  ;;  %v884_v55 = vpop.xlane.xlu1 %883 }
 0x30f   : > { %v912_v62 = vsub.f32 %v4606_v54, %v884_v55  ;;  %v880_v30 = vpop.xlane.xlu0 %879 }
 0x310   : > { %v910_v29 = vsub.f32 %v4612_v57, %v880_v30  ;;  %3741 = vpow2.f32 %v925_v0  ;;  %v1215_v0 = vsel %vm5895_vm0, %v4526_v25, 0 }
 0x311   : > { %v931_v10 = vmul.f32 1.442695, %v912_v62 }
 0x312   : > { %v927_v46 = vmul.f32 1.442695, %v910_v29  ;;  %v1221_v29 = vsel %vm5895_vm0, %v1179_v7, 0 }
 0x313   : > { %3743 = vpow2.f32 %v931_v10  ;;  %v1183_v10 = vpop.permute.xlu0 %1182 }
 0x314   : > { %3745 = vpow2.f32 %v927_v46  ;;  %v1181_v46 = vpop.permute.xlu1 %1180  ;;  %v1227_v25 = vsel %vm5895_vm0, %v1183_v10, 0 }
 0x315   : > { %3747 = vpow2.f32 %v929_v15  ;;  %v1218_v15 = vsel %vm5895_vm0, %v1177_v6, 0  ;;  %v1224_v62 = vsel %vm5895_vm0, %v1181_v46, 0 }
 0x31a   : > { %v4761_v16 = vpop.eup %3741 }
 0x31b   : > { %5919 = vst [vmem:[#allocation26_spill] sm:$0xff] %v4761_v16 }
 0x31d   : > { %v4763_v56 = vpop.eup %3743 }
 0x31e   : > { %5920 = vst [vmem:[#allocation27_spill] sm:$0xff] %v4763_v56  ;;  %v4765_v52 = vpop.eup %3745 }
 0x31f   : > { %5921 = vst [vmem:[#allocation28_spill] sm:$0xff] %v4765_v52  ;;  %v4767_v50 = vpop.eup %3747  ;;  %v989_v55 = vpack.c.bf16 %v4765_v52, %v4761_v16 }
 0x320   : > { %5922 = vst [vmem:[#allocation29_spill] sm:$0xff] %v4767_v50  ;;  %v990_v30 = vpack.c.bf16 %v4763_v56, %v4767_v50 }
 0x321   : > { %3334 = vmatprep.mubr.bf16.mxu1 %v989_v55 }
 0x322   : > { %3335 = vmatmul.mubr.bf16.vlgmr.msra.gmra.mrb[16].mxu1 %v990_v30 }
 0x323   : > { %3351 = vmatpush3.bf16.xpose.msra.mxu1 %v1215_v0 }
 0x324   : > { %3599 = vmatprep.subr.msk.bf16.mxu1 %vm5895_vm0, %v1177_v6 }
 0x32b   : > { %3353 = vmatpush3.bf16.xpose.msra.mxu1 %v1218_v15 }
 0x32c   : > { %3600 = vmatprep.subr.msk.bf16.mxu1 %vm5895_vm0, %v1179_v7 }
 0x333   : > { %3355 = vmatpush3.bf16.xpose.msra.mxu1 %v1221_v29 }
 0x334   : > { %3601 = vmatprep.subr.msk.bf16.mxu1 %vm5895_vm0, %v1181_v46 }
 0x33b   : > { %3357 = vmatpush3.bf16.xpose.msra.mxu1 %v1224_v62 }
 0x33c   : > { %3602 = vmatprep.subr.msk.bf16.mxu1 %vm5895_vm0, %v1183_v10 }
 0x343   : > { %3359 = vmatpush3.bf16.xpose.msra.mxu1 %v1227_v25  ;;  %v886_v54 = vpop.xlane.xlu1 %885 }
 0x344   : > { %v913_v57 = vsub.f32 %v4638_v24, %v886_v54  ;;  %v890_v6 = vpop.xlane.xlu0 %889 }
 0x345   : > { %v915_v8 = vsub.f32 %v4644_v26, %v890_v6 }
 0x346   : > { %v933_v11 = vmul.f32 1.442695, %v913_v57 }
 0x347   : > { %v892_v7 = vpop.xlane.xlu1 %891  ;;  %v937_v55 = vmul.f32 1.442695, %v915_v8 }
 0x348   : > { %v916_v13 = vsub.f32 %v4654_v48, %v892_v7  ;;  %v894_v17 = vpop.xlane.xlu0 %893  ;;  %3749 = vpow2.f32 %v933_v11 }
 0x349   : > { %v917_v30 = vsub.f32 %v4660_v49, %v894_v17  ;;  %3751 = vpow2.f32 %v937_v55 }
 0x34a   : > { %v939_v0 = vmul.f32 1.442695, %v916_v13 }
 0x34b   : > { %v941_v15 = vmul.f32 1.442695, %v917_v30  ;;  %v888_v29 = vpop.xlane.xlu1 %887 }
 0x34c   : > { %v914_v46 = vsub.f32 %v4666_v51, %v888_v29  ;;  %v896_v62 = vpop.xlane.xlu0 %895  ;;  %3753 = vpow2.f32 %v939_v0 }
 0x34d   : > { %v918_v24 = vsub.f32 %v4672_v53, %v896_v62  ;;  %3755 = vpow2.f32 %v941_v15 }
 0x34e   : > { %v935_v26 = vmul.f32 1.442695, %v914_v46 }
 0x34f   : > { %v943_v10 = vmul.f32 1.442695, %v918_v24  ;;  %v898_v25 = vpop.xlane.xlu1 %897 }
 0x350   : > { %3757 = vpow2.f32 %v935_v26  ;;  %v919_v48 = vsub.f32 %v4678_v58, %v898_v25  ;;  %v906_v54 = vpop.xlane.xlu0 %905 }
 0x351   : > { %3759 = vpow2.f32 %v943_v10  ;;  %v923_v26 = vsub.f32 %v4684_v60, %v906_v54 }
 0x352   : > { %v945_v49 = vmul.f32 1.442695, %v919_v48  ;;  %v4791_v51 = vpop.eup %3749 }
 0x353   : > { %v900_v57 = vpop.xlane.xlu1 %899  ;;  %5923 = vst [vmem:[#allocation30_spill] sm:$0xff] %v4791_v51  ;;  %v4793_v11 = vpop.eup %3751 }
 0x354   : > { %v920_v6 = vsub.f32 %v4690_v2, %v900_v57  ;;  %v1187_v8 = vpop.permute.xlu0 %1186  ;;  %5924 = vst [vmem:[#allocation31_spill] sm:$0xff] %v4793_v11  ;;  %3761 = vpow2.f32 %v945_v49 }
 0x356   : > { %v947_v7 = vmul.f32 1.442695, %v920_v6  ;;  %v4795_v13 = vpop.eup %3753 }
 0x357   : > { %v902_v53 = vpop.xlane.xlu1 %901  ;;  %5925 = vst [vmem:[#allocation32_spill] sm:$0xff] %v4795_v13  ;;  %v4797_v55 = vpop.eup %3755  ;;  %v992_v62 = vpack.c.bf16 %v4795_v13, %v4793_v11 }
 0x358   : > { %3763 = vpow2.f32 %v947_v7  ;;  %v1189_v17 = vpop.permute.xlu0 %1188  ;;  %5926 = vst [vmem:[#allocation33_spill] sm:$0xff] %v4797_v55  ;;  %v921_v30 = vsub.f32 %v4696_v3, %v902_v53 }
 0x35a   : > { %v4799_v58 = vpop.eup %3757  ;;  %v949_v10 = vmul.f32 1.442695, %v921_v30 }
 0x35b   : > { %5927 = vst [vmem:[#allocation34_spill] sm:$0xff] %v4799_v58  ;;  %v4802_v0 = vpop.eup %3759  ;;  %v908_v2 = vpop.xlane.xlu1 %907  ;;  %v991_v15 = vpack.c.bf16 %v4799_v58, %v4791_v51  ;;  %v5955_v51 = vld [vmem:[#allocation25_spill] sm:$0xff] }
 0x35c   : > { %5928 = vst [vmem:[#allocation35_spill] sm:$0xff] %v4802_v0  ;;  %v924_v29 = vsub.f32 %v4702_v4, %v908_v2  ;;  %v1151_v46 = vpop.permute.xlu0 %1150  ;;  %v993_v24 = vpack.c.bf16 %v4802_v0, %v4797_v55  ;;  %v953_v4 = vmul.f32 1.442695, %v923_v26  ;;  %3765 = vpow2.f32 %v949_v10  ;;  %v5959_v58 = vld [vmem:[#allocation13_spill] sm:$0xff]  ;;  %v5960_v0 = vld [vmem:[#allocation15_spill] sm:$0xff] }
 0x35d   : > { %3338 = vmatprep.mubr.bf16.mxu1 %v991_v15 }
 0x35e   : > { %3339 = vmatmul.mubr.bf16.gmra.mrb[20].mxu1 %v992_v62  ;;  %v955_v3 = vmul.f32 1.442695, %v924_v29  ;;  %v4813_v57 = vpop.eup %3761 }
 0x35f   : > { %3342 = vmatprep.mubr.bf16.mxu1 %v993_v24  ;;  %v904_v25 = vpop.xlane.xlu1 %903  ;;  %5929 = vst [vmem:[#allocation36_spill] sm:$0xff] %v4813_v57  ;;  %v1233_v24 = vsel %vm5895_vm0, %v1187_v8, 0  ;;  %v6001_v37 = vld [vmem:[#allocation33_spill] sm:$0xff] }
 0x360   : > { %v922_v48 = vsub.f32 %v4708_v5, %v904_v25  ;;  %v1155_v49 = vpop.permute.xlu0 %1154  ;;  %3767 = vpow2.f32 %v955_v3 }
 0x362   : > { %v4815_v6 = vpop.eup %3763  ;;  %v951_v7 = vmul.f32 1.442695, %v922_v48 }
 0x363   : > { %5930 = vst [vmem:[#allocation37_spill] sm:$0xff] %v4815_v6  ;;  %v1185_v53 = vpop.permute.xlu1 %1184  ;;  %v994_v60 = vpack.c.bf16 %v4815_v6, %v4813_v57  ;;  %v5961_v57 = vld [vmem:[#allocation19_spill] sm:$0xff] }
 0x364   : > { %3769 = vpow2.f32 %v951_v7  ;;  %v1159_v54 = vpop.permute.xlu0 %1158  ;;  %3603 = vmatprep.subr.msk.bf16.mxu1 %vm5895_vm0, %v1185_v53  ;;  %v1230_v30 = vsel %vm5895_vm0, %v1185_v53, 0  ;;  %v1236_v7 = vsel %vm5895_vm0, %v1189_v17, 0 }
 0x365   : > { %3771 = vpow2.f32 %v953_v4  ;;  %3361 = vmatpush3.bf16.xpose.msra.mxu1 %v1230_v30 }
 0x366   : > { %3343 = vmatmul.mubr.bf16.gmra.mrb[24].mxu1 %v994_v60  ;;  %3604 = vmatprep.subr.msk.bf16.mxu1 %vm5895_vm0, %v1187_v8  ;;  %v4822_v29 = vpop.eup %3765 }
 0x367   : > { %v1153_v5 = vpop.permute.xlu1 %1152  ;;  %5931 = vst [vmem:[#allocation38_spill] sm:$0xff] %v4822_v29 }
 0x368   : > { %v1163_v2 = vpop.permute.xlu0 %1162 }
 0x36a   : > { %v4825_v26 = vpop.eup %3767 }
 0x36b   : > { %v1157_v15 = vpop.permute.xlu1 %1156  ;;  %5932 = vst [vmem:[#allocation39_spill] sm:$0xff] %v4825_v26 }
 0x36c   : > { %v1480_v62 = vpop.permute.xlu0 %1479 }
 0x36d   : > { %3363 = vmatpush3.bf16.xpose.msra.mxu1 %v1233_v24  ;;  %3382 = vmatprep.subr.bf16.mxu0 %v1480_v62 }
 0x36e   : > { %v4827_v10 = vpop.eup %3769  ;;  %3605 = vmatprep.subr.msk.bf16.mxu1 %vm5895_vm0, %v1189_v17  ;;  %3383 = vmatpush3.bf16.msra.mxu0 %v1480_v62 }
 0x36f   : > { %5933 = vst [vmem:[#allocation40_spill] sm:$0xff] %v4827_v10  ;;  %v4830_v3 = vpop.eup %3771  ;;  %v1161_v25 = vpop.permute.xlu1 %1160  ;;  %v995_v48 = vpack.c.bf16 %v4827_v10, %v4822_v29  ;;  %v5958_v10 = vld [vmem:[#allocation24_spill] sm:$0xff] }
 0x370   : > { %5934 = vst [vmem:[#allocation41_spill] sm:$0xff] %v4830_v3  ;;  %v996_v4 = vpack.c.bf16 %v4825_v26, %v4830_v3  ;;  %v1484_v60 = vpop.permute.xlu0 %1483  ;;  %v5957_v26 = vld [vmem:[#allocation20_spill] sm:$0xff] }
 0x371   : > { %3346 = vmatprep.mubr.bf16.mxu1 %v995_v48 }
 0x372   : > { %3347 = vmatmul.mubr.bf16.gmra.mrb[28].mxu1 %v996_v4 }
 0x373   : > { %3366 = vmatprep.mubr.msk.bf16.mxu1 %vm5895_vm0, %v1151_v46  ;;  %v1165_v8 = vpop.permute.xlu1 %1164 }
 0x374   : > { %v1492_v17 = vpop.permute.xlu0 %1491 }
 0x375   : > { %3365 = vmatpush3.bf16.xpose.msra.mxu1 %v1236_v7 }
 0x377   : > { %v1482_v53 = vpop.permute.xlu1 %1481 }
 0x378   : > { %3384 = vmatprep.subr.bf16.mxu0 %v1482_v53 }
 0x379   : > { %3385 = vmatpush3.bf16.msra.mxu0 %v1482_v53 }
 0x37a   : > { %3386 = vmatprep.subr.bf16.mxu0 %v1484_v60 }
 0x37b   : > { %v1486_v30 = vpop.permute.xlu1 %1485 }
 0x37c   : > { %3367 = vmatmul.mubr.msk.bf16.vlgmr.msra.gmra.mrb[32].mxu1 %vm5895_vm0, %v1153_v5 }
 0x37d   : > { %3370 = vmatprep.mubr.msk.bf16.mxu1 %vm5895_vm0, %v1155_v49  ;;  %3387 = vmatpush3.bf16.msra.mxu0 %v1484_v60  ;;  %v4844_v49 = vpop.permute.xlu0 %1697 }
 0x37e   : > { %3388 = vmatprep.subr.bf16.mxu0 %v1486_v30 }
 0x37f   : > { %v1488_v62 = vpop.permute.xlu1 %1487 }
 0x381   : > { %3389 = vmatpush3.bf16.msra.mxu0 %v1486_v30  ;;  %v5017_v13 = vpop.permute.xlu0 %1699 }
 0x382   : > { %3390 = vmatprep.subr.bf16.mxu0 %v1488_v62 }
 0x383   : > { %v1490_v46 = vpop.permute.xlu1 %1489 }
 0x384   : > { %3371 = vmatmul.mubr.msk.bf16.gmra.mrb[36].mxu1 %vm5895_vm0, %v1157_v15 }
 0x385   : > { %3374 = vmatprep.mubr.msk.bf16.mxu1 %vm5895_vm0, %v1159_v54  ;;  %3391 = vmatpush3.bf16.msra.mxu0 %v1488_v62  ;;  %v5023_v6 = vpop.permute.xlu0 %1703 }
 0x386   : > { %3392 = vmatprep.subr.bf16.mxu0 %v1490_v46 }
 0x387   : > { %v1494_v5 = vpop.permute.xlu1 %1493 }
 0x389   : > { %3393 = vmatpush3.bf16.msra.mxu0 %v1490_v46 }
 0x38a   : > { %3394 = vmatprep.subr.bf16.mxu0 %v1492_v17 }
 0x38b   : > { %v5025_v56 = vpop.permute.xlu1 %1701 }
 0x38c   : > { %3375 = vmatmul.mubr.msk.bf16.gmra.mrb[40].mxu1 %vm5895_vm0, %v1161_v25 }
 0x38d   : > { %3378 = vmatprep.mubr.msk.bf16.mxu1 %vm5895_vm0, %v1163_v2  ;;  %3395 = vmatpush3.bf16.msra.mxu0 %v1492_v17 }
 0x38e   : > { %3396 = vmatprep.subr.bf16.mxu0 %v1494_v5 }
 0x391   : > { %3397 = vmatpush3.bf16.msra.mxu0 %v1494_v5 }
 0x392   : > { %3606 = vmatprep.subr.msk.bf16.mxu0 %vm5895_vm0, %v4844_v49 }
 0x394   : > { %3379 = vmatmul.mubr.msk.bf16.gmra.mrb[44].mxu1 %vm5895_vm0, %v1165_v8 }
 0x3f5   : > { %v4849_v54 = vpop.f32.mrb[16].mxu1 }
 0x3f6   : > { %5935 = vst [vmem:[#allocation42_spill] sm:$0xff] %v4849_v54  ;;  %v4851_v15 = vpop.f32.mrb[17].mxu1 }
 0x3f7   : > { %5936 = vst [vmem:[#allocation43_spill] sm:$0xff] %v4851_v15  ;;  %v4853_v24 = vpop.f32.mrb[18].mxu1 }
 0x3f8   : > { %5937 = vst [vmem:[#allocation44_spill] sm:$0xff] %v4853_v24  ;;  %v4855_v25 = vpop.f32.mrb[19].mxu1 }
 0x3f9   : > { %5938 = vst [vmem:[#allocation45_spill] sm:$0xff] %v4855_v25 }
 0x431   : > { %v4857_v48 = vpop.f32.mrb[20].mxu1 }
 0x432   : > { %5939 = vst [vmem:[#allocation46_spill] sm:$0xff] %v4857_v48  ;;  %v4859_v2 = vpop.f32.mrb[21].mxu1 }
 0x433   : > { %5940 = vst [vmem:[#allocation47_spill] sm:$0xff] %v4859_v2  ;;  %v4861_v4 = vpop.f32.mrb[22].mxu1 }
 0x434   : > { %5941 = vst [vmem:[#allocation48_spill] sm:$0xff] %v4861_v4  ;;  %v4863_v7 = vpop.f32.mrb[23].mxu1 }
 0x435   : > { %5942 = vst [vmem:[#allocation49_spill] sm:$0xff] %v4863_v7 }
 0x439   : > { %v4865_v53 = vpop.f32.mrb[24].mxu1 }
 0x43a   : > { %5943 = vst [vmem:[#allocation50_spill] sm:$0xff] %v4865_v53  ;;  %v4867_v60 = vpop.f32.mrb[25].mxu1 }
 0x43b   : > { %5944 = vst [vmem:[#allocation51_spill] sm:$0xff] %v4867_v60  ;;  %v4869_v8 = vpop.f32.mrb[26].mxu1 }
 0x43c   : > { %5945 = vst [vmem:[#allocation52_spill] sm:$0xff] %v4869_v8  ;;  %v4871_v30 = vpop.f32.mrb[27].mxu1 }
 0x43d   : > { %5946 = vst [vmem:[#allocation53_spill] sm:$0xff] %v4871_v30 }
 0x445   : > { %v4873_v62 = vpop.f32.mrb[28].mxu1 }
 0x446   : > { %5947 = vst [vmem:[#allocation54_spill] sm:$0xff] %v4873_v62  ;;  %v4875_v46 = vpop.f32.mrb[29].mxu1 }
 0x447   : > { %5948 = vst [vmem:[#allocation55_spill] sm:$0xff] %v4875_v46  ;;  %v4877_v17 = vpop.f32.mrb[30].mxu1 }
 0x448   : > { %5949 = vst [vmem:[#allocation56_spill] sm:$0xff] %v4877_v17  ;;  %v4879_v5 = vpop.f32.mrb[31].mxu1 }
 0x449   : > { %5950 = vst [vmem:[#allocation57_spill] sm:$0xff] %v4879_v5 }
 0x44f   : > { %v3368_v48 = vpop.f32.mrb[32].mxu1 }
 0x450   : > { %v1272_v4 = vpop.f32.mrb[33].mxu1  ;;  %v4884_v2 = vsel %vm5871_vm9, %v3368_v48, -1e+30  ;;  %vm5951_vm9 = vcmp.le.s32.totalorder %v4532_v32, %v4580_v43 }
 0x451   : > { %1355 = vmax.xlane.f32.xlu0 %v4884_v2  ;;  %v3369_v7 = vpop.f32.mrb[34].mxu1  ;;  %v4896_v17 = vsel %vm699_vm10, %v1272_v4, -1e+30 }
 0x452   : > { %v1275_v8 = vpop.f32.mrb[35].mxu1  ;;  %v4902_v5 = vsel %vm5951_vm9, %v3369_v7, -1e+30  ;;  %vm5982_vm9 = vcmp.le.s32.totalorder %v4532_v32, %v4575_v41 }
 0x453   : > { %v4890_v62 = vsel %vm700_vm12, %v1275_v8, -1e+30 }
 0x454   : > { %1353 = vmax.xlane.f32.xlu1 %v4890_v62 }
 0x455   : > { %1351 = vmax.xlane.f32.xlu0 %v4896_v17 }
 0x457   : > { %v3372_v48 = vpop.f32.mrb[36].mxu1 }
 0x458   : > { %v1288_v46 = vpop.f32.mrb[37].mxu1  ;;  %v4907_v8 = vsel %vm705_vm14, %v3372_v48, -1e+30 }
 0x459   : > { %1357 = vmax.xlane.f32.xlu0 %v4902_v5  ;;  %1363 = vmax.xlane.f32.xlu1 %v4907_v8  ;;  %v3373_v4 = vpop.f32.mrb[38].mxu1  ;;  %v4919_v7 = vsel %vm703_vm13, %v1288_v46, -1e+30 }
 0x45a   : > { %v1291_v53 = vpop.f32.mrb[39].mxu1  ;;  %v4926_v30 = vsel %vm706_vm15, %v3373_v4, -1e+30 }
 0x45b   : > { %v4914_v24 = vsel %vm704_vm1, %v1291_v53, -1e+30 }
 0x45d   : > { %1359 = vmax.xlane.f32.xlu1 %v4919_v7  ;;  %1361 = vmax.xlane.f32.xlu0 %v4914_v24 }
 0x45f   : > { %v3376_v48 = vpop.f32.mrb[40].mxu1 }
 0x460   : > { %v1304_v54 = vpop.f32.mrb[41].mxu1  ;;  %v4931_v53 = vsel %vm709_vm2, %v3376_v48, -1e+30 }
 0x461   : > { %1365 = vmax.xlane.f32.xlu1 %v4926_v30  ;;  %1371 = vmax.xlane.f32.xlu0 %v4931_v53  ;;  %v3377_v46 = vpop.f32.mrb[42].mxu1  ;;  %v4938_v25 = vsel %vm707_vm11, %v1304_v54, -1e+30 }
 0x462   : > { %v1307_v60 = vpop.f32.mrb[43].mxu1  ;;  %v4944_v48 = vsel %vm710_vm3, %v3377_v46, -1e+30 }
 0x463   : > { %v4956_v29 = vsel %vm708_vm4, %v1307_v60, -1e+30  ;;  %v5952_v60 = vld [vmem:[#allocation14_spill] sm:$0xff] }
 0x465   : > { %1367 = vmax.xlane.f32.xlu1 %v4938_v25 }
 0x467   : > { %v3380_v4 = vpop.f32.mrb[44].mxu1 }
 0x468   : > { %v1320_v15 = vpop.f32.mrb[45].mxu1  ;;  %v4962_v46 = vsel %vm713_vm5, %v3380_v4, -1e+30  ;;  %v5953_v4 = vld [vmem:[#allocation17_spill] sm:$0xff] }
 0x469   : > { %1373 = vmax.xlane.f32.xlu1 %v4944_v48  ;;  %v3381_v3 = vpop.f32.mrb[46].mxu1  ;;  %v4950_v11 = vsel %vm711_vm6, %v1320_v15, -1e+30 }
 0x46a   : > { %1375 = vmax.xlane.f32.xlu0 %v4950_v11  ;;  %v1323_v54 = vpop.f32.mrb[47].mxu1  ;;  %v4968_v15 = vsel %vm714_vm7, %v3381_v3, -1e+30 }
 0x46b   : > { %v4990_v3 = vsel %vm712_vm8, %v1323_v54, -1e+30  ;;  %v5954_v54 = vld [vmem:[#allocation22_spill] sm:$0xff] }
 0x46d   : > { %1369 = vmax.xlane.f32.xlu1 %v4956_v29 }
 0x471   : > { %1379 = vmax.xlane.f32.xlu1 %v4962_v46 }
 0x475   : > { %1381 = vmax.xlane.f32.xlu1 %v4968_v15 }
 0x480   : > { %1707 = vrot.lane.b32.xlu0 %v4481_v61, %s4166_s23 }
 0x486   : > { %1705 = vrot.lane.b32.xlu1 %v4465_v44, %s4166_s23 }
 0x48a   : > { %1683 = vrot.lane.b32.xlu1 %v4422_v1, %s4166_s23 }
 0x48e   : > { %1687 = vrot.lane.b32.xlu1 %v4454_v31, %s4166_s23 }
 0x492   : > { %1691 = vrot.lane.b32.xlu1 %v4486_v63, %s4166_s23 }
 0x496   : > { %1695 = vrot.lane.b32.xlu1 %v4506_v23, %s4166_s23 }
 0x49a   : > { %1996 = vrot.lane.b32.xlu1 %v4430_v12, %s4166_s23 }
 0x49e   : > { %2000 = vrot.lane.b32.xlu1 %v4447_v27, %s4166_s23 }
 0x49f   : > { %1377 = vmax.xlane.f32.xlu0 %v4990_v3 }
 0x4a2   : > { %2002 = vrot.lane.b32.xlu1 %v4467_v45, %s4166_s23 }
 0x4a6   : > { %2004 = vrot.lane.b32.xlu1 %v4463_v42, %s4166_s23 }
 0x4aa   : > { %2008 = vrot.lane.b32.xlu1 %v4479_v59, %s4166_s23 }
 0x4ae   : > { %2216 = vrot.lane.b32.xlu1 %v4432_v14, %s4167_s30  ;;  %v5956_v14 = vld [vmem:[#allocation16_spill] sm:$0xff] }
 0x4b5   : > { %1709 = vrot.lane.b32.xlu0 %v4495_v9, %s4166_s23 }
 0x4b9   : > { %1711 = vrot.lane.b32.xlu0 %v4504_v22, %s4166_s23 }
 0x4bd   : > { %1681 = vrot.lane.b32.xlu0 %v5952_v60, %s4166_s23 }
 0x4c1   : > { %1685 = vrot.lane.b32.xlu0 %v5953_v4, %s4166_s23 }
 0x4c5   : > { %1689 = vrot.lane.b32.xlu0 %v5954_v54, %s4166_s23 }
 0x4c9   : > { %1693 = vrot.lane.b32.xlu0 %v5955_v51, %s4166_s23 }
 0x4cd   : > { %1994 = vrot.lane.b32.xlu0 %v5956_v14, %s4166_s23 }
 0x4d1   : > { %1998 = vrot.lane.b32.xlu0 %v5957_v26, %s4166_s23 }
 0x4d5   : > { %2006 = vrot.lane.b32.xlu0 %v5958_v10, %s4166_s23 }
 0x4d9   : > { %2212 = vrot.lane.b32.xlu0 %v5959_v58, %s4167_s30 }
 0x4dd   : > { %2214 = vrot.lane.b32.xlu0 %v5960_v0, %s4167_s30 }
 0x4de   : > { %v1356_v52 = vpop.xlane.xlu0 %1355 }
 0x4df   : > { %v1385_v55 = vsub.f32 %v4884_v2, %v1356_v52 }
 0x4e1   : > { %2218 = vrot.lane.b32.xlu0 %v5961_v57, %s4167_s30  ;;  %v1354_v50 = vpop.xlane.xlu1 %1353  ;;  %v1403_v27 = vmul.f32 1.442695, %v1385_v55 }
 0x4e2   : > { %v1384_v16 = vsub.f32 %v4890_v62, %v1354_v50  ;;  %v1352_v59 = vpop.xlane.xlu0 %1351 }
 0x4e3   : > { %v1383_v10 = vsub.f32 %v4896_v17, %v1352_v59 }
 0x4e4   : > { %v1401_v58 = vmul.f32 1.442695, %v1384_v16 }
 0x4e5   : > { %v1399_v42 = vmul.f32 1.442695, %v1383_v10 }
 0x4e6   : > { %3773 = vpow2.f32 %v1401_v58  ;;  %v1358_v26 = vpop.xlane.xlu0 %1357  ;;  %v1364_v14 = vpop.xlane.xlu1 %1363 }
 0x4e7   : > { %3775 = vpow2.f32 %v1399_v42  ;;  %v1386_v0 = vsub.f32 %v4902_v5, %v1358_v26  ;;  %v1389_v52 = vsub.f32 %v4907_v8, %v1364_v14 }
 0x4e8   : > { %3777 = vpow2.f32 %v1403_v27 }
 0x4e9   : > { %v1405_v51 = vmul.f32 1.442695, %v1386_v0  ;;  %v1411_v2 = vmul.f32 1.442695, %v1389_v52  ;;  %v1738_v0 = vsel %vm5895_vm0, %v4844_v49, 0 }
 0x4ea   : > { %v1362_v57 = vpop.xlane.xlu0 %1361  ;;  %v1360_v54 = vpop.xlane.xlu1 %1359 }
 0x4eb   : > { %3779 = vpow2.f32 %v1405_v51  ;;  %v1388_v50 = vsub.f32 %v4914_v24, %v1362_v57  ;;  %v1387_v59 = vsub.f32 %v4919_v7, %v1360_v54 }
 0x4ed   : > { %v1409_v16 = vmul.f32 1.442695, %v1388_v50  ;;  %v1407_v10 = vmul.f32 1.442695, %v1387_v59 }
 0x4ee   : > { %v1366_v55 = vpop.xlane.xlu1 %1365  ;;  %v1372_v8 = vpop.xlane.xlu0 %1371 }
 0x4ef   : > { %3781 = vpow2.f32 %v1409_v16  ;;  %v1390_v42 = vsub.f32 %v4926_v30, %v1366_v55  ;;  %v1393_v58 = vsub.f32 %v4931_v53, %v1372_v8  ;;  %v1744_v8 = vsel %vm5895_vm0, %v5025_v56, 0 }
 0x4f0   : > { %v5039_v62 = vpop.eup %3773  ;;  %3783 = vpow2.f32 %v1407_v10 }
 0x4f1   : > { %v5041_v27 = vpop.eup %3775  ;;  %v1413_v26 = vmul.f32 1.442695, %v1390_v42  ;;  %3785 = vpow2.f32 %v1411_v2 }
 0x4f2   : > { %v1368_v51 = vpop.xlane.xlu1 %1367  ;;  %v1463_v17 = vpack.c.bf16 %v5039_v62, %v5041_v27  ;;  %v5045_v24 = vpop.eup %3777 }
 0x4f3   : > { %3787 = vpow2.f32 %v1413_v26  ;;  %v1391_v30 = vsub.f32 %v4938_v25, %v1368_v51 }
 0x4f4   : > { %3398 = vmatprep.mubr.bf16.mxu0 %v1463_v17 }
 0x4f5   : > { %v5047_v5 = vpop.eup %3779  ;;  %v1415_v52 = vmul.f32 1.442695, %v1391_v30 }
 0x4f6   : > { %v1374_v7 = vpop.xlane.xlu1 %1373  ;;  %v1464_v54 = vpack.c.bf16 %v5047_v5, %v5045_v24 }
 0x4f7   : > { %v1394_v14 = vsub.f32 %v4944_v48, %v1374_v7  ;;  %v1419_v48 = vmul.f32 1.442695, %v1393_v58  ;;  %3789 = vpow2.f32 %v1415_v52 }
 0x4f8   : > { %3399 = vmatmul.mubr.bf16.vlgmr.msra.gmra.mrb[48].mxu0 %v1464_v54 }
 0x4f9   : > { %v5056_v57 = vpop.eup %3781  ;;  %3415 = vmatpush3.bf16.xpose.msra.mxu0 %v1738_v0  ;;  %v1421_v59 = vmul.f32 1.442695, %v1394_v14  ;;  %v1747_v14 = vsel %vm5895_vm0, %v5023_v6, 0 }
 0x4fa   : > { %5962 = vst [vmem:[#allocation14_spill] sm:$0xff] %v5056_v57  ;;  %v5058_v50 = vpop.eup %3783  ;;  %3607 = vmatprep.subr.msk.bf16.mxu0 %vm5895_vm0, %v5017_v13  ;;  %v1370_v25 = vpop.xlane.xlu1 %1369 }
 0x4fb   : > { %v1392_v16 = vsub.f32 %v4956_v29, %v1370_v25  ;;  %v1465_v53 = vpack.c.bf16 %v5056_v57, %v5058_v50  ;;  %v5065_v10 = vpop.eup %3785  ;;  %3791 = vpow2.f32 %v1421_v59  ;;  %v1741_v29 = vsel %vm5895_vm0, %v5017_v13, 0 }
 0x4fd   : > { %v1417_v49 = vmul.f32 1.442695, %v1392_v16  ;;  %3402 = vmatprep.mubr.bf16.mxu0 %v1465_v53  ;;  %v5067_v55 = vpop.eup %3787 }
 0x4fe   : > { %5963 = vst [vmem:[#allocation17_spill] sm:$0xff] %v5067_v55  ;;  %v1466_v2 = vpack.c.bf16 %v5067_v55, %v5065_v10  ;;  %v1380_v42 = vpop.xlane.xlu1 %1379 }
 0x4ff   : > { %3793 = vpow2.f32 %v1417_v49 }
 0x500   : > { %3795 = vpow2.f32 %v1419_v48  ;;  %3403 = vmatmul.mubr.bf16.gmra.mrb[52].mxu0 %v1466_v2 }
 0x501   : > { %3417 = vmatpush3.bf16.xpose.msra.mxu0 %v1741_v29  ;;  %v5075_v26 = vpop.eup %3789  ;;  %v6002_v38 = vld [vmem:[#allocation14_spill] sm:$0xff] }
 0x502   : > { %3608 = vmatprep.subr.msk.bf16.mxu0 %vm5895_vm0, %v5025_v56  ;;  %v1382_v54 = vpop.xlane.xlu1 %1381  ;;  %v1376_v56 = vpop.xlane.xlu0 %1375 }
 0x503   : > { %v1395_v25 = vsub.f32 %v4950_v11, %v1376_v56  ;;  %v1398_v16 = vsub.f32 %v4968_v15, %v1382_v54 }
 0x505   : > { %v5077_v51 = vpop.eup %3791  ;;  %v1423_v53 = vmul.f32 1.442695, %v1395_v25  ;;  %v1429_v48 = vmul.f32 1.442695, %v1398_v16 }
 0x506   : > { %v1706_v58 = vpop.permute.xlu1 %1705  ;;  %v1708_v52 = vpop.permute.xlu0 %1707 }
 0x507   : > { %v1750_v0 = vsel %vm5895_vm0, %v1706_v58, 0  ;;  %v1753_v59 = vsel %vm5895_vm0, %v1708_v52, 0  ;;  %3797 = vpow2.f32 %v1423_v53 }
 0x508   : > { %3799 = vpow2.f32 %v1429_v48 }
 0x509   : > { %v5079_v17 = vpop.eup %3793  ;;  %3419 = vmatpush3.bf16.xpose.msra.mxu0 %v1744_v8 }
 0x50a   : > { %v5083_v30 = vpop.eup %3795  ;;  %v1467_v13 = vpack.c.bf16 %v5079_v17, %v5075_v26  ;;  %3609 = vmatprep.subr.msk.bf16.mxu0 %vm5895_vm0, %v5023_v6  ;;  %v1397_v6 = vsub.f32 %v4962_v46, %v1380_v42 }
 0x50b   : > { %v1468_v7 = vpack.c.bf16 %v5077_v51, %v5083_v30 }
 0x50c   : > { %3406 = vmatprep.mubr.bf16.mxu0 %v1467_v13  ;;  %v1427_v29 = vmul.f32 1.442695, %v1397_v6  ;;  %v1684_v13 = vpop.permute.xlu1 %1683 }
 0x50d   : > { %3407 = vmatmul.mubr.bf16.gmra.mrb[56].mxu0 %v1468_v7 }
 0x510   : > { %v1688_v46 = vpop.permute.xlu1 %1687 }
 0x511   : > { %3421 = vmatpush3.bf16.xpose.msra.mxu0 %v1747_v14  ;;  %v5104_v54 = vpop.eup %3797 }
 0x512   : > { %3610 = vmatprep.subr.msk.bf16.mxu0 %vm5895_vm0, %v1706_v58  ;;  %v5107_v14 = vpop.eup %3799 }
 0x513   : > { %5964 = vst [vmem:[#allocation13_spill] sm:$0xff] %v5107_v14 }
 0x519   : > { %3423 = vmatpush3.bf16.xpose.msra.mxu0 %v1750_v0  ;;  %v1692_v0 = vpop.permute.xlu1 %1691 }
 0x51a   : > { %3611 = vmatprep.subr.msk.bf16.mxu0 %vm5895_vm0, %v1708_v52 }
 0x51d   : > { %v1696_v6 = vpop.permute.xlu1 %1695 }
 0x521   : > { %3425 = vmatpush3.bf16.xpose.msra.mxu0 %v1753_v59  ;;  %v1997_v48 = vpop.permute.xlu1 %1996 }
 0x52c   : > { %v1378_v49 = vpop.xlane.xlu0 %1377 }
 0x52d   : > { %v1396_v2 = vsub.f32 %v4990_v3, %v1378_v49 }
 0x52f   : > { %v1425_v8 = vmul.f32 1.442695, %v1396_v2  ;;  %v2001_v2 = vpop.permute.xlu1 %2000 }
 0x530   : > { %v1710_v7 = vpop.permute.xlu0 %1709 }
 0x531   : > { %3801 = vpow2.f32 %v1425_v8  ;;  %3612 = vmatprep.subr.msk.bf16.mxu0 %vm5895_vm0, %v1710_v7  ;;  %v1756_v11 = vsel %vm5895_vm0, %v1710_v7, 0 }
 0x532   : > { %3803 = vpow2.f32 %v1427_v29  ;;  %3427 = vmatpush3.bf16.xpose.msra.mxu0 %v1756_v11 }
 0x533   : > { %v2003_v8 = vpop.permute.xlu1 %2002 }
 0x534   : > { %v1712_v15 = vpop.permute.xlu0 %1711 }
 0x535   : > { %3613 = vmatprep.subr.msk.bf16.mxu0 %vm5895_vm0, %v1712_v15  ;;  %v1759_v3 = vsel %vm5895_vm0, %v1712_v15, 0 }
 0x538   : > { %v1682_v42 = vpop.permute.xlu0 %1681 }
 0x53a   : > { %3429 = vmatpush3.bf16.xpose.msra.mxu0 %v1759_v3 }
 0x53b   : > { %v5109_v58 = vpop.eup %3801 }
 0x53c   : > { %5965 = vst [vmem:[#allocation15_spill] sm:$0xff] %v5109_v58  ;;  %v5111_v56 = vpop.eup %3803  ;;  %v1686_v52 = vpop.permute.xlu0 %1685  ;;  %v1469_v59 = vpack.c.bf16 %v5109_v58, %v5104_v54 }
 0x53d   : > { %v1470_v25 = vpack.c.bf16 %v5107_v14, %v5111_v56 }
 0x53e   : > { %3410 = vmatprep.mubr.bf16.mxu0 %v1469_v59 }
 0x53f   : > { %3411 = vmatmul.mubr.bf16.gmra.mrb[60].mxu0 %v1470_v25 }
 0x540   : > { %v1690_v16 = vpop.permute.xlu0 %1689  ;;  %3430 = vmatprep.mubr.msk.bf16.mxu0 %vm5895_vm0, %v1682_v42 }
 0x544   : > { %v1694_v53 = vpop.permute.xlu0 %1693 }
 0x547   : > { %3431 = vmatmul.mubr.msk.bf16.vlgmr.msra.gmra.mrb[64].mxu0 %vm5895_vm0, %v1684_v13  ;;  %v2005_v13 = vpop.permute.xlu1 %2004 }
 0x548   : > { %v1995_v49 = vpop.permute.xlu0 %1994  ;;  %3434 = vmatprep.mubr.msk.bf16.mxu0 %vm5895_vm0, %v1686_v52 }
 0x549   : > { %3446 = vmatprep.subr.bf16.mxu1 %v1995_v49 }
 0x54a   : > { %3447 = vmatpush3.bf16.msra.mxu1 %v1995_v49 }
 0x54b   : > { %3448 = vmatprep.subr.bf16.mxu1 %v1997_v48  ;;  %v2009_v11 = vpop.permute.xlu1 %2008 }
 0x54c   : > { %v1999_v29 = vpop.permute.xlu0 %1998 }
 0x54e   : > { %3449 = vmatpush3.bf16.msra.mxu1 %v1997_v48 }
 0x54f   : > { %3435 = vmatmul.mubr.msk.bf16.gmra.mrb[68].mxu0 %vm5895_vm0, %v1688_v46  ;;  %3450 = vmatprep.subr.bf16.mxu1 %v1999_v29 }
 0x550   : > { %3438 = vmatprep.mubr.msk.bf16.mxu0 %vm5895_vm0, %v1690_v16  ;;  %v2007_v7 = vpop.permute.xlu0 %2006 }
 0x552   : > { %3451 = vmatpush3.bf16.msra.mxu1 %v1999_v29 }
 0x553   : > { %3452 = vmatprep.subr.bf16.mxu1 %v2001_v2 }
 0x554   : > { %v5125_v15 = vpop.permute.xlu0 %2212 }
 0x556   : > { %3453 = vmatpush3.bf16.msra.mxu1 %v2001_v2 }
 0x557   : > { %3439 = vmatmul.mubr.msk.bf16.gmra.mrb[72].mxu0 %vm5895_vm0, %v1692_v0  ;;  %3454 = vmatprep.subr.bf16.mxu1 %v2003_v8 }
 0x558   : > { %3442 = vmatprep.mubr.msk.bf16.mxu0 %vm5895_vm0, %v1694_v53 }
 0x55a   : > { %3455 = vmatpush3.bf16.msra.mxu1 %v2003_v8 }
 0x55b   : > { %3456 = vmatprep.subr.bf16.mxu1 %v2005_v13 }
 0x55e   : > { %3457 = vmatpush3.bf16.msra.mxu1 %v2005_v13 }
 0x55f   : > { %3443 = vmatmul.mubr.msk.bf16.gmra.mrb[76].mxu0 %vm5895_vm0, %v1696_v6  ;;  %3458 = vmatprep.subr.bf16.mxu1 %v2007_v7 }
 0x562   : > { %3459 = vmatpush3.bf16.msra.mxu1 %v2007_v7 }
 0x563   : > { %3460 = vmatprep.subr.bf16.mxu1 %v2009_v11 }
 0x566   : > { %3461 = vmatpush3.bf16.msra.mxu1 %v2009_v11 }
 0x567   : > { %3614 = vmatprep.subr.msk.bf16.mxu1 %vm5895_vm0, %v5125_v15 }
 0x5cb   : > { %v5129_v46 = vpop.f32.mrb[48].mxu0 }
 0x5cc   : > { %5966 = vst [vmem:[#allocation19_spill] sm:$0xff] %v5129_v46  ;;  %v5131_v42 = vpop.f32.mrb[49].mxu0 }
 0x5cd   : > { %5967 = vst [vmem:[#allocation58_spill] sm:$0xff] %v5131_v42  ;;  %v5133_v3 = vpop.f32.mrb[50].mxu0 }
 0x5ce   : > { %5968 = vst [vmem:[#allocation59_spill] sm:$0xff] %v5133_v3  ;;  %v5135_v0 = vpop.f32.mrb[51].mxu0 }
 0x5cf   : > { %5969 = vst [vmem:[#allocation60_spill] sm:$0xff] %v5135_v0 }
 0x5d3   : > { %v5137_v52 = vpop.f32.mrb[52].mxu0 }
 0x5d4   : > { %5970 = vst [vmem:[#allocation61_spill] sm:$0xff] %v5137_v52  ;;  %v5139_v59 = vpop.f32.mrb[53].mxu0 }
 0x5d5   : > { %5971 = vst [vmem:[#allocation62_spill] sm:$0xff] %v5139_v59  ;;  %v5141_v25 = vpop.f32.mrb[54].mxu0 }
 0x5d6   : > { %5972 = vst [vmem:[#allocation63_spill] sm:$0xff] %v5141_v25  ;;  %v5143_v16 = vpop.f32.mrb[55].mxu0 }
 0x5d7   : > { %5973 = vst [vmem:[#allocation64_spill] sm:$0xff] %v5143_v16 }
 0x5e0   : > { %v5145_v6 = vpop.f32.mrb[56].mxu0 }
 0x5e1   : > { %5974 = vst [vmem:[#allocation65_spill] sm:$0xff] %v5145_v6  ;;  %v5147_v53 = vpop.f32.mrb[57].mxu0 }
 0x5e2   : > { %5975 = vst [vmem:[#allocation66_spill] sm:$0xff] %v5147_v53  ;;  %v5149_v48 = vpop.f32.mrb[58].mxu0 }
 0x5e3   : > { %5976 = vst [vmem:[#allocation67_spill] sm:$0xff] %v5149_v48  ;;  %v5151_v49 = vpop.f32.mrb[59].mxu0 }
 0x5e4   : > { %5977 = vst [vmem:[#allocation68_spill] sm:$0xff] %v5151_v49 }
 0x612   : > { %v5153_v2 = vpop.f32.mrb[60].mxu0 }
 0x613   : > { %5978 = vst [vmem:[#allocation69_spill] sm:$0xff] %v5153_v2  ;;  %v5155_v29 = vpop.f32.mrb[61].mxu0 }
 0x614   : > { %5979 = vst [vmem:[#allocation70_spill] sm:$0xff] %v5155_v29  ;;  %v5157_v8 = vpop.f32.mrb[62].mxu0 }
 0x615   : > { %5980 = vst [vmem:[#allocation71_spill] sm:$0xff] %v5157_v8  ;;  %v5159_v13 = vpop.f32.mrb[63].mxu0 }
 0x616   : > { %5981 = vst [vmem:[#allocation72_spill] sm:$0xff] %v5159_v13 }
 0x61a   : > { %v3432_v7 = vpop.f32.mrb[64].mxu0 }
 0x61b   : > { %v1795_v11 = vpop.f32.mrb[65].mxu0  ;;  %v5164_v25 = vsel %vm5982_vm9, %v3432_v7, -1e+30  ;;  %vm5983_vm9 = vcmp.le.s32.totalorder %v4532_v32, %v4580_v43 }
 0x61c   : > { %1878 = vmax.xlane.f32.xlu0 %v5164_v25  ;;  %v3433_v52 = vpop.f32.mrb[66].mxu0  ;;  %v5176_v8 = vsel %vm699_vm10, %v1795_v11, -1e+30 }
 0x61d   : > { %v1798_v16 = vpop.f32.mrb[67].mxu0  ;;  %v5182_v29 = vsel %vm5983_vm9, %v3433_v52, -1e+30  ;;  %vm5996_vm9 = vcmp.le.s32.totalorder %v4532_v32, %v4575_v41 }
 0x61e   : > { %v5170_v2 = vsel %vm700_vm12, %v1798_v16, -1e+30 }
 0x61f   : > { %1876 = vmax.xlane.f32.xlu1 %v5170_v2 }
 0x620   : > { %1874 = vmax.xlane.f32.xlu0 %v5176_v8 }
 0x622   : > { %v3436_v7 = vpop.f32.mrb[68].mxu0 }
 0x623   : > { %v1811_v13 = vpop.f32.mrb[69].mxu0  ;;  %v5187_v16 = vsel %vm705_vm14, %v3436_v7, -1e+30 }
 0x624   : > { %1880 = vmax.xlane.f32.xlu0 %v5182_v29  ;;  %1886 = vmax.xlane.f32.xlu1 %v5187_v16  ;;  %v3437_v11 = vpop.f32.mrb[70].mxu0  ;;  %v5199_v52 = vsel %vm703_vm13, %v1811_v13, -1e+30 }
 0x625   : > { %v1814_v59 = vpop.f32.mrb[71].mxu0  ;;  %v5206_v3 = vsel %vm706_vm15, %v3437_v11, -1e+30 }
 0x626   : > { %v5194_v48 = vsel %vm704_vm1, %v1814_v59, -1e+30 }
 0x628   : > { %1882 = vmax.xlane.f32.xlu1 %v5199_v52  ;;  %1884 = vmax.xlane.f32.xlu0 %v5194_v48 }
 0x62a   : > { %v3440_v7 = vpop.f32.mrb[72].mxu0 }
 0x62b   : > { %v1827_v6 = vpop.f32.mrb[73].mxu0  ;;  %v5211_v59 = vsel %vm709_vm2, %v3440_v7, -1e+30 }
 0x62c   : > { %1888 = vmax.xlane.f32.xlu1 %v5206_v3  ;;  %1894 = vmax.xlane.f32.xlu0 %v5211_v59  ;;  %v3441_v13 = vpop.f32.mrb[74].mxu0  ;;  %v5218_v49 = vsel %vm707_vm11, %v1827_v6, -1e+30 }
 0x62d   : > { %v1830_v46 = vpop.f32.mrb[75].mxu0  ;;  %v5224_v7 = vsel %vm710_vm3, %v3441_v13, -1e+30 }
 0x62e   : > { %v5236_v14 = vsel %vm708_vm4, %v1830_v46, -1e+30 }
 0x630   : > { %1890 = vmax.xlane.f32.xlu1 %v5218_v49 }
 0x632   : > { %v3444_v11 = vpop.f32.mrb[76].mxu0 }
 0x633   : > { %v1843_v53 = vpop.f32.mrb[77].mxu0  ;;  %v5242_v13 = vsel %vm713_vm5, %v3444_v11, -1e+30 }
 0x634   : > { %1896 = vmax.xlane.f32.xlu1 %v5224_v7  ;;  %v3445_v0 = vpop.f32.mrb[78].mxu0  ;;  %v5230_v42 = vsel %vm711_vm6, %v1843_v53, -1e+30 }
 0x635   : > { %1898 = vmax.xlane.f32.xlu0 %v5230_v42  ;;  %v1846_v6 = vpop.f32.mrb[79].mxu0  ;;  %v5248_v53 = vsel %vm714_vm7, %v3445_v0, -1e+30 }
 0x638   : > { %1892 = vmax.xlane.f32.xlu1 %v5236_v14 }
 0x63c   : > { %1902 = vmax.xlane.f32.xlu1 %v5242_v13 }
 0x640   : > { %1904 = vmax.xlane.f32.xlu1 %v5248_v53 }
 0x64b   : > { %2222 = vrot.lane.b32.xlu0 %v4481_v61, %s4167_s30  ;;  %v5289_v61 = vpop.permute.xlu0 %2214 }
 0x651   : > { %2220 = vrot.lane.b32.xlu1 %v4465_v44, %s4167_s30  ;;  %v5270_v44 = vsel %vm712_vm8, %v1846_v6, -1e+30 }
 0x655   : > { %2198 = vrot.lane.b32.xlu1 %v4422_v1, %s4167_s30  ;;  %v5984_v1 = vld [vmem:[#allocation22_spill] sm:$0xff] }
 0x659   : > { %2202 = vrot.lane.b32.xlu1 %v4454_v31, %s4167_s30  ;;  %v5986_v31 = vld [vmem:[#allocation16_spill] sm:$0xff] }
 0x65d   : > { %2206 = vrot.lane.b32.xlu1 %v4486_v63, %s4167_s30  ;;  %v5988_v63 = vld [vmem:[#allocation18_spill] sm:$0xff] }
 0x661   : > { %2210 = vrot.lane.b32.xlu1 %v4506_v23, %s4167_s30  ;;  %v5297_v23 = vpop.permute.xlu1 %2216 }
 0x665   : > { %2511 = vrot.lane.b32.xlu1 %v4430_v12, %s4167_s30  ;;  %v5985_v12 = vld [vmem:[#allocation25_spill] sm:$0xff] }
 0x669   : > { %2517 = vrot.lane.b32.xlu1 %v4467_v45, %s4167_s30  ;;  %v5987_v45 = vld [vmem:[#allocation20_spill] sm:$0xff] }
 0x66a   : > { %1900 = vmax.xlane.f32.xlu0 %v5270_v44 }
 0x680   : > { %2224 = vrot.lane.b32.xlu0 %v4495_v9, %s4167_s30  ;;  %v5989_v9 = vld [vmem:[#allocation21_spill] sm:$0xff] }
 0x684   : > { %2226 = vrot.lane.b32.xlu0 %v4504_v22, %s4167_s30  ;;  %v5295_v22 = vpop.permute.xlu0 %2218 }
 0x688   : > { %2196 = vrot.lane.b32.xlu0 %v5952_v60, %s4167_s30 }
 0x68c   : > { %2200 = vrot.lane.b32.xlu0 %v5953_v4, %s4167_s30 }
 0x690   : > { %2204 = vrot.lane.b32.xlu0 %v5984_v1, %s4167_s30 }
 0x694   : > { %2208 = vrot.lane.b32.xlu0 %v5985_v12, %s4167_s30 }
 0x698   : > { %2509 = vrot.lane.b32.xlu0 %v5986_v31, %s4167_s30 }
 0x69c   : > { %2513 = vrot.lane.b32.xlu0 %v5987_v45, %s4167_s30 }
 0x6a0   : > { %2515 = vrot.lane.b32.xlu0 %v5988_v63, %s4167_s30 }
 0x6a4   : > { %2519 = vrot.lane.b32.xlu0 %v5989_v9, %s4167_s30 }
 0x6a9   : > { %v1879_v60 = vpop.xlane.xlu0 %1878 }
 0x6aa   : > { %v1908_v46 = vsub.f32 %v5164_v25, %v1879_v60 }
 0x6ac   : > { %v1877_v4 = vpop.xlane.xlu1 %1876  ;;  %v1926_v31 = vmul.f32 1.442695, %v1908_v46 }
 0x6ad   : > { %v1907_v0 = vsub.f32 %v5170_v2, %v1877_v4  ;;  %v1875_v11 = vpop.xlane.xlu0 %1874 }
 0x6ae   : > { %v1906_v6 = vsub.f32 %v5176_v8, %v1875_v11 }
 0x6af   : > { %v1924_v1 = vmul.f32 1.442695, %v1907_v0 }
 0x6b0   : > { %v1922_v12 = vmul.f32 1.442695, %v1906_v6 }
 0x6b1   : > { %3805 = vpow2.f32 %v1924_v1  ;;  %v1881_v45 = vpop.xlane.xlu0 %1880  ;;  %v1887_v63 = vpop.xlane.xlu1 %1886 }
 0x6b2   : > { %3807 = vpow2.f32 %v1922_v12  ;;  %v1909_v9 = vsub.f32 %v5182_v29, %v1881_v45  ;;  %v1912_v25 = vsub.f32 %v5187_v16, %v1887_v63  ;;  %v2253_v63 = vsel %vm5895_vm0, %v5125_v15, 0 }
 0x6b3   : > { %3809 = vpow2.f32 %v1926_v31 }
 0x6b4   : > { %v1928_v55 = vmul.f32 1.442695, %v1909_v9  ;;  %v1934_v0 = vmul.f32 1.442695, %v1912_v25 }
 0x6b5   : > { %v1885_v58 = vpop.xlane.xlu0 %1884  ;;  %v1883_v57 = vpop.xlane.xlu1 %1882 }
 0x6b6   : > { %3811 = vpow2.f32 %v1928_v55  ;;  %v1911_v2 = vsub.f32 %v5194_v48, %v1885_v58  ;;  %v1910_v8 = vsub.f32 %v5199_v52, %v1883_v57 }
 0x6b8   : > { %v1932_v60 = vmul.f32 1.442695, %v1911_v2  ;;  %v1930_v4 = vmul.f32 1.442695, %v1910_v8 }
 0x6b9   : > { %v1889_v46 = vpop.xlane.xlu1 %1888  ;;  %v1895_v48 = vpop.xlane.xlu0 %1894 }
 0x6ba   : > { %3813 = vpow2.f32 %v1932_v60  ;;  %v1913_v11 = vsub.f32 %v5206_v3, %v1889_v46  ;;  %v1916_v45 = vsub.f32 %v5211_v59, %v1895_v48  ;;  %v2259_v48 = vsel %vm5895_vm0, %v5297_v23, 0 }
 0x6bb   : > { %v5307_v6 = vpop.eup %3805  ;;  %3815 = vpow2.f32 %v1930_v4 }
 0x6bc   : > { %v5309_v29 = vpop.eup %3807  ;;  %v1936_v1 = vmul.f32 1.442695, %v1913_v11  ;;  %3817 = vpow2.f32 %v1934_v0 }
 0x6bd   : > { %v1891_v55 = vpop.xlane.xlu1 %1890  ;;  %v1986_v16 = vpack.c.bf16 %v5307_v6, %v5309_v29  ;;  %v5313_v58 = vpop.eup %3809 }
 0x6be   : > { %3819 = vpow2.f32 %v1936_v1  ;;  %v1914_v3 = vsub.f32 %v5218_v49, %v1891_v55 }
 0x6bf   : > { %3462 = vmatprep.mubr.bf16.mxu1 %v1986_v16 }
 0x6c0   : > { %v5315_v57 = vpop.eup %3811  ;;  %v1938_v25 = vmul.f32 1.442695, %v1914_v3 }
 0x6c1   : > { %v1897_v52 = vpop.xlane.xlu1 %1896  ;;  %v1987_v12 = vpack.c.bf16 %v5315_v57, %v5313_v58 }
 0x6c2   : > { %v1917_v31 = vsub.f32 %v5224_v7, %v1897_v52  ;;  %v1942_v7 = vmul.f32 1.442695, %v1916_v45  ;;  %3821 = vpow2.f32 %v1938_v25 }
 0x6c3   : > { %3463 = vmatmul.mubr.bf16.vlgmr.msra.gmra.mrb[48].mxu1 %v1987_v12 }
 0x6c4   : > { %v5324_v9 = vpop.eup %3813  ;;  %3479 = vmatpush3.bf16.xpose.msra.mxu1 %v2253_v63  ;;  %v1944_v8 = vmul.f32 1.442695, %v1917_v31  ;;  %v2262_v31 = vsel %vm5895_vm0, %v5295_v22, 0 }
 0x6c5   : > { %v5326_v2 = vpop.eup %3815  ;;  %3615 = vmatprep.subr.msk.bf16.mxu1 %vm5895_vm0, %v5289_v61  ;;  %v1893_v49 = vpop.xlane.xlu1 %1892 }
 0x6c6   : > { %v1915_v60 = vsub.f32 %v5236_v14, %v1893_v49  ;;  %v1988_v59 = vpack.c.bf16 %v5324_v9, %v5326_v2  ;;  %v5333_v4 = vpop.eup %3817  ;;  %3823 = vpow2.f32 %v1944_v8  ;;  %v2256_v14 = vsel %vm5895_vm0, %v5289_v61, 0 }
 0x6c8   : > { %v1940_v15 = vmul.f32 1.442695, %v1915_v60  ;;  %3466 = vmatprep.mubr.bf16.mxu1 %v1988_v59  ;;  %v5335_v46 = vpop.eup %3819 }
 0x6c9   : > { %v1989_v0 = vpack.c.bf16 %v5335_v46, %v5333_v4  ;;  %v1903_v11 = vpop.xlane.xlu1 %1902 }
 0x6ca   : > { %3825 = vpow2.f32 %v1940_v15 }
 0x6cb   : > { %3827 = vpow2.f32 %v1942_v7  ;;  %3467 = vmatmul.mubr.bf16.gmra.mrb[52].mxu1 %v1989_v0 }
 0x6cc   : > { %3481 = vmatpush3.bf16.xpose.msra.mxu1 %v2256_v14  ;;  %v5343_v1 = vpop.eup %3821 }
 0x6cd   : > { %3616 = vmatprep.subr.msk.bf16.mxu1 %vm5895_vm0, %v5297_v23  ;;  %v1905_v12 = vpop.xlane.xlu1 %1904  ;;  %v1899_v23 = vpop.xlane.xlu0 %1898 }
 0x6ce   : > { %v1918_v49 = vsub.f32 %v5230_v42, %v1899_v23  ;;  %v1921_v60 = vsub.f32 %v5248_v53, %v1905_v12 }
 0x6d0   : > { %v5345_v55 = vpop.eup %3823  ;;  %v1946_v59 = vmul.f32 1.442695, %v1918_v49  ;;  %v1952_v7 = vmul.f32 1.442695, %v1921_v60 }
 0x6d1   : > { %v2221_v45 = vpop.permute.xlu1 %2220  ;;  %v2223_v25 = vpop.permute.xlu0 %2222 }
 0x6d2   : > { %v2265_v63 = vsel %vm5895_vm0, %v2221_v45, 0  ;;  %v2268_v8 = vsel %vm5895_vm0, %v2223_v25, 0  ;;  %3829 = vpow2.f32 %v1946_v59 }
 0x6d3   : > { %3831 = vpow2.f32 %v1952_v7 }
 0x6d4   : > { %v5347_v16 = vpop.eup %3825  ;;  %3483 = vmatpush3.bf16.xpose.msra.mxu1 %v2259_v48 }
 0x6d5   : > { %v5351_v3 = vpop.eup %3827  ;;  %v1990_v61 = vpack.c.bf16 %v5347_v16, %v5343_v1  ;;  %3617 = vmatprep.subr.msk.bf16.mxu1 %vm5895_vm0, %v5295_v22  ;;  %v1920_v22 = vsub.f32 %v5242_v13, %v1903_v11  ;;  %v2199_v42 = vpop.permute.xlu1 %2198 }
 0x6d6   : > { %v1991_v52 = vpack.c.bf16 %v5345_v55, %v5351_v3 }
 0x6d7   : > { %3470 = vmatprep.mubr.bf16.mxu1 %v1990_v61  ;;  %v1950_v14 = vmul.f32 1.442695, %v1920_v22 }
 0x6d8   : > { %3471 = vmatmul.mubr.bf16.gmra.mrb[56].mxu1 %v1991_v52 }
 0x6d9   : > { %v2203_v13 = vpop.permute.xlu1 %2202 }
 0x6dc   : > { %3485 = vmatpush3.bf16.xpose.msra.mxu1 %v2262_v31  ;;  %v5372_v12 = vpop.eup %3829 }
 0x6dd   : > { %3618 = vmatprep.subr.msk.bf16.mxu1 %vm5895_vm0, %v2221_v45  ;;  %v5375_v31 = vpop.eup %3831  ;;  %v2207_v49 = vpop.permute.xlu1 %2206 }
 0x6e1   : > { %v2211_v22 = vpop.permute.xlu1 %2210 }
 0x6e4   : > { %3487 = vmatpush3.bf16.xpose.msra.mxu1 %v2265_v63 }
 0x6e5   : > { %3619 = vmatprep.subr.msk.bf16.mxu1 %vm5895_vm0, %v2223_v25 }
 0x6ec   : > { %3489 = vmatpush3.bf16.xpose.msra.mxu1 %v2268_v8 }
 0x6f7   : > { %v1901_v15 = vpop.xlane.xlu0 %1900 }
 0x6f8   : > { %v1919_v0 = vsub.f32 %v5270_v44, %v1901_v15  ;;  %v2512_v15 = vpop.permute.xlu1 %2511 }
 0x6fa   : > { %v1948_v48 = vmul.f32 1.442695, %v1919_v0 }
 0x6fb   : > { %v2225_v61 = vpop.permute.xlu0 %2224 }
 0x6fc   : > { %3833 = vpow2.f32 %v1948_v48  ;;  %3620 = vmatprep.subr.msk.bf16.mxu1 %vm5895_vm0, %v2225_v61  ;;  %v2271_v52 = vsel %vm5895_vm0, %v2225_v61, 0  ;;  %v2518_v48 = vpop.permute.xlu1 %2517 }
 0x6fd   : > { %3835 = vpow2.f32 %v1950_v14  ;;  %3491 = vmatpush3.bf16.xpose.msra.mxu1 %v2271_v52 }
 0x6ff   : > { %v2227_v53 = vpop.permute.xlu0 %2226 }
 0x700   : > { %3621 = vmatprep.subr.msk.bf16.mxu1 %vm5895_vm0, %v2227_v53  ;;  %v2274_v44 = vsel %vm5895_vm0, %v2227_v53, 0 }
 0x703   : > { %v2197_v11 = vpop.permute.xlu0 %2196 }
 0x705   : > { %3493 = vmatpush3.bf16.xpose.msra.mxu1 %v2274_v44 }
 0x706   : > { %v5377_v45 = vpop.eup %3833 }
 0x707   : > { %v5379_v23 = vpop.eup %3835  ;;  %v2201_v63 = vpop.permute.xlu0 %2200  ;;  %v1992_v25 = vpack.c.bf16 %v5377_v45, %v5372_v12 }
 0x708   : > { %v1993_v8 = vpack.c.bf16 %v5375_v31, %v5379_v23 }
 0x709   : > { %3474 = vmatprep.mubr.bf16.mxu1 %v1992_v25 }
 0x70a   : > { %3475 = vmatmul.mubr.bf16.gmra.mrb[60].mxu1 %v1993_v8 }
 0x70b   : > { %v2205_v60 = vpop.permute.xlu0 %2204  ;;  %3494 = vmatprep.mubr.msk.bf16.mxu1 %vm5895_vm0, %v2197_v11 }
 0x70f   : > { %v2209_v59 = vpop.permute.xlu0 %2208 }
 0x712   : > { %3495 = vmatmul.mubr.msk.bf16.vlgmr.msra.gmra.mrb[64].mxu1 %vm5895_vm0, %v2199_v42 }
 0x713   : > { %v2510_v7 = vpop.permute.xlu0 %2509  ;;  %3498 = vmatprep.mubr.msk.bf16.mxu1 %vm5895_vm0, %v2201_v63 }
 0x714   : > { %3510 = vmatprep.subr.bf16.mxu0 %v2510_v7 }
 0x715   : > { %3511 = vmatpush3.bf16.msra.mxu0 %v2510_v7 }
 0x716   : > { %3512 = vmatprep.subr.bf16.mxu0 %v2512_v15 }
 0x717   : > { %v2514_v0 = vpop.permute.xlu0 %2513 }
 0x719   : > { %3513 = vmatpush3.bf16.msra.mxu0 %v2512_v15 }
 0x71a   : > { %3499 = vmatmul.mubr.msk.bf16.gmra.mrb[68].mxu1 %vm5895_vm0, %v2203_v13  ;;  %3514 = vmatprep.subr.bf16.mxu0 %v2514_v0 }
 0x71b   : > { %3502 = vmatprep.mubr.msk.bf16.mxu1 %vm5895_vm0, %v2205_v60  ;;  %v2516_v14 = vpop.permute.xlu0 %2515 }
 0x71d   : > { %3515 = vmatpush3.bf16.msra.mxu0 %v2514_v0 }
 0x71e   : > { %3516 = vmatprep.subr.bf16.mxu0 %v2516_v14 }
 0x71f   : > { %v2520_v61 = vpop.permute.xlu0 %2519 }
 0x721   : > { %3517 = vmatpush3.bf16.msra.mxu0 %v2516_v14 }
 0x722   : > { %3503 = vmatmul.mubr.msk.bf16.gmra.mrb[72].mxu1 %vm5895_vm0, %v2207_v49  ;;  %3518 = vmatprep.subr.bf16.mxu0 %v2518_v48 }
 0x723   : > { %3506 = vmatprep.mubr.msk.bf16.mxu1 %vm5895_vm0, %v2209_v59 }
 0x725   : > { %3519 = vmatpush3.bf16.msra.mxu0 %v2518_v48 }
 0x726   : > { %3520 = vmatprep.subr.bf16.mxu0 %v2520_v61 }
 0x729   : > { %3521 = vmatpush3.bf16.msra.mxu0 %v2520_v61 }
 0x72a   : > { %3507 = vmatmul.mubr.msk.bf16.gmra.mrb[76].mxu1 %vm5895_vm0, %v2211_v22  ;;  %vm5997_vm0 = vcmp.le.s32.totalorder %v4532_v32, %v4580_v43  ;;  %v6000_v32 = vld [vmem:[#allocation26_spill] sm:$0xff] }
 0x796   : > { %v5393_v52 = vpop.f32.mrb[48].mxu1 }
 0x797   : > { %v5395_v42 = vpop.f32.mrb[49].mxu1 }
 0x798   : > { %v5397_v53 = vpop.f32.mrb[50].mxu1 }
 0x799   : > { %v5399_v13 = vpop.f32.mrb[51].mxu1 }
 0x79e   : > { %v5401_v11 = vpop.f32.mrb[52].mxu1 }
 0x79f   : > { %v5403_v44 = vpop.f32.mrb[53].mxu1 }
 0x7a0   : > { %5990 = vst [vmem:[#allocation22_spill] sm:$0xff] %v5403_v44  ;;  %v5405_v63 = vpop.f32.mrb[54].mxu1 }
 0x7a1   : > { %5991 = vst [vmem:[#allocation25_spill] sm:$0xff] %v5405_v63  ;;  %v5407_v25 = vpop.f32.mrb[55].mxu1 }
 0x7a2   : > { %5992 = vst [vmem:[#allocation16_spill] sm:$0xff] %v5407_v25 }
 0x7ab   : > { %v5409_v8 = vpop.f32.mrb[56].mxu1 }
 0x7ac   : > { %v5411_v49 = vpop.f32.mrb[57].mxu1 }
 0x7ad   : > { %v5413_v60 = vpop.f32.mrb[58].mxu1 }
 0x7ae   : > { %v5415_v22 = vpop.f32.mrb[59].mxu1 }
 0x7dd   : > { %v5417_v59 = vpop.f32.mrb[60].mxu1 }
 0x7de   : > { %v5419_v7 = vpop.f32.mrb[61].mxu1 }
 0x7df   : > { %5993 = vst [vmem:[#allocation20_spill] sm:$0xff] %v5419_v7  ;;  %v5421_v15 = vpop.f32.mrb[62].mxu1 }
 0x7e0   : > { %5994 = vst [vmem:[#allocation18_spill] sm:$0xff] %v5421_v15  ;;  %v5423_v0 = vpop.f32.mrb[63].mxu1 }
 0x7e1   : > { %5995 = vst [vmem:[#allocation21_spill] sm:$0xff] %v5423_v0 }
 0x7e5   : > { %v3496_v14 = vpop.f32.mrb[64].mxu1 }
 0x7e6   : > { %v5428_v48 = vsel %vm5996_vm9, %v3496_v14, -1e+30  ;;  %v2310_v61 = vpop.f32.mrb[65].mxu1 }
 0x7e7   : > { %v5433_v63 = vsel %vm699_vm10, %v2310_v61, -1e+30  ;;  %2393 = vmax.xlane.f32.xlu1 %v5428_v48  ;;  %v3497_v25 = vpop.f32.mrb[66].mxu1 }
 0x7e8   : > { %2389 = vmax.xlane.f32.xlu0 %v5433_v63  ;;  %v2313_v15 = vpop.f32.mrb[67].mxu1  ;;  %v5440_v0 = vsel %vm5997_vm0, %v3497_v25, -1e+30  ;;  %vm6046_vm0 = vcmask 261120  }
 0x7e9   : > { %v5446_v28 = vsel %vm700_vm12, %v2313_v15, -1e+30  ;;  %vm6065_vm10 = vmmov %vm6046_vm0 }
 0x7eb   : > { %2395 = vmax.xlane.f32.xlu1 %v5440_v0 }
 0x7ed   : > { %v3500_v41 = vpop.f32.mrb[68].mxu1 }
 0x7ee   : > { %v2326_v14 = vpop.f32.mrb[69].mxu1  ;;  %v5458_v25 = vsel %vm705_vm14, %v3500_v41, -1e+30 }
 0x7ef   : > { %v5451_v61 = vsel %vm703_vm13, %v2326_v14, -1e+30  ;;  %2391 = vmax.xlane.f32.xlu1 %v5446_v28  ;;  %v3501_v7 = vpop.f32.mrb[70].mxu1 }
 0x7f0   : > { %2397 = vmax.xlane.f32.xlu0 %v5451_v61  ;;  %v2329_v43 = vpop.f32.mrb[71].mxu1  ;;  %v5464_v18 = vsel %vm706_vm15, %v3501_v7, -1e+30 }
 0x7f1   : > { %v5476_v41 = vsel %vm704_vm1, %v2329_v43, -1e+30  ;;  %vm6049_vm1 = vmmov %vm6046_vm0 }
 0x7f3   : > { %2401 = vmax.xlane.f32.xlu1 %v5458_v25 }
 0x7f5   : > { %v3504_v47 = vpop.f32.mrb[72].mxu1 }
 0x7f6   : > { %v2342_v15 = vpop.f32.mrb[73].mxu1  ;;  %v5488_v7 = vsel %vm709_vm2, %v3504_v47, -1e+30  ;;  %v5999_v47 = vld [vmem:[#allocation23_spill] sm:$0xff]  ;;  %vm6050_vm2 = vmmov %vm6046_vm0 }
 0x7f7   : > { %2403 = vmax.xlane.f32.xlu1 %v5464_v18  ;;  %v3505_v14 = vpop.f32.mrb[74].mxu1 }
 0x7f8   : > { %v5470_v44 = vsel %vm710_vm3, %v3505_v14, -1e+30  ;;  %v2345_v19 = vpop.f32.mrb[75].mxu1  ;;  %vm6053_vm3 = vmmov %vm6046_vm0 }
 0x7f9   : > { %2411 = vmax.xlane.f32.xlu0 %v5470_v44  ;;  %v5482_v20 = vsel %vm708_vm4, %v2345_v19, -1e+30  ;;  %v5500_v19 = vsel %vm707_vm11, %v2342_v15, -1e+30  ;;  %vm1672_vm4 = vcmask 523520   ;;  %vm2702_vm11 = vcmask 1048320  }
 0x7fb   : > { %2399 = vmax.xlane.f32.xlu1 %v5476_v41 }
 0x7fd   : > { %2407 = vmax.xlane.f32.xlu0 %v5482_v20  ;;  %v3508_v35 = vpop.f32.mrb[76].mxu1 }
 0x7fe   : > { %v2358_v14 = vpop.f32.mrb[77].mxu1  ;;  %v5523_v40 = vsel %vm713_vm5, %v3508_v35, -1e+30  ;;  %vm2187_vm5 = vcmask 785920  }
 0x7ff   : > { %2409 = vmax.xlane.f32.xlu1 %v5488_v7  ;;  %v3509_v33 = vpop.f32.mrb[78].mxu1  ;;  %v5516_v21 = vsel %vm711_vm6, %v2358_v14, -1e+30  ;;  %vm6058_vm6 = vmmov %vm6046_vm0 }
 0x800   : > { %v5494_v43 = vsel %vm714_vm7, %v3509_v33, -1e+30  ;;  %v2361_v36 = vpop.f32.mrb[79].mxu1  ;;  %vm6061_vm7 = vmmov %vm6046_vm0 }
 0x801   : > { %2419 = vmax.xlane.f32.xlu0 %v5494_v43  ;;  %v5506_v34 = vsel %vm712_vm8, %v2361_v36, -1e+30  ;;  %vm6064_vm8 = vmmov %vm6046_vm0 }
 0x803   : > { %2405 = vmax.xlane.f32.xlu1 %v5500_v19 }
 0x805   : > { %2415 = vmax.xlane.f32.xlu0 %v5506_v34 }
 0x814   : > { %2521 = vrot.lane.b32.xlu1 %v5998_v39, %s4167_s30 }
 0x81b   : > { %2523 = vrot.lane.b32.xlu0 %v5999_v47, %s4167_s30  ;;  %v6008_v47 = vld [vmem:[#allocation28_spill] sm:$0xff] }
 0x838   : > { %2413 = vmax.xlane.f32.xlu1 %v5516_v21 }
 0x83a   : > { %1433 = vadd.xlane.f32.xlu0 %v5039_v62  ;;  %v6003_v62 = vld [vmem:[#allocation29_spill] sm:$0xff] }
 0x83c   : > { %2417 = vmax.xlane.f32.xlu1 %v5523_v40 }
 0x83e   : > { %1970 = vadd.xlane.f32.xlu0 %v5343_v1 }
 0x840   : > { %1431 = vadd.xlane.f32.xlu1 %v5041_v27  ;;  %v6004_v27 = vld [vmem:[#allocation15_spill] sm:$0xff] }
 0x842   : > { %1958 = vadd.xlane.f32.xlu0 %v5313_v58 }
 0x844   : > { %1447 = vadd.xlane.f32.xlu1 %v5075_v26  ;;  %v6005_v26 = vld [vmem:[#allocation36_spill] sm:$0xff] }
 0x846   : > { %1974 = vadd.xlane.f32.xlu0 %v5351_v3 }
 0x848   : > { %1449 = vadd.xlane.f32.xlu1 %v5079_v17  ;;  %v6006_v17 = vld [vmem:[#allocation17_spill] sm:$0xff] }
 0x84a   : > { %1439 = vadd.xlane.f32.xlu0 %v5058_v50 }
 0x84c   : > { %1435 = vadd.xlane.f32.xlu1 %v5045_v24 }
 0x84e   : > { %1455 = vadd.xlane.f32.xlu0 %v5104_v54 }
 0x850   : > { %1437 = vadd.xlane.f32.xlu1 %v5047_v5 }
 0x852   : > { %1443 = vadd.xlane.f32.xlu0 %v5065_v10 }
 0x854   : > { %1451 = vadd.xlane.f32.xlu1 %v5083_v30 }
 0x856   : > { %1459 = vadd.xlane.f32.xlu0 %v5111_v56  ;;  %v6007_v56 = vld [vmem:[#allocation13_spill] sm:$0xff] }
 0x858   : > { %1453 = vadd.xlane.f32.xlu1 %v5077_v51 }
 0x85a   : > { %1962 = vadd.xlane.f32.xlu0 %v5326_v2 }
 0x85c   : > { %1954 = vadd.xlane.f32.xlu1 %v5309_v29 }
 0x85e   : > { %1978 = vadd.xlane.f32.xlu0 %v5372_v12 }
 0x860   : > { %1956 = vadd.xlane.f32.xlu1 %v5307_v6 }
 0x862   : > { %1966 = vadd.xlane.f32.xlu0 %v5333_v4 }
 0x864   : > { %1972 = vadd.xlane.f32.xlu1 %v5347_v16 }
 0x866   : > { %1982 = vadd.xlane.f32.xlu0 %v5379_v23 }
 0x868   : > { %1960 = vadd.xlane.f32.xlu1 %v5315_v57 }
 0x86a   : > { %957 = vadd.xlane.f32.xlu0 %v6000_v32 }
 0x86c   : > { %1976 = vadd.xlane.f32.xlu1 %v5345_v55 }
 0x86e   : > { %973 = vadd.xlane.f32.xlu0 %v6001_v37 }
 0x870   : > { %1441 = vadd.xlane.f32.xlu1 %v6002_v38 }
 0x872   : > { %961 = vadd.xlane.f32.xlu0 %v6003_v62 }
 0x874   : > { %1457 = vadd.xlane.f32.xlu1 %v6004_v27  ;;  %v2394_v24 = vpop.xlane.xlu1 %2393  ;;  %v6009_v27 = vld [vmem:[#allocation35_spill] sm:$0xff] }
 0x875   : > { %v2423_v5 = vsub.f32 %v5428_v48, %v2394_v24  ;;  %v2390_v50 = vpop.xlane.xlu0 %2389 }
 0x876   : > { %v2421_v10 = vsub.f32 %v5433_v63, %v2390_v50  ;;  %977 = vadd.xlane.f32.xlu0 %v6005_v26 }
 0x877   : > { %v2441_v51 = vmul.f32 1.442695, %v2423_v5 }
 0x878   : > { %1445 = vadd.xlane.f32.xlu1 %v6006_v17  ;;  %v2396_v30 = vpop.xlane.xlu1 %2395  ;;  %v2437_v54 = vmul.f32 1.442695, %v2421_v10  ;;  %v6010_v10 = vld [vmem:[#allocation27_spill] sm:$0xff] }
 0x879   : > { %3837 = vpow2.f32 %v2441_v51  ;;  %v2424_v23 = vsub.f32 %v5440_v0, %v2396_v30  ;;  %v6011_v30 = vld [vmem:[#allocation37_spill] sm:$0xff] }
 0x87a   : > { %3839 = vpow2.f32 %v2437_v54 }
 0x87c   : > { %1461 = vadd.xlane.f32.xlu1 %v6007_v56  ;;  %v2392_v6 = vpop.xlane.xlu1 %2391 }
 0x87d   : > { %v2422_v29 = vsub.f32 %v5446_v28, %v2392_v6  ;;  %v2398_v58 = vpop.xlane.xlu0 %2397 }
 0x87e   : > { %v2425_v4 = vsub.f32 %v5451_v61, %v2398_v58  ;;  %v2443_v61 = vmul.f32 1.442695, %v2424_v23 }
 0x87f   : > { %v2439_v57 = vmul.f32 1.442695, %v2422_v29 }
 0x880   : > { %1964 = vadd.xlane.f32.xlu1 %v5324_v9  ;;  %v2402_v2 = vpop.xlane.xlu1 %2401  ;;  %v2445_v12 = vmul.f32 1.442695, %v2425_v4 }
 0x881   : > { %3841 = vpow2.f32 %v2439_v57  ;;  %v2427_v1 = vsub.f32 %v5458_v25, %v2402_v2 }
 0x883   : > { %v3838_v55 = vpop.eup %3837  ;;  %v2449_v16 = vmul.f32 1.442695, %v2427_v1 }
 0x884   : > { %1980 = vadd.xlane.f32.xlu1 %v5377_v45  ;;  %2473 = vadd.xlane.f32.xlu0 %v3838_v55  ;;  %v2404_v3 = vpop.xlane.xlu1 %2403  ;;  %v3840_v48 = vpop.eup %3839 }
 0x885   : > { %3843 = vpow2.f32 %v2449_v16  ;;  %v2428_v0 = vsub.f32 %v5464_v18, %v2404_v3  ;;  %v6012_v3 = vld [vmem:[#allocation34_spill] sm:$0xff] }
 0x886   : > { %v2412_v63 = vpop.xlane.xlu0 %2411  ;;  %3845 = vpow2.f32 %v2445_v12  ;;  %v6013_v12 = vld [vmem:[#allocation40_spill] sm:$0xff] }
 0x887   : > { %3847 = vpow2.f32 %v2443_v61  ;;  %v2451_v37 = vmul.f32 1.442695, %v2428_v0  ;;  %v6014_v61 = vld [vmem:[#allocation32_spill] sm:$0xff] }
 0x888   : > { %1968 = vadd.xlane.f32.xlu1 %v5335_v46  ;;  %2469 = vadd.xlane.f32.xlu0 %v3840_v48  ;;  %v2400_v9 = vpop.xlane.xlu1 %2399 }
 0x889   : > { %v2426_v28 = vsub.f32 %v5476_v41, %v2400_v9 }
 0x88a   : > { %v2408_v25 = vpop.xlane.xlu0 %2407 }
 0x88b   : > { %v3842_v15 = vpop.eup %3841  ;;  %v2447_v35 = vmul.f32 1.442695, %v2426_v28  ;;  %v2430_v32 = vsub.f32 %v5482_v20, %v2408_v25  ;;  %v2432_v20 = vsub.f32 %v5470_v44, %v2412_v63 }
 0x88c   : > { %1984 = vadd.xlane.f32.xlu1 %v5375_v31  ;;  %v2410_v45 = vpop.xlane.xlu1 %2409  ;;  %v2501_v14 = vpack.c.bf16 %v3842_v15, %v3840_v48 }
 0x88d   : > { %v2431_v33 = vsub.f32 %v5488_v7, %v2410_v45  ;;  %3849 = vpow2.f32 %v2447_v35  ;;  %v2455_v24 = vmul.f32 1.442695, %v2430_v32  ;;  %v2459_v17 = vmul.f32 1.442695, %v2432_v20  ;;  %v6015_v45 = vld [vmem:[#allocation39_spill] sm:$0xff] }
 0x88e   : > { %v2420_v36 = vpop.xlane.xlu0 %2419  ;;  %3526 = vmatprep.mubr.bf16.mxu0 %v2501_v14 }
 0x88f   : > { %v3844_v46 = vpop.eup %3843  ;;  %v2457_v39 = vmul.f32 1.442695, %v2431_v33  ;;  %v2436_v4 = vsub.f32 %v5494_v43, %v2420_v36 }
 0x890   : > { %959 = vadd.xlane.f32.xlu1 %v6008_v47  ;;  %2481 = vadd.xlane.f32.xlu0 %v3844_v46  ;;  %v2406_v41 = vpop.xlane.xlu1 %2405  ;;  %v3846_v7 = vpop.eup %3845 }
 0x891   : > { %3851 = vpow2.f32 %v2457_v39  ;;  %v2429_v31 = vsub.f32 %v5500_v19, %v2406_v41  ;;  %v3848_v50 = vpop.eup %3847  ;;  %v2467_v1 = vmul.f32 1.442695, %v2436_v4  ;;  %v6022_v4 = vld [vmem:[#allocation31_spill] sm:$0xff] }
 0x892   : > { %v2416_v38 = vpop.xlane.xlu0 %2415  ;;  %v2502_v51 = vpack.c.bf16 %v3848_v50, %v3838_v55 }
 0x893   : > { %v2453_v62 = vmul.f32 1.442695, %v2429_v31  ;;  %v2434_v55 = vsub.f32 %v5506_v34, %v2416_v38  ;;  %v6016_v38 = vld [vmem:[#allocation58_spill] sm:$0xff] }
 0x894   : > { %975 = vadd.xlane.f32.xlu1 %v6009_v27  ;;  %2477 = vadd.xlane.f32.xlu0 %v3846_v7  ;;  %v2522_v18 = vpop.permute.xlu1 %2521 }
 0x895   : > { %3853 = vpow2.f32 %v2453_v62  ;;  %3522 = vmatprep.subr.bf16.mxu0 %v2522_v18  ;;  %v2463_v16 = vmul.f32 1.442695, %v2434_v55  ;;  %v6017_v62 = vld [vmem:[#allocation60_spill] sm:$0xff]  ;;  %v6023_v55 = vld [vmem:[#allocation19_spill] sm:$0xff] }
 0x896   : > { %3855 = vpow2.f32 %v2451_v37  ;;  %v2524_v5 = vpop.permute.xlu0 %2523  ;;  %3523 = vmatpush3.bf16.msra.mxu0 %v2522_v18 }
 0x897   : > { %3524 = vmatprep.subr.bf16.mxu0 %v2524_v5  ;;  %v3850_v19 = vpop.eup %3849  ;;  %3857 = vpow2.f32 %v2455_v24 }
 0x898   : > { %963 = vadd.xlane.f32.xlu1 %v6010_v10  ;;  %v2503_v54 = vpack.c.bf16 %v3850_v19, %v3846_v7  ;;  %3859 = vpow2.f32 %v2459_v17 }
 0x899   : > { %3861 = vpow2.f32 %v2467_v1 }
 0x89a   : > { %3525 = vmatpush3.bf16.msra.mxu0 %v2524_v5  ;;  %3863 = vpow2.f32 %v2463_v16 }
 0x89b   : > { %v3852_v26 = vpop.eup %3851 }
 0x89c   : > { %979 = vadd.xlane.f32.xlu1 %v6011_v30  ;;  %2489 = vadd.xlane.f32.xlu0 %v3852_v26  ;;  %v6020_v30 = vld [vmem:[#allocation68_spill] sm:$0xff] }
 0x89d   : > { %3527 = vmatmul.mubr.bf16.vlgmr.msra.gmra.mrb[80].mxu0 %v2502_v51  ;;  %v6019_v51 = vld [vmem:[#allocation66_spill] sm:$0xff] }
 0x89e   : > { %3530 = vmatprep.mubr.bf16.mxu0 %v2503_v54 }
 0x89f   : > { %v3854_v56 = vpop.eup %3853 }
 0x8a0   : > { %v3856_v6 = vpop.eup %3855  ;;  %2475 = vadd.xlane.f32.xlu1 %v3848_v50  ;;  %2485 = vadd.xlane.f32.xlu0 %v3854_v56 }
 0x8a1   : > { %v3858_v44 = vpop.eup %3857  ;;  %v2504_v29 = vpack.c.bf16 %v3856_v6, %v3844_v46 }
 0x8a2   : > { %v2505_v58 = vpack.c.bf16 %v3858_v44, %v3854_v56  ;;  %v3860_v57 = vpop.eup %3859 }
 0x8a3   : > { %v2506_v2 = vpack.c.bf16 %v3860_v57, %v3852_v26  ;;  %v3862_v23 = vpop.eup %3861 }
 0x8a4   : > { %2471 = vadd.xlane.f32.xlu1 %v3842_v15  ;;  %v3864_v63 = vpop.eup %3863 }
 0x8a5   : > { %3531 = vmatmul.mubr.bf16.gmra.mrb[84].mxu0 %v2504_v29 }
 0x8a6   : > { %3534 = vmatprep.mubr.bf16.mxu0 %v2505_v58 }
 0x8a8   : > { %2483 = vadd.xlane.f32.xlu1 %v3856_v6 }
 0x8ac   : > { %2479 = vadd.xlane.f32.xlu1 %v3850_v19  ;;  %v6018_v19 = vld [vmem:[#allocation30_spill] sm:$0xff] }
 0x8ad   : > { %3535 = vmatmul.mubr.bf16.gmra.mrb[88].mxu0 %v2506_v2 }
 0x8b0   : > { %2491 = vadd.xlane.f32.xlu1 %v3860_v57 }
 0x8b4   : > { %2487 = vadd.xlane.f32.xlu1 %v3858_v44  ;;  %v6021_v44 = vld [vmem:[#allocation38_spill] sm:$0xff] }
 0x8b8   : > { %967 = vadd.xlane.f32.xlu1 %v6012_v3  ;;  %v6024_v3 = vld [vmem:[#allocation59_spill] sm:$0xff] }
 0x8bc   : > { %983 = vadd.xlane.f32.xlu1 %v6013_v12 }
 0x8c0   : > { %2499 = vadd.xlane.f32.xlu1 %v3862_v23 }
 0x8c4   : > { %2495 = vadd.xlane.f32.xlu1 %v3864_v63 }
 0x8c5   : > { %v2414_v48 = vpop.xlane.xlu1 %2413 }
 0x8c6   : > { %v2433_v43 = vsub.f32 %v5516_v21, %v2414_v48  ;;  %v6025_v48 = vld [vmem:[#allocation41_spill] sm:$0xff] }
 0x8c7   : > { %v1434_v9 = vpop.xlane.xlu0 %1433 }
 0x8c8   : > { %v2461_v28 = vmul.f32 1.442695, %v2433_v43  ;;  %971 = vadd.xlane.f32.xlu1 %v6014_v61 }
 0x8c9   : > { %v2418_v34 = vpop.xlane.xlu1 %2417 }
 0x8ca   : > { %3865 = vpow2.f32 %v2461_v28  ;;  %v2435_v25 = vsub.f32 %v5523_v40, %v2418_v34 }
 0x8cb   : > { %v1971_v15 = vpop.xlane.xlu0 %1970  ;;  %3867 = vrcp.f32 %v1434_v9 }
 0x8cc   : > { %v2465_v35 = vmul.f32 1.442695, %v2435_v25  ;;  %987 = vadd.xlane.f32.xlu1 %v6015_v45  ;;  %v6026_v25 = vld [vmem:[#allocation65_spill] sm:$0xff]  ;;  %v6027_v45 = vld [vmem:[#allocation67_spill] sm:$0xff] }
 0x8cd   : > { %v1432_v14 = vpop.xlane.xlu1 %1431 }
 0x8ce   : > { %3869 = vpow2.f32 %v2465_v35 }
 0x8cf   : > { %3871 = vrcp.f32 %v1432_v14  ;;  %v1959_v33 = vpop.xlane.xlu0 %1958 }
 0x8d1   : > { %v1448_v0 = vpop.xlane.xlu1 %1447 }
 0x8d2   : > { %3873 = vrcp.f32 %v1448_v0 }
 0x8d3   : > { %v5585_v36 = vpop.xlane.xlu0 %1974 }
 0x8d4   : > { %v3866_v21 = vpop.eup %3865 }
 0x8d5   : > { %v1450_v46 = vpop.xlane.xlu1 %1449  ;;  %v2507_v39 = vpack.c.bf16 %v3864_v63, %v3866_v21  ;;  %v3868_v47 = vpop.eup %3867 }
 0x8d6   : > { %3875 = vrcp.f32 %v1450_v46  ;;  %v5593_v27 = vmul.f32 %v3868_v47, %v6017_v62 }
 0x8d7   : > { %v5587_v41 = vpop.xlane.xlu0 %1439  ;;  %3538 = vmatprep.mubr.bf16.mxu0 %v2507_v39 }
 0x8d8   : > { %v3870_v40 = vpop.eup %3869 }
 0x8d9   : > { %v3872_v32 = vpop.eup %3871  ;;  %2497 = vadd.xlane.f32.xlu0 %v3870_v40  ;;  %v1436_v31 = vpop.xlane.xlu1 %1435  ;;  %v2508_v37 = vpack.c.bf16 %v3862_v23, %v3870_v40 }
 0x8da   : > { %v5590_v7 = vmul.f32 %v3872_v32, %v6016_v38  ;;  %3877 = vrcp.f32 %v1436_v31 }
 0x8db   : > { %v5595_v18 = vpop.xlane.xlu0 %1455  ;;  %3539 = vmatmul.mubr.bf16.gmra.mrb[92].mxu0 %v2508_v37 }
 0x8dc   : > { %v1632_v24 = vpack.c.bf16 %v5593_v27, %v5590_v7  ;;  %v3874_v50 = vpop.eup %3873  ;;  %v6028_v27 = vld [vmem:[#allocation62_spill] sm:$0xff] }
 0x8dd   : > { %2493 = vadd.xlane.f32.xlu0 %v3866_v21  ;;  %v1438_v5 = vpop.xlane.xlu1 %1437  ;;  %v1624_v17 = vmul.f32 %v3874_v50, %v6019_v51 }
 0x8de   : > { %3879 = vrcp.f32 %v1438_v5 }
 0x8df   : > { %v5599_v20 = vpop.xlane.xlu0 %1443 }
 0x8e0   : > { %v3876_v10 = vpop.eup %3875 }
 0x8e1   : > { %965 = vadd.xlane.f32.xlu0 %v6018_v19  ;;  %v1452_v26 = vpop.xlane.xlu1 %1451  ;;  %v1625_v54 = vmul.f32 %v3876_v10, %v6020_v30 }
 0x8e2   : > { %3881 = vrcp.f32 %v1452_v26 }
 0x8e3   : > { %v5604_v56 = vpop.xlane.xlu0 %1459  ;;  %v1636_v6 = vpack.c.bf16 %v1625_v54, %v1624_v17 }
 0x8e4   : > { %v3878_v58 = vpop.eup %3877 }
 0x8e5   : > { %981 = vadd.xlane.f32.xlu0 %v6021_v44  ;;  %1656 = vrot.lane.b32.xlu1 %v1636_v6, %s4167_s30  ;;  %v1454_v29 = vpop.xlane.xlu1 %1453  ;;  %v1618_v16 = vmul.f32 %v3878_v58, %v6023_v55  ;;  %v6029_v6 = vld [vmem:[#allocation64_spill] sm:$0xff]  ;;  %v6030_v58 = vld [vmem:[#allocation70_spill] sm:$0xff] }
 0x8e6   : > { %3883 = vrcp.f32 %v1454_v29 }
 0x8e7   : > { %v5608_v57 = vpop.xlane.xlu0 %1962 }
 0x8e8   : > { %v3880_v2 = vpop.eup %3879 }
 0x8e9   : > { %969 = vadd.xlane.f32.xlu0 %v6022_v4  ;;  %v1955_v1 = vpop.xlane.xlu1 %1954  ;;  %v1619_v12 = vmul.f32 %v3880_v2, %v6024_v3  ;;  %v6031_v4 = vld [vmem:[#allocation72_spill] sm:$0xff] }
 0x8ea   : > { %3885 = vrcp.f32 %v1955_v1 }
 0x8eb   : > { %v5613_v23 = vpop.xlane.xlu0 %1978  ;;  %v1633_v63 = vpack.c.bf16 %v1619_v12, %v1618_v16  ;;  %v6032_v12 = vld [vmem:[#allocation61_spill] sm:$0xff] }
 0x8ec   : > { %v3882_v9 = vpop.eup %3881 }
 0x8ed   : > { %985 = vadd.xlane.f32.xlu0 %v6025_v48  ;;  %1650 = vrot.lane.b32.xlu1 %v1633_v63, %s4167_s30  ;;  %v1957_v43 = vpop.xlane.xlu1 %1956  ;;  %v1626_v35 = vmul.f32 %v3882_v9, %v6026_v25  ;;  %v6033_v48 = vld [vmem:[#allocation63_spill] sm:$0xff]  ;;  %v6034_v25 = vld [vmem:[#allocation69_spill] sm:$0xff] }
 0x8ee   : > { %3887 = vrcp.f32 %v1957_v43 }
 0x8ef   : > { %3889 = vrcp.f32 %v1971_v15  ;;  %v1967_v28 = vpop.xlane.xlu0 %1966 }
 0x8f0   : > { %v3884_v61 = vpop.eup %3883  ;;  %3891 = vrcp.f32 %v1967_v28 }
 0x8f1   : > { %v1973_v34 = vpop.xlane.xlu1 %1972  ;;  %v1627_v14 = vmul.f32 %v3884_v61, %v6027_v45  ;;  %v6035_v45 = vld [vmem:[#allocation71_spill] sm:$0xff] }
 0x8f2   : > { %3893 = vrcp.f32 %v1973_v34 }
 0x8f3   : > { %3895 = vrcp.f32 %v1959_v33  ;;  %v1983_v0 = vpop.xlane.xlu0 %1982  ;;  %v1637_v21 = vpack.c.bf16 %v1627_v14, %v1626_v35 }
 0x8f4   : > { %3897 = vrcp.f32 %v1983_v0  ;;  %v3886_v39 = vpop.eup %3885 }
 0x8f5   : > { %v1961_v46 = vpop.xlane.xlu1 %1960  ;;  %v2131_v32 = vmul.f32 %v3886_v39, %v5395_v42  ;;  %v6036_v39 = vld [vmem:[#allocation22_spill] sm:$0xff] }
 0x8f6   : > { %3899 = vrcp.f32 %v1961_v46 }
 0x8f7   : > { %3901 = vrcp.f32 %v5585_v36  ;;  %v958_v61 = vpop.xlane.xlu0 %957 }
 0x8f8   : > { %v3888_v47 = vpop.eup %3887 }
 0x8f9   : > { %v3890_v15 = vpop.eup %3889  ;;  %v1977_v40 = vpop.xlane.xlu1 %1976  ;;  %v2132_v31 = vmul.f32 %v3888_v47, %v5399_v13 }
 0x8fa   : > { %v3892_v37 = vpop.eup %3891  ;;  %3903 = vrcp.f32 %v1977_v40  ;;  %v2139_v36 = vmul.f32 %v3890_v15, %v5411_v49  ;;  %v6037_v15 = vld [vmem:[#allocation16_spill] sm:$0xff] }
 0x8fb   : > { %v2147_v38 = vpack.c.bf16 %v2132_v31, %v2131_v32  ;;  %v5623_v33 = vmul.f32 %v3892_v37, %v5401_v11  ;;  %3905 = vrcp.f32 %v5587_v41  ;;  %v974_v32 = vpop.xlane.xlu0 %973 }
 0x8fc   : > { %v3894_v62 = vpop.eup %3893 }
 0x8fd   : > { %v3896_v5 = vpop.eup %3895  ;;  %2163 = vrot.lane.b32.xlu1 %v2147_v38, %s4166_s23  ;;  %v1442_v50 = vpop.xlane.xlu1 %1441  ;;  %v2140_v10 = vmul.f32 %v3894_v62, %v5415_v22 }
 0x8fe   : > { %v3898_v42 = vpop.eup %3897  ;;  %3907 = vrcp.f32 %v1442_v50  ;;  %v2133_v41 = vmul.f32 %v3896_v5, %v5393_v52  ;;  %v6038_v5 = vld [vmem:[#allocation20_spill] sm:$0xff] }
 0x8ff   : > { %v2151_v13 = vpack.c.bf16 %v2140_v10, %v2139_v36  ;;  %v5630_v19 = vmul.f32 %v3898_v42, %v5417_v59  ;;  %3909 = vrcp.f32 %v5595_v18  ;;  %v6039_v36 = vld [vmem:[#allocation21_spill] sm:$0xff]  ;;  %v962_v42 = vpop.xlane.xlu0 %961 }
 0x900   : > { %v3900_v26 = vpop.eup %3899 }
 0x901   : > { %v1458_v11 = vpop.xlane.xlu1 %1457  ;;  %v2134_v51 = vmul.f32 %v3900_v26, %v5397_v53  ;;  %v3902_v17 = vpop.eup %3901 }
 0x902   : > { %3911 = vrcp.f32 %v1458_v11  ;;  %v2141_v18 = vmul.f32 %v3902_v17, %v5409_v8 }
 0x903   : > { %1648 = vrot.lane.b32.xlu0 %v1632_v24, %s4167_s30  ;;  %v2148_v49 = vpack.c.bf16 %v2134_v51, %v2133_v41  ;;  %3913 = vrcp.f32 %v5599_v20  ;;  %v6040_v41 = vld [vmem:[#allocation25_spill] sm:$0xff] }
 0x904   : > { %v3904_v22 = vpop.eup %3903 }
 0x905   : > { %2165 = vrot.lane.b32.xlu1 %v2148_v49, %s4166_s23  ;;  %v1446_v59 = vpop.xlane.xlu1 %1445  ;;  %v2142_v52 = vmul.f32 %v3904_v22, %v5413_v60  ;;  %v3906_v30 = vpop.eup %3905 }
 0x906   : > { %3915 = vrcp.f32 %v1446_v59  ;;  %v1620_v24 = vmul.f32 %v3906_v30, %v6028_v27  ;;  %v6041_v59 = vld [vmem:[#allocation18_spill] sm:$0xff]  ;;  %v6042_v27 = vld [vmem:[#allocation43_spill] sm:$0xff] }
 0x907   : > { %1658 = vrot.lane.b32.xlu0 %v1637_v21, %s4167_s30  ;;  %v2152_v53 = vpack.c.bf16 %v2142_v52, %v2141_v18  ;;  %3917 = vrcp.f32 %v5604_v56  ;;  %v978_v52 = vpop.xlane.xlu0 %977 }
 0x908   : > { %v3908_v54 = vpop.eup %3907 }
 0x909   : > { %v1462_v7 = vpop.xlane.xlu1 %1461  ;;  %v1621_v20 = vmul.f32 %v3908_v54, %v6029_v6  ;;  %v3910_v44 = vpop.eup %3909  ;;  %v6043_v6 = vld [vmem:[#allocation45_spill] sm:$0xff] }
 0x90a   : > { %3919 = vrcp.f32 %v1462_v7  ;;  %v1628_v2 = vmul.f32 %v3910_v44, %v6030_v58 }
 0x90b   : > { %2171 = vrot.lane.b32.xlu0 %v2151_v13, %s4166_s23  ;;  %v1634_v8 = vpack.c.bf16 %v1621_v20, %v1620_v24  ;;  %3921 = vrcp.f32 %v5608_v57 }
 0x90c   : > { %v3912_v29 = vpop.eup %3911 }
 0x90d   : > { %1652 = vrot.lane.b32.xlu1 %v1634_v8, %s4167_s30  ;;  %v1965_v60 = vpop.xlane.xlu1 %1964  ;;  %v1629_v56 = vmul.f32 %v3912_v29, %v6031_v4  ;;  %v3914_v1 = vpop.eup %3913 }
 0x90e   : > { %3923 = vrcp.f32 %v1965_v60  ;;  %v1622_v63 = vmul.f32 %v3914_v1, %v6032_v12 }
 0x90f   : > { %2173 = vrot.lane.b32.xlu0 %v2152_v53, %s4166_s23  ;;  %v1638_v55 = vpack.c.bf16 %v1629_v56, %v1628_v2  ;;  %3925 = vrcp.f32 %v5613_v23  ;;  %v6044_v2 = vld [vmem:[#allocation51_spill] sm:$0xff]  ;;  %v6045_v56 = vld [vmem:[#allocation53_spill] sm:$0xff] }
 0x910   : > { %v3916_v16 = vpop.eup %3915 }
 0x911   : > { %v1981_v3 = vpop.xlane.xlu1 %1980  ;;  %v1623_v57 = vmul.f32 %v3916_v16, %v6033_v48  ;;  %v3918_v43 = vpop.eup %3917 }
 0x912   : > { %3927 = vrcp.f32 %v1981_v3  ;;  %v1630_v35 = vmul.f32 %v3918_v43, %v6034_v25  ;;  %v6047_v3 = vld [vmem:[#allocation42_spill] sm:$0xff] }
 0x913   : > { %1660 = vrot.lane.b32.xlu0 %v1638_v55, %s4167_s30  ;;  %v1635_v9 = vpack.c.bf16 %v1623_v57, %v1622_v63  ;;  %v6048_v63 = vld [vmem:[#allocation44_spill] sm:$0xff] }
 0x914   : > { %v3920_v28 = vpop.eup %3919 }
 0x915   : > { %1654 = vrot.lane.b32.xlu1 %v1635_v9, %s4167_s30  ;;  %v1969_v34 = vpop.xlane.xlu1 %1968  ;;  %v1631_v14 = vmul.f32 %v3920_v28, %v6035_v45  ;;  %v3922_v23 = vpop.eup %3921 }
 0x916   : > { %3929 = vrcp.f32 %v1969_v34  ;;  %v2135_v47 = vmul.f32 %v3922_v23, %v6036_v39  ;;  %v6051_v34 = vld [vmem:[#allocation50_spill] sm:$0xff]  ;;  %v3735_v39 = vld [vmem:[#allocation8 + $0x10] sm:$0xff]  }
 0x917   : > { %v1639_v0 = vpack.c.bf16 %v1631_v14, %v1630_v35  ;;  %v6052_v35 = vld [vmem:[#allocation52_spill] sm:$0xff] }
 0x918   : > { %v3924_v21 = vpop.eup %3923 }
 0x919   : > { %1662 = vrot.lane.b32.xlu0 %v1639_v0, %s4167_s30  ;;  %v1985_v46 = vpop.xlane.xlu1 %1984  ;;  %v2136_v40 = vmul.f32 %v3924_v21, %v6037_v15  ;;  %v3926_v31 = vpop.eup %3925  ;;  %v3733_v0 = vld [vmem:[#allocation8] sm:$0xff]   ;;  %v3734_v21 = vld [vmem:[#allocation8 + $0x8] sm:$0xff]   ;;  %v3736_v15 = vld [vmem:[#allocation8 + $0x18] sm:$0xff]  }
 0x91a   : > { %3931 = vrcp.f32 %v1985_v46  ;;  %v2143_v50 = vmul.f32 %v3926_v31, %v6038_v5  ;;  %3542 = vmatprep.subr.bf16.mxu0 %v3733_v0  ;;  %3574 = vmatprep.subr.bf16.mxu1 %v3733_v0  ;;  %v2474_v31 = vpop.xlane.xlu0 %2473 }
 0x91b   : > { %v2149_v37 = vpack.c.bf16 %v2136_v40, %v2135_v47  ;;  %3933 = vrcp.f32 %v958_v61  ;;  %3543 = vmatpush3.bf16.msra.mxu0 %v3733_v0  ;;  %3582 = vmatpush3.bf16.msra.mxu1 %v3733_v0 }
 0x91c   : > { %v3928_v38 = vpop.eup %3927  ;;  %3544 = vmatprep.subr.bf16.mxu0 %v3734_v21  ;;  %3575 = vmatprep.subr.bf16.mxu1 %v3734_v21 }
 0x91d   : > { %2167 = vrot.lane.b32.xlu1 %v2149_v37, %s4166_s23  ;;  %v960_v62 = vpop.xlane.xlu1 %959  ;;  %v2144_v10 = vmul.f32 %v3928_v38, %v6039_v36 }
 0x91e   : > { %3935 = vrcp.f32 %v960_v62  ;;  %v2470_v62 = vpop.xlane.xlu0 %2469 }
 0x91f   : > { %v2153_v13 = vpack.c.bf16 %v2144_v10, %v2143_v50  ;;  %3937 = vrcp.f32 %v974_v32  ;;  %3545 = vmatpush3.bf16.msra.mxu0 %v3734_v21  ;;  %3583 = vmatpush3.bf16.msra.mxu1 %v3734_v21  ;;  %v3737_v32 = vld [vmem:[#allocation8 + $0x20] sm:$0xff]  }
 0x920   : > { %v3930_v26 = vpop.eup %3929  ;;  %3546 = vmatprep.subr.bf16.mxu0 %v3735_v39  ;;  %3576 = vmatprep.subr.bf16.mxu1 %v3735_v39 }
 0x921   : > { %v976_v11 = vpop.xlane.xlu1 %975  ;;  %2175 = vrot.lane.b32.xlu0 %v2153_v13, %s4166_s23  ;;  %v5668_v51 = vmul.f32 %v3930_v26, %v6040_v41 }
 0x922   : > { %3939 = vrcp.f32 %v976_v11  ;;  %v2482_v50 = vpop.xlane.xlu0 %2481 }
 0x923   : > { %3941 = vrcp.f32 %v962_v42  ;;  %v2150_v49 = vpack.c.bf16 %v5668_v51, %v5623_v33  ;;  %3547 = vmatpush3.bf16.msra.mxu0 %v3735_v39  ;;  %3584 = vmatpush3.bf16.msra.mxu1 %v3735_v39 }
 0x924   : > { %v3932_v17 = vpop.eup %3931  ;;  %3548 = vmatprep.subr.bf16.mxu0 %v3736_v15  ;;  %3577 = vmatprep.subr.bf16.mxu1 %v3736_v15 }
 0x925   : > { %v964_v22 = vpop.xlane.xlu1 %963  ;;  %v5673_v18 = vmul.f32 %v3932_v17, %v6041_v59  ;;  %v3934_v30 = vpop.eup %3933  ;;  %v3738_v59 = vld [vmem:[#allocation8 + $0x28] sm:$0xff]  }
 0x926   : > { %3943 = vrcp.f32 %v964_v22  ;;  %v1110_v24 = vmul.f32 %v3934_v30, %v6042_v27  ;;  %v2478_v10 = vpop.xlane.xlu0 %2477  ;;  %v3739_v30 = vld [vmem:[#allocation8 + $0x30] sm:$0xff]  }
 0x927   : > { %v2154_v53 = vpack.c.bf16 %v5673_v18, %v5630_v19  ;;  %3945 = vrcp.f32 %v978_v52  ;;  %3549 = vmatpush3.bf16.msra.mxu0 %v3736_v15  ;;  %3585 = vmatpush3.bf16.msra.mxu1 %v3736_v15 }
 0x928   : > { %v3936_v54 = vpop.eup %3935  ;;  %3550 = vmatprep.subr.bf16.mxu0 %v3737_v32  ;;  %3578 = vmatprep.subr.bf16.mxu1 %v3737_v32 }
 0x929   : > { %v980_v7 = vpop.xlane.xlu1 %979  ;;  %v1111_v20 = vmul.f32 %v3936_v54, %v6043_v6  ;;  %v3938_v44 = vpop.eup %3937 }
 0x92a   : > { %3947 = vrcp.f32 %v980_v7  ;;  %v1118_v4 = vmul.f32 %v3938_v44, %v6044_v2  ;;  %v2490_v13 = vpop.xlane.xlu0 %2489 }
 0x92b   : > { %v1126_v8 = vpack.c.bf16 %v1111_v20, %v1110_v24  ;;  %3551 = vmatpush3.bf16.msra.mxu0 %v3737_v32  ;;  %3586 = vmatpush3.bf16.msra.mxu1 %v3737_v32  ;;  %3949 = vrcp.f32 %v2474_v31 }
 0x92c   : > { %v3940_v29 = vpop.eup %3939  ;;  %3951 = vrcp.f32 %v2470_v62  ;;  %3552 = vmatprep.subr.bf16.mxu0 %v3738_v59  ;;  %3579 = vmatprep.subr.bf16.mxu1 %v3738_v59 }
 0x92d   : > { %v5679_v60 = vpop.xlane.xlu1 %2475  ;;  %v3942_v58 = vpop.eup %3941  ;;  %v1119_v1 = vmul.f32 %v3940_v29, %v6045_v56  ;;  %1134 = vst.msk [vmem:[#allocation2] sm:$0xff] %vm6046_vm0, %v1126_v8  ;;  %v3740_v8 = vld [vmem:[#allocation8 + $0x38] sm:$0xff]  }
 0x92e   : > { %v1112_v12 = vmul.f32 %v3942_v58, %v6047_v3  ;;  %v2486_v41 = vpop.xlane.xlu0 %2485  ;;  %3953 = vrcp.f32 %v5679_v60 }
 0x92f   : > { %v1130_v16 = vpack.c.bf16 %v1119_v1, %v1118_v4  ;;  %3553 = vmatpush3.bf16.msra.mxu0 %v3738_v59  ;;  %3587 = vmatpush3.bf16.msra.mxu1 %v3738_v59 }
 0x930   : > { %v3944_v55 = vpop.eup %3943  ;;  %3554 = vmatprep.subr.bf16.mxu0 %v3739_v30  ;;  %3580 = vmatprep.subr.bf16.mxu1 %v3739_v30 }
 0x931   : > { %v1113_v48 = vmul.f32 %v3944_v55, %v6048_v63  ;;  %v2472_v57 = vpop.xlane.xlu1 %2471  ;;  %1138 = vst.msk [vmem:[#allocation2 + $0x20] sm:$0xff] %vm6049_vm1, %v1130_v16  ;;  %v3946_v43 = vpop.eup %3945 }
 0x932   : > { %v1120_v25 = vmul.f32 %v3946_v43, %v6051_v34  ;;  %3955 = vrcp.f32 %v2472_v57 }
 0x933   : > { %v1127_v9 = vpack.c.bf16 %v1113_v48, %v1112_v12  ;;  %3957 = vrcp.f32 %v2482_v50  ;;  %3555 = vmatpush3.bf16.msra.mxu0 %v3739_v30  ;;  %3588 = vmatpush3.bf16.msra.mxu1 %v3739_v30 }
 0x934   : > { %v3948_v28 = vpop.eup %3947  ;;  %3959 = vrcp.f32 %v2478_v10  ;;  %3556 = vmatprep.subr.bf16.mxu0 %v3740_v8  ;;  %3581 = vmatprep.subr.bf16.mxu1 %v3740_v8 }
 0x935   : > { %v5687_v61 = vpop.xlane.xlu1 %2483  ;;  %1135 = vst.msk [vmem:[#allocation2 + $0x8] sm:$0xff] %vm6050_vm2, %v1127_v9  ;;  %v1121_v45 = vmul.f32 %v3948_v28, %v6052_v35  ;;  %v3950_v54 = vpop.eup %3949 }
 0x936   : > { %v3952_v27 = vpop.eup %3951 }
 0x937   : > { %v1131_v14 = vpack.c.bf16 %v1121_v45, %v1120_v25  ;;  %3557 = vmatpush3.bf16.msra.mxu0 %v3740_v8  ;;  %3589 = vmatpush3.bf16.msra.mxu1 %v3740_v8  ;;  %v6054_v25 = vld [vmem:[#allocation49_spill] sm:$0xff]  ;;  %v6055_v45 = vld [vmem:[#allocation47_spill] sm:$0xff] }
 0x938   : > { %v3954_v6 = vpop.eup %3953 }
 0x939   : > { %v5692_v23 = vpop.xlane.xlu1 %2479  ;;  %1139 = vst.msk [vmem:[#allocation2 + $0x28] sm:$0xff] %vm6053_vm3, %v1131_v14 }
 0x93c   : > { %v3956_v29 = vpop.eup %3955 }
 0x93d   : > { %v5695_v46 = vpop.xlane.xlu1 %2491  ;;  %v3958_v55 = vpop.eup %3957 }
 0x93e   : > { %v3960_v3 = vpop.eup %3959 }
 0x941   : > { %v5697_v47 = vpop.xlane.xlu1 %2487 }
 0x945   : > { %v968_v40 = vpop.xlane.xlu1 %967 }
 0x946   : > { %3961 = vrcp.f32 %v968_v40 }
 0x947   : > { %3963 = vrcp.f32 %v5687_v61 }
 0x949   : > { %v984_v37 = vpop.xlane.xlu1 %983 }
 0x94d   : > { %v5699_v38 = vpop.xlane.xlu1 %2499 }
 0x950   : > { %v3962_v48 = vpop.eup %3961 }
 0x951   : > { %v5701_v5 = vpop.xlane.xlu1 %2495  ;;  %v3964_v43 = vpop.eup %3963  ;;  %v1115_v35 = vmul.f32 %v3962_v48, %v6054_v25 }
 0x955   : > { %v972_v36 = vpop.xlane.xlu1 %971 }
 0x959   : > { %v5703_v42 = vpop.xlane.xlu1 %987 }
 0x95d   : > { %v1657_v26 = vpop.permute.xlu1 %1656 }
 0x95e   : > { %1677 = vst.msk [vmem:[#allocation2 + $0x20] sm:$0xff] %vm1672_vm4, %v1657_v26 }
 0x961   : > { %v1651_v11 = vpop.permute.xlu1 %1650 }
 0x962   : > { %1674 = vst.msk [vmem:[#allocation2 + $0x8] sm:$0xff] %vm1672_vm4, %v1651_v11 }
 0x966   : > { %v5707_v17 = vpop.xlane.xlu0 %2497 }
 0x96a   : > { %v5710_v22 = vpop.xlane.xlu0 %2493 }
 0x96e   : > { %v966_v52 = vpop.xlane.xlu0 %965 }
 0x96f   : > { %3965 = vrcp.f32 %v966_v52  ;;  %v2164_v60 = vpop.permute.xlu1 %2163 }
 0x970   : > { %3967 = vrcp.f32 %v5692_v23  ;;  %v3528_v7 = vpop.f32.mrb[80].mxu0 }
 0x971   : > { %3969 = vrcp.f32 %v984_v37  ;;  %v2567_v24 = vpop.f32.mrb[81].mxu0  ;;  %v2648_v58 = vmul.f32 %v3950_v54, %v3528_v7 }
 0x972   : > { %3971 = vrcp.f32 %v2490_v13  ;;  %v3529_v20 = vpop.f32.mrb[82].mxu0  ;;  %v982_v44 = vpop.xlane.xlu0 %981  ;;  %v2646_v56 = vmul.f32 %v3952_v27, %v2567_v24 }
 0x973   : > { %v2649_v2 = vmul.f32 %v3954_v6, %v3529_v20  ;;  %3973 = vrcp.f32 %v982_v44  ;;  %v2570_v4 = vpop.f32.mrb[83].mxu0  ;;  %v6059_v6 = vld [vmem:[#allocation48_spill] sm:$0xff]  ;;  %v6060_v44 = vld [vmem:[#allocation46_spill] sm:$0xff] }
 0x974   : > { %3975 = vrcp.f32 %v2486_v41  ;;  %v2647_v1 = vmul.f32 %v3956_v29, %v2570_v4 }
 0x975   : > { %3977 = vrcp.f32 %v972_v36  ;;  %v2663_v16 = vpack.c.bf16 %v2649_v2, %v2648_v58  ;;  %v6056_v36 = vld [vmem:[#allocation57_spill] sm:$0xff] }
 0x976   : > { %3979 = vrcp.f32 %v5695_v46  ;;  %v2662_v12 = vpack.c.bf16 %v2647_v1, %v2646_v56  ;;  %v970_v63 = vpop.xlane.xlu0 %969 }
 0x977   : > { %3981 = vrcp.f32 %v970_v63  ;;  %2680 = vrot.lane.b32.xlu1 %v2663_v16, %s4165_s21  ;;  %v2166_v57 = vpop.permute.xlu1 %2165  ;;  %v6062_v16 = vld [vmem:[#allocation56_spill] sm:$0xff] }
 0x978   : > { %3983 = vrcp.f32 %v5697_v47  ;;  %2189 = vst.msk [vmem:[#allocation2 + $0x8] sm:$0xff] %vm2187_vm5, %v2166_v57  ;;  %v3532_v9 = vpop.f32.mrb[84].mxu0 }
 0x979   : > { %v3966_v28 = vpop.eup %3965  ;;  %3985 = vrcp.f32 %v5703_v42  ;;  %v2583_v61 = vpop.f32.mrb[85].mxu0  ;;  %v2652_v46 = vmul.f32 %v3958_v55, %v3532_v9  ;;  %v6057_v42 = vld [vmem:[#allocation55_spill] sm:$0xff] }
 0x97a   : > { %v3968_v34 = vpop.eup %3967  ;;  %v1114_v14 = vmul.f32 %v3966_v28, %v6055_v45  ;;  %v3533_v23 = vpop.f32.mrb[86].mxu0  ;;  %v2650_v40 = vmul.f32 %v3960_v3, %v2583_v61 }
 0x97b   : > { %v986_v0 = vpop.xlane.xlu0 %985  ;;  %v3970_v21 = vpop.eup %3969  ;;  %v2653_v39 = vmul.f32 %v3964_v43, %v3533_v23  ;;  %2678 = vrot.lane.b32.xlu1 %v2662_v12, %s4165_s21  ;;  %v6063_v12 = vld [vmem:[#allocation54_spill] sm:$0xff] }
 0x97c   : > { %3987 = vrcp.f32 %v986_v0  ;;  %v2586_v15 = vpop.f32.mrb[87].mxu0  ;;  %v3972_v47 = vpop.eup %3971  ;;  %v1128_v31 = vpack.c.bf16 %v1115_v35, %v1114_v14  ;;  %v1123_v10 = vmul.f32 %v3970_v21, %v6056_v36 }
 0x97d   : > { %v2651_v32 = vmul.f32 %v3968_v34, %v2586_v15  ;;  %v3974_v37 = vpop.eup %3973  ;;  %v2665_v62 = vpack.c.bf16 %v2653_v39, %v2652_v46  ;;  %3989 = vrcp.f32 %v5707_v17 }
 0x97e   : > { %v3976_v50 = vpop.eup %3975  ;;  %v1122_v13 = vmul.f32 %v3974_v37, %v6057_v42  ;;  %1136 = vst.msk [vmem:[#allocation2 + $0x10] sm:$0xff] %vm6058_vm6, %v1128_v31  ;;  %3991 = vrcp.f32 %v5699_v38 }
 0x97f   : > { %v2664_v26 = vpack.c.bf16 %v2651_v32, %v2650_v40  ;;  %v1649_v11 = vpop.permute.xlu0 %1648  ;;  %v3978_v41 = vpop.eup %3977  ;;  %2169 = vrot.lane.b32.xlu1 %v2150_v49, %s4166_s23  ;;  %3993 = vrcp.f32 %v5701_v5 }
 0x980   : > { %1673 = vst.msk [vmem:[#allocation2] sm:$0xff] %vm1672_vm4, %v1649_v11  ;;  %v1653_v59 = vpop.permute.xlu1 %1652  ;;  %v3980_v52 = vpop.eup %3979  ;;  %v1132_v54 = vpack.c.bf16 %v1123_v10, %v1122_v13  ;;  %v1117_v20 = vmul.f32 %v3978_v41, %v6059_v6  ;;  %3995 = vrcp.f32 %v5710_v22 }
 0x981   : > { %2188 = vst.msk [vmem:[#allocation2] sm:$0xff] %vm2187_vm5, %v2164_v60  ;;  %v3536_v30 = vpop.f32.mrb[88].mxu0  ;;  %v3982_v7 = vpop.eup %3981 }
 0x982   : > { %1675 = vst.msk [vmem:[#allocation2 + $0x10] sm:$0xff] %vm1672_vm4, %v1653_v59  ;;  %v2599_v27 = vpop.f32.mrb[89].mxu0  ;;  %v3984_v24 = vpop.eup %3983  ;;  %v1116_v8 = vmul.f32 %v3982_v7, %v6060_v44  ;;  %v2656_v51 = vmul.f32 %v3972_v47, %v3536_v30 }
 0x983   : > { %v3537_v29 = vpop.f32.mrb[90].mxu0  ;;  %v1659_v58 = vpop.permute.xlu0 %1658  ;;  %1140 = vst.msk [vmem:[#allocation2 + $0x30] sm:$0xff] %vm6061_vm7, %v1132_v54  ;;  %2682 = vrot.lane.b32.xlu1 %v2664_v26, %s4165_s21  ;;  %v2654_v2 = vmul.f32 %v3976_v50, %v2599_v27  ;;  %v3078_v54 = vld [vmem:[%s5848_s3] ss:$0 sm:$0xff] }
 0x984   : > { %v3986_v33 = vpop.eup %3985  ;;  %v2657_v49 = vmul.f32 %v3980_v52, %v3537_v29  ;;  %1678 = vst.msk [vmem:[#allocation2 + $0x28] sm:$0xff] %vm1672_vm4, %v1659_v58  ;;  %v2602_v60 = vpop.f32.mrb[91].mxu0  ;;  %v1129_v56 = vpack.c.bf16 %v1117_v20, %v1116_v8 }
 0x985   : > { %v2655_v4 = vmul.f32 %v3984_v24, %v2602_v60  ;;  %v1125_v3 = vmul.f32 %v3986_v33, %v6062_v16 }
 0x986   : > { %v3988_v1 = vpop.eup %3987  ;;  %v2667_v55 = vpack.c.bf16 %v2657_v49, %v2656_v51  ;;  %1137 = vst.msk [vmem:[#allocation2 + $0x18] sm:$0xff] %vm6064_vm8, %v1129_v56 }
 0x987   : > { %v1124_v63 = vmul.f32 %v3988_v1, %v6063_v12  ;;  %v2666_v48 = vpack.c.bf16 %v2655_v4, %v2654_v2  ;;  %v2172_v57 = vpop.permute.xlu0 %2171  ;;  %2684 = vrot.lane.b32.xlu1 %v2665_v62, %s4165_s21  ;;  %v1655_v43 = vpop.permute.xlu1 %1654 }
 0x988   : > { %2192 = vst.msk [vmem:[#allocation2 + $0x20] sm:$0xff] %vm2187_vm5, %v2172_v57  ;;  %2688 = vrot.lane.b32.xlu0 %v2667_v55, %s4165_s21  ;;  %v3990_v45 = vpop.eup %3989 }
 0x989   : > { %1676 = vst.msk [vmem:[#allocation2 + $0x18] sm:$0xff] %vm1672_vm4, %v1655_v43  ;;  %v1133_v9 = vpack.c.bf16 %v1125_v3, %v1124_v63  ;;  %v3992_v18 = vpop.eup %3991 }
 0x98a   : > { %v3994_v23 = vpop.eup %3993 }
 0x98b   : > { %v2174_v28 = vpop.permute.xlu0 %2173  ;;  %1141 = vst.msk [vmem:[#allocation2 + $0x38] sm:$0xff] %vm6065_vm10, %v1133_v9  ;;  %v3996_v21 = vpop.eup %3995 }
 0x98c   : > { %2193 = vst.msk [vmem:[#allocation2 + $0x28] sm:$0xff] %vm2187_vm5, %v2174_v28  ;;  %2686 = vrot.lane.b32.xlu0 %v2666_v48, %s4165_s21 }
 0x98f   : > { %v1661_v61 = vpop.permute.xlu0 %1660  ;;  %v2168_v34 = vpop.permute.xlu1 %2167 }
 0x990   : > { %1679 = vst.msk [vmem:[#allocation2 + $0x30] sm:$0xff] %vm1672_vm4, %v1661_v61  ;;  %2177 = vrot.lane.b32.xlu0 %v2154_v53, %s4166_s23 }
 0x991   : > { %2190 = vst.msk [vmem:[#allocation2 + $0x10] sm:$0xff] %vm2187_vm5, %v2168_v34 }
 0x993   : > { %v1663_v25 = vpop.permute.xlu0 %1662 }
 0x994   : > { %1680 = vst.msk [vmem:[#allocation2 + $0x38] sm:$0xff] %vm1672_vm4, %v1663_v25 }
 0x997   : > { %v2176_v35 = vpop.permute.xlu0 %2175 }
 0x998   : > { %2194 = vst.msk [vmem:[#allocation2 + $0x30] sm:$0xff] %vm2187_vm5, %v2176_v35 }
 0x9ae   : > { %v3540_v19 = vpop.f32.mrb[92].mxu0 }
 0x9af   : > { %v2660_v53 = vmul.f32 %v3990_v45, %v3540_v19  ;;  %v2615_v14 = vpop.f32.mrb[93].mxu0 }
 0x9b0   : > { %v3541_v0 = vpop.f32.mrb[94].mxu0  ;;  %v2658_v15 = vmul.f32 %v3996_v21, %v2615_v14 }
 0x9b1   : > { %v2661_v46 = vmul.f32 %v3992_v18, %v3541_v0  ;;  %v2618_v39 = vpop.f32.mrb[95].mxu0 }
 0x9b2   : > { %v2659_v47 = vmul.f32 %v3994_v23, %v2618_v39 }
 0x9b3   : > { %v2669_v40 = vpack.c.bf16 %v2661_v46, %v2660_v53 }
 0x9b4   : > { %v2668_v17 = vpack.c.bf16 %v2659_v47, %v2658_v15 }
 0x9b6   : > { %2690 = vrot.lane.b32.xlu0 %v2668_v17, %s4165_s21 }
 0x9ba   : > { %2692 = vrot.lane.b32.xlu0 %v2669_v40, %s4165_s21 }
 0x9e9   : > { %v2681_v38 = vpop.permute.xlu1 %2680 }
 0x9ea   : > { %2704 = vst.msk [vmem:[#allocation2 + $0x8] sm:$0xff] %vm2702_vm11, %v2681_v38 }
 0x9ed   : > { %v2679_v5 = vpop.permute.xlu1 %2678 }
 0x9ee   : > { %2703 = vst.msk [vmem:[#allocation2] sm:$0xff] %vm2702_vm11, %v2679_v5 }
 0x9f1   : > { %v2170_v22 = vpop.permute.xlu1 %2169  ;;  %v2712_v37 = vld [vmem:[#allocation2 + $0x8] sm:$0xff] }
 0x9f2   : > { %2191 = vst.msk [vmem:[#allocation2 + $0x18] sm:$0xff] %vm2187_vm5, %v2170_v22 }
 0x9f5   : > { %v2683_v32 = vpop.permute.xlu1 %2682  ;;  %v2711_v31 = vld [vmem:[#allocation2] sm:$0xff] }
 0x9f6   : > { %2705 = vst.msk [vmem:[#allocation2 + $0x10] sm:$0xff] %vm2702_vm11, %v2683_v32  ;;  %3558 = vmatprep.mubr.bf16.mxu0 %v2711_v31 }
 0x9f7   : > { %3559 = vmatmul.mubr.bf16.vlgmr.msra.gmra.mrb[96].mxu0 %v2712_v37 }
 0x9f9   : > { %v2685_v50 = vpop.permute.xlu1 %2684 }
 0x9fa   : > { %v2689_v62 = vpop.permute.xlu0 %2688  ;;  %2706 = vst.msk [vmem:[#allocation2 + $0x18] sm:$0xff] %vm2702_vm11, %v2685_v50 }
 0x9fb   : > { %2708 = vst.msk [vmem:[#allocation2 + $0x28] sm:$0xff] %vm2702_vm11, %v2689_v62 }
 0x9fd   : > { %v2713_v10 = vld [vmem:[#allocation2 + $0x10] sm:$0xff] }
 0x9fe   : > { %v2687_v36 = vpop.permute.xlu0 %2686  ;;  %3562 = vmatprep.mubr.bf16.mxu0 %v2713_v10 }
 0x9ff   : > { %2707 = vst.msk [vmem:[#allocation2 + $0x20] sm:$0xff] %vm2702_vm11, %v2687_v36 }
 0xa01   : > { %v2714_v13 = vld [vmem:[#allocation2 + $0x18] sm:$0xff] }
 0xa02   : > { %v2178_v42 = vpop.permute.xlu0 %2177  ;;  %3563 = vmatmul.mubr.bf16.gmra.mrb[100].mxu0 %v2714_v13  ;;  %v2716_v11 = vld [vmem:[#allocation2 + $0x28] sm:$0xff] }
 0xa03   : > { %2195 = vst.msk [vmem:[#allocation2 + $0x38] sm:$0xff] %vm2187_vm5, %v2178_v42 }
 0xa06   : > { %v2715_v26 = vld [vmem:[#allocation2 + $0x20] sm:$0xff] }
 0xa07   : > { %3566 = vmatprep.mubr.bf16.mxu1 %v2715_v26 }
 0xa08   : > { %3567 = vmatmul.mubr.bf16.vlgmr.msra.gmra.mrb[80].mxu1 %v2716_v11 }
 0xa28   : > { %v2691_v41 = vpop.permute.xlu0 %2690 }
 0xa29   : > { %2709 = vst.msk [vmem:[#allocation2 + $0x30] sm:$0xff] %vm2702_vm11, %v2691_v41 }
 0xa2c   : > { %v2693_v59 = vpop.permute.xlu0 %2692 }
 0xa2d   : > { %2710 = vst.msk [vmem:[#allocation2 + $0x38] sm:$0xff] %vm2702_vm11, %v2693_v59 }
 0xa30   : > { %v2717_v52 = vld [vmem:[#allocation2 + $0x30] sm:$0xff] }
 0xa31   : > { %3570 = vmatprep.mubr.bf16.mxu1 %v2717_v52 }
 0xa34   : > { %v2718_v30 = vld [vmem:[#allocation2 + $0x38] sm:$0xff] }
 0xa35   : > { %3571 = vmatmul.mubr.bf16.gmra.mrb[84].mxu1 %v2718_v30 }
 0xaca   : > { %v3560_v7 = vpop.f32.mrb[96].mxu0 }
 0xacb   : > { %v2833_v27 = vadd.f32 %v3560_v7, %v3078_v54  ;;  %v2824_v24 = vpop.f32.mrb[97].mxu0 }
 0xacc   : > { %v2825_v6 = vadd.f32 %v3078_v54, %v2824_v24  ;;  %v3561_v20 = vpop.f32.mrb[98].mxu0 }
 0xacd   : > { %2889 = vst [vmem:[%s5776_s7 + $0x10] sm:$0xff] %v2833_v27  ;;  %v2836_v44 = vadd.f32 %v3561_v20, %v3078_v54  ;;  %v2827_v8 = vpop.f32.mrb[99].mxu0 }
 0xace   : > { %2887 = vst [vmem:[%s5776_s7] sm:$0xff] %v2825_v6  ;;  %v2828_v29 = vadd.f32 %v3078_v54, %v2827_v8 }
 0xacf   : > { %2890 = vst [vmem:[%s5776_s7 + $0x18] sm:$0xff] %v2836_v44 }
 0xad0   : > { %2888 = vst [vmem:[%s5776_s7 + $0x8] sm:$0xff] %v2828_v29 }
 0xad5   : > { %v3564_v58 = vpop.f32.mrb[100].mxu0 }
 0xad6   : > { %v2849_v33 = vadd.f32 %v3564_v58, %v3078_v54  ;;  %v2840_v51 = vpop.f32.mrb[101].mxu0 }
 0xad7   : > { %v2841_v49 = vadd.f32 %v3078_v54, %v2840_v51  ;;  %v3565_v60 = vpop.f32.mrb[102].mxu0 }
 0xad8   : > { %2893 = vst [vmem:[%s5776_s7 + $0x30] sm:$0xff] %v2849_v33  ;;  %v2852_v2 = vadd.f32 %v3565_v60, %v3078_v54  ;;  %v2843_v4 = vpop.f32.mrb[103].mxu0 }
 0xad9   : > { %2891 = vst [vmem:[%s5776_s7 + $0x20] sm:$0xff] %v2841_v49  ;;  %v2844_v56 = vadd.f32 %v3078_v54, %v2843_v4 }
 0xada   : > { %2894 = vst [vmem:[%s5776_s7 + $0x38] sm:$0xff] %v2852_v2 }
 0xadb   : > { %v3568_v1 = vpop.f32.mrb[80].mxu1  ;;  %2892 = vst [vmem:[%s5776_s7 + $0x28] sm:$0xff] %v2844_v56 }
 0xadc   : > { %v2865_v55 = vadd.f32 %v3568_v1, %v3078_v54  ;;  %v2856_v16 = vpop.f32.mrb[81].mxu1 }
 0xadd   : > { %v2857_v3 = vadd.f32 %v3078_v54, %v2856_v16  ;;  %v3569_v12 = vpop.f32.mrb[82].mxu1 }
 0xade   : > { %2897 = vst [vmem:[%s5776_s7 + $0x50] sm:$0xff] %v2865_v55  ;;  %v2868_v63 = vadd.f32 %v3569_v12, %v3078_v54  ;;  %v2859_v48 = vpop.f32.mrb[83].mxu1 }
 0xadf   : > { %2895 = vst [vmem:[%s5776_s7 + $0x40] sm:$0xff] %v2857_v3  ;;  %v2860_v57 = vadd.f32 %v3078_v54, %v2859_v48 }
 0xae0   : > { %2898 = vst [vmem:[%s5776_s7 + $0x58] sm:$0xff] %v2868_v63 }
 0xae1   : > { %2896 = vst [vmem:[%s5776_s7 + $0x48] sm:$0xff] %v2860_v57 }
 0xb08   : > { %v3572_v43 = vpop.f32.mrb[84].mxu1 }
 0xb09   : > { %v2881_v9 = vadd.f32 %v3572_v43, %v3078_v54  ;;  %v2872_v28 = vpop.f32.mrb[85].mxu1 }
 0xb0a   : > { %v2873_v61 = vadd.f32 %v3078_v54, %v2872_v28  ;;  %v3573_v34 = vpop.f32.mrb[86].mxu1 }
 0xb0b   : > { %2901 = vst [vmem:[%s5776_s7 + $0x70] sm:$0xff] %v2881_v9  ;;  %v2884_v25 = vadd.f32 %v3573_v34, %v3078_v54  ;;  %v2875_v35 = vpop.f32.mrb[87].mxu1 }
 0xb0c   : > { %2899 = vst [vmem:[%s5776_s7 + $0x60] sm:$0xff] %v2873_v61  ;;  %v2876_v45 = vadd.f32 %v3078_v54, %v2875_v35 }
 0xb0d   : > { %2902 = vst [vmem:[%s5776_s7 + $0x78] sm:$0xff] %v2884_v25 }
 0xb0e   : > { %2900 = vst [vmem:[%s5776_s7 + $0x68] sm:$0xff] %v2876_v45 }
 0xb0f   : > { %4096 = shalt.err (!%p4093_p2)
}
 0xb10   : > { %s4097_s13 = scalar_lea.hbm %s5796_s29, 2048  ;;  %s4101_s30 = scalar_lea.hbm %s5849_s4, 4096 }
 0xb11   : > { %p4098_p13 = scmp.ne.s32.totalorder %s5796_s29, %s4097_s13  ;;  %p4102_p4 = scmp.lt.u32.totalorder %s5796_s29, %s5849_s4 }
 0xb12   : > { %p4103_p7 = scmp.lt.u32.totalorder %s4101_s30, %s4097_s13  ;;  %p4105_p11 = scmp.lt.u32.totalorder %s4097_s13, %s5796_s29 }
 0xb13   : > { %p4099_p6 = pnand %p4098_p13, %p6066_p0 }
 0xb14   : > { %p4104_p8 = por %p4103_p7, %p4102_p4 }
 0xb15   : > { %p4100_p10 = pneg %p4099_p6 }
 0xb16   : > { %p4106_p1 = por %p4105_p11, %p4104_p8 }
 0xb18   : > { %p4107_p3 = pnand %p4106_p1, %p4100_p10 }
 0xb1a   : > { %4110 = shalt.err (!%p4107_p3)
}
 0xb1b   : > { %s4169_s7 = smov 128   ;;  %s4170_s24 = smov 8  }
 0xb1c   : > { %3632 = dma.vmem_to_hbm [thread:$0]  (%p6066_p0), %s5798_s26, 2048, %s5796_s29, %s2904_s19, %s4169_s7, %s4169_s7, %s4170_s24  }
 0xb1d PF: > { %s2932_s28 = sand.u32 1, %s4141_s15   ;;  %p6067_p5 = scmp.ne.s32.totalorder %s5897_s22, 0 }
 0xb1e   : > { %p6068_p9 = scmp.ge.s32.totalorder %s4153_s18, 2  ;;  %s2933_s27 = scalar_lea.sflag [#allocation5], %s2932_s28 }
 0xb20   : > { %p3646_p12 = pnand %p6068_p9, %p6067_p5 }
 0xb22   : > { %4136 = dma.done.wait (!%p3646_p12), %s2933_s27, 2048  }
 0xb23   : > { %4138 = vsyncadd (!%p3646_p12), %s2933_s27, 4294965248  ;;  %p18_p2 = scmp.ge.s32.totalorder %s4306_s11, 4   ;;  %s6069_s15 = smov %s4145_s16 }
 0xb24   : > { %s6070_s16 = smov %s4149_s17  ;;  %s6071_s17 = smov %s4315_s14 }
 0xb25   : > { %s6072_s18 = smov %s4306_s11  ;;  %20 = sbr.rel (!%p18_p2) target bundleno = 6 (0x6), region = 89 }
 0xb2c   :  { %2938 = vsyncpa [#allocation4], 1 }
 0xb2d   :  { %2940 = vsyncpa [#allocation4 + $0x1], 1 }
 0xb2e   :  { %2941 = vsyncpa [#allocation7], 1 }
 0xb2f   :  { %2942 = vsyncpa [#allocation5], 1 }
 0xb30   :  { %2944 = vsyncpa [#allocation5 + $0x1], 1 }

</bundles_post_ra>
